<compile_context>
chip_gen: v7x
topology: tpu7x:2x2x1
jax: 0.10.0
libtpu: 0.0.40
codegen_flags: <defaults>
</compile_context>

<pallas_src>
import functools
import math

import jax
import jax.numpy as jnp
from jax import lax
from jax.experimental import pallas as pl
from jax.experimental.pallas import tpu as pltpu


# ----------------------------------------------------------------------------
# helpers
# ----------------------------------------------------------------------------
def _pick_block(dim, target, granule):
    """Largest block <= target that divides `dim` and is a multiple of `granule`
    (falls back to the full dim, which is always legal for a BlockSpec)."""
    if dim <= target:
        return dim
    t = (target // granule) * granule
    while t >= granule:
        if dim % t == 0:
            return t
        t -= granule
    return dim


def _gelu_tanh(x):
    # TODO(synk): nn.GELU defaults to the exact erf GELU; we use the tanh
    # approximation (the module's own GELU_ fallback) for robust EUP lowering.
    c = math.sqrt(2.0 / math.pi)
    return 0.5 * x * (1.0 + jnp.tanh(c * (x + 0.044715 * x * x * x)))


# ----------------------------------------------------------------------------
# Kernel 1: tiled linear  y = act(x @ w + b)
# ----------------------------------------------------------------------------
def _linear_kernel(x_ref, w_ref, b_ref, o_ref, acc_ref, *, activation):
    @pl.when(pl.program_id(2) == 0)
    def _():
        acc_ref[...] = jnp.zeros_like(acc_ref)

    acc_ref[...] += jnp.dot(
        x_ref[...].astype(jnp.bfloat16),
        w_ref[...].astype(jnp.bfloat16),
        preferred_element_type=jnp.float32,
    )

    @pl.when(pl.program_id(2) == pl.num_programs(2) - 1)
    def _():
        r = acc_ref[...] + b_ref[...].astype(jnp.float32)
        if activation is not None:
            r = activation(r)
        o_ref[...] = r.astype(o_ref.dtype)


def pallas_linear(x, w, b=None, activation=None):
    """x: (M, K), w: (K, N), b: (N,) or None -> (M, N)."""
    M, K = x.shape
    N = w.shape[1]
    if b is None:
        b = jnp.zeros((N,), x.dtype)
    bm = _pick_block(M, 256, 8)
    bn = _pick_block(N, 256, 128)
    bk = _pick_block(K, 512, 128)
    grid = (M // bm, N // bn, K // bk)
    kernel = functools.partial(_linear_kernel, activation=activation)
    return pl.pallas_call(
        kernel,
        out_shape=jax.ShapeDtypeStruct((M, N), x.dtype),
        grid=grid,
        in_specs=[
            pl.BlockSpec((bm, bk), lambda i, j, kk: (i, kk)),
            pl.BlockSpec((bk, bn), lambda i, j, kk: (kk, j)),
            pl.BlockSpec((1, bn), lambda i, j, kk: (0, j)),
        ],
        out_specs=pl.BlockSpec((bm, bn), lambda i, j, kk: (i, j)),
        scratch_shapes=[pltpu.VMEM((bm, bn), jnp.float32)],
        compiler_params=pltpu.CompilerParams(
            dimension_semantics=("parallel", "parallel", "arbitrary")),
        cost_estimate=pl.CostEstimate(
            flops=2 * M * N * K,
            transcendentals=0,
            bytes_accessed=4 * (M * K + K * N + M * N)),
    )(x, w, b.reshape(1, N))


# ----------------------------------------------------------------------------
# Kernel 2: LayerNorm over last dim
# ----------------------------------------------------------------------------
def _layernorm_kernel(x_ref, g_ref, b_ref, o_ref, *, eps):
    x = x_ref[...].astype(jnp.float32)
    mu = jnp.mean(x, axis=-1, keepdims=True)
    xc = x - mu
    var = jnp.mean(xc * xc, axis=-1, keepdims=True)
    inv = lax.rsqrt(var + eps)
    y = xc * inv * g_ref[...].astype(jnp.float32) + b_ref[...].astype(jnp.float32)
    o_ref[...] = y.astype(o_ref.dtype)


def pallas_layernorm(x, gamma, beta, eps=1e-5):
    M, D = x.shape
    bm = _pick_block(M, 256, 8)
    return pl.pallas_call(
        functools.partial(_layernorm_kernel, eps=eps),
        out_shape=jax.ShapeDtypeStruct((M, D), x.dtype),
        grid=(M // bm,),
        in_specs=[
            pl.BlockSpec((bm, D), lambda i: (i, 0)),
            pl.BlockSpec((1, D), lambda i: (0, 0)),
            pl.BlockSpec((1, D), lambda i: (0, 0)),
        ],
        out_specs=pl.BlockSpec((bm, D), lambda i: (i, 0)),
        compiler_params=pltpu.CompilerParams(dimension_semantics=("parallel",)),
    )(x, gamma.reshape(1, D), beta.reshape(1, D))


# ----------------------------------------------------------------------------
# Kernel 3: Linformer sequence compression  einsum('bnd,nk->bkd')
#           (projection passed pre-transposed as (k, n); plain matmul, no .T)
# ----------------------------------------------------------------------------
def _seq_proj_kernel(pt_ref, x_ref, o_ref):
    p = pt_ref[...].astype(jnp.bfloat16)   # (kL, n)
    x = x_ref[0].astype(jnp.bfloat16)      # (n, d)
    o_ref[0] = jnp.dot(p, x, preferred_element_type=jnp.float32).astype(o_ref.dtype)


def pallas_seq_project(x, proj_t):
    """x: (B, n, d), proj_t: (kL, n) -> (B, kL, d)."""
    B, n, d = x.shape
    kL = proj_t.shape[0]
    return pl.pallas_call(
        _seq_proj_kernel,
        out_shape=jax.ShapeDtypeStruct((B, kL, d), x.dtype),
        grid=(B,),
        in_specs=[
            pl.BlockSpec((kL, n), lambda b: (0, 0)),
            pl.BlockSpec((1, n, d), lambda b: (b, 0, 0)),
        ],
        out_specs=pl.BlockSpec((1, kL, d), lambda b: (b, 0, 0)),
        compiler_params=pltpu.CompilerParams(dimension_semantics=("parallel",)),
        cost_estimate=pl.CostEstimate(
            flops=2 * B * kL * n * d,
            transcendentals=0,
            bytes_accessed=4 * (B * n * d + kL * n + B * kL * d)),
    )(proj_t, x)


# ----------------------------------------------------------------------------
# Kernel 4: Linformer attention core (heads packed in the lane dim)
#   per (batch, query-tile): for each head h
#     dots = scale * q_h @ k_h^T   (contraction on last dims, no transpose)
#     attn = softmax(dots)  ;  out_h = attn @ v_h
# ----------------------------------------------------------------------------
def _linformer_attn_kernel(q_ref, k_ref, v_ref, o_ref, *, heads, dim_head, scale):
    q = q_ref[0]    # (bn, H*dh) fp32
    k = k_ref[0]    # (kL, H*dh)
    v = v_ref[0]    # (kL, H*dh)
    outs = []
    for h in range(heads):
        s = h * dim_head
        e = s + dim_head
        qh = q[:, s:e].astype(jnp.bfloat16)
        kh = k[:, s:e].astype(jnp.bfloat16)
        vh = v[:, s:e].astype(jnp.bfloat16)
        dots = lax.dot_general(
            qh, kh, (((1,), (1,)), ((), ())),
            preferred_element_type=jnp.float32) * scale          # (bn, kL) fp32
        m = jnp.max(dots, axis=-1, keepdims=True)
        p = jnp.exp(dots - m)
        r = pl.reciprocal(jnp.sum(p, axis=-1, keepdims=True), approx=True)
        p = p * r
        oh = jnp.dot(p.astype(jnp.bfloat16), vh,
                     preferred_element_type=jnp.float32)         # (bn, dh) fp32
        outs.append(oh)
    o_ref[0] = jnp.concatenate(outs, axis=-1).astype(o_ref.dtype)


def pallas_linformer_attention(q, k, v, *, heads, dim_head):
    """q: (B, n, H*dh); k, v: (B, kL, H*dh) -> (B, n, H*dh)."""
    B, n, D = q.shape
    kL = k.shape[1]
    scale = dim_head ** (-0.5)
    bn = _pick_block(n, 128, 8)
    kernel = functools.partial(
        _linformer_attn_kernel, heads=heads, dim_head=dim_head, scale=scale)
    return pl.pallas_call(
        kernel,
        out_shape=jax.ShapeDtypeStruct((B, n, D), q.dtype),
        grid=(B, n // bn),
        in_specs=[
            pl.BlockSpec((1, bn, D), lambda b, i: (b, i, 0)),
            pl.BlockSpec((1, kL, D), lambda b, i: (b, 0, 0)),
            pl.BlockSpec((1, kL, D), lambda b, i: (b, 0, 0)),
        ],
        out_specs=pl.BlockSpec((1, bn, D), lambda b, i: (b, i, 0)),
        compiler_params=pltpu.CompilerParams(
            dimension_semantics=("parallel", "parallel")),
        cost_estimate=pl.CostEstimate(
            flops=4 * B * n * kL * D,
            transcendentals=B * heads * n * kL,
            bytes_accessed=4 * (2 * B * n * D + 2 * B * kL * D)),
    )(q, k, v)


# ----------------------------------------------------------------------------
# Full LinformerLM forward (Pallas kernels + JAX glue)
# ----------------------------------------------------------------------------
def linformer_lm_forward(tokens, params, *, heads, dim_head):
    B, n = tokens.shape
    dim = params["token_emb"].shape[1]
    inner = heads * dim_head

    # embedding gathers: plain JAX glue
    x = params["token_emb"][tokens] + params["pos_emb"][:n][None, :, :]

    # TODO(synk): execute_type is undefined in the spec; we assume the standard
    # non-reversible SequentialSequence (residual: x = x + f(x); x = x + g(x)).
    for layer in params["layers"]:
        # ---- PreNorm + LinformerSelfAttention + residual ----
        h_in = pallas_layernorm(x.reshape(B * n, dim), layer["ln1_g"], layer["ln1_b"])
        q = pallas_linear(h_in, layer["to_q_w"]).reshape(B, n, inner)
        kx = pallas_linear(h_in, layer["to_k_w"]).reshape(B, n, inner)
        vx = pallas_linear(h_in, layer["to_v_w"]).reshape(B, n, inner)

        proj_k_t = jnp.transpose(layer["proj_k"])   # (kL, n), tiny parameter
        proj_v_t = jnp.transpose(layer["proj_v"])
        k_proj = pallas_seq_project(kx, proj_k_t)   # (B, kL, inner)
        v_proj = pallas_seq_project(vx, proj_v_t)

        attn_out = pallas_linformer_attention(
            q, k_proj, v_proj, heads=heads, dim_head=dim_head)  # (B, n, inner)
        attn_out = pallas_linear(
            attn_out.reshape(B * n, inner), layer["to_out_w"], layer["to_out_b"])
        x = x + attn_out.reshape(B, n, dim)

        # ---- PreNorm + FeedForward (w1 -> GELU -> w2) + residual ----
        h_in = pallas_layernorm(x.reshape(B * n, dim), layer["ln2_g"], layer["ln2_b"])
        mid = pallas_linear(h_in, layer["w1_w"], layer["w1_b"], activation=_gelu_tanh)
        ff = pallas_linear(mid, layer["w2_w"], layer["w2_b"])
        x = x + ff.reshape(B, n, dim)

    logits = pallas_linear(
        x.reshape(B * n, dim), params["to_logits_w"], params["to_logits_b"])
    return logits.reshape(B, n, -1)


# ----------------------------------------------------------------------------
# Pure-JAX reference (mirrors the PyTorch forward, fp32 throughout)
# ----------------------------------------------------------------------------
def _layernorm_ref(x, g, b, eps=1e-5):
    mu = jnp.mean(x, axis=-1, keepdims=True)
    xc = x - mu
    var = jnp.mean(xc * xc, axis=-1, keepdims=True)
    return xc * lax.rsqrt(var + eps) * g + b


def reference_forward(tokens, params, *, heads, dim_head):
    B, n = tokens.shape
    inner = heads * dim_head
    scale = dim_head ** (-0.5)
    x = params["token_emb"][tokens] + params["pos_emb"][:n][None, :, :]
    for layer in params["layers"]:
        h_in = _layernorm_ref(x, layer["ln1_g"], layer["ln1_b"])
        q = h_in @ layer["to_q_w"]
        kx = h_in @ layer["to_k_w"]
        vx = h_in @ layer["to_v_w"]
        k_proj = jnp.einsum("bnd,nk->bkd", kx, layer["proj_k"])
        v_proj = jnp.einsum("bnd,nk->bkd", vx, layer["proj_v"])
        kL = k_proj.shape[1]
        qh = q.reshape(B, n, heads, dim_head).transpose(0, 2, 1, 3)
        kh = k_proj.reshape(B, kL, heads, dim_head).transpose(0, 2, 1, 3)
        vh = v_proj.reshape(B, kL, heads, dim_head).transpose(0, 2, 1, 3)
        dots = jnp.einsum("bhnd,bhkd->bhnk", qh, kh) * scale
        attn = jax.nn.softmax(dots, axis=-1)
        out = jnp.einsum("bhnk,bhkd->bhnd", attn, vh)
        out = out.transpose(0, 2, 1, 3).reshape(B, n, inner)
        x = x + (out @ layer["to_out_w"] + layer["to_out_b"])
        h_in = _layernorm_ref(x, layer["ln2_g"], layer["ln2_b"])
        mid = _gelu_tanh(h_in @ layer["w1_w"] + layer["w1_b"])
        x = x + (mid @ layer["w2_w"] + layer["w2_b"])
    return x @ params["to_logits_w"] + params["to_logits_b"]


# ----------------------------------------------------------------------------
# deterministic parameter init (weights stored pre-transposed as (in, out))
# ----------------------------------------------------------------------------
def init_params(key, *, num_tokens, dim, seq_len, depth, kproj, heads, dim_head,
                ff_mult=4):
    inner = heads * dim_head
    keys = jax.random.split(key, 4 + depth)

    def nrm(k, shape, s):
        return jax.random.normal(k, shape, jnp.float32) * s

    params = {
        "token_emb": nrm(keys[0], (num_tokens, dim), 0.02),
        "pos_emb": nrm(keys[1], (seq_len, dim), 0.02),
        "to_logits_w": nrm(keys[2], (dim, num_tokens), 0.08),
        "to_logits_b": nrm(keys[3], (num_tokens,), 0.02),
        "layers": [],
    }
    for li in range(depth):
        lk = jax.random.split(keys[4 + li], 16)
        params["layers"].append({
            "ln1_g": 1.0 + nrm(lk[0], (dim,), 0.1),
            "ln1_b": nrm(lk[1], (dim,), 0.05),
            "to_q_w": nrm(lk[2], (dim, inner), 0.08),
            "to_k_w": nrm(lk[3], (dim, inner), 0.08),
            "to_v_w": nrm(lk[4], (dim, inner), 0.08),
            "proj_k": nrm(lk[5], (seq_len, kproj), 0.1),
            "proj_v": nrm(lk[6], (seq_len, kproj), 0.1),
            "to_out_w": nrm(lk[7], (inner, dim), 0.08),
            "to_out_b": nrm(lk[8], (dim,), 0.02),
            "ln2_g": 1.0 + nrm(lk[9], (dim,), 0.1),
            "ln2_b": nrm(lk[10], (dim,), 0.05),
            "w1_w": nrm(lk[11], (dim, dim * ff_mult), 0.08),
            "w1_b": nrm(lk[12], (dim * ff_mult,), 0.02),
            "w2_w": nrm(lk[13], (dim * ff_mult, dim), 0.05),
            "w2_b": nrm(lk[14], (dim,), 0.02),
        })
    return params


if __name__ == "__main__":
    # Small shapes consistent with LinformerLM defaults (dim % heads == 0).
    B = 2
    num_tokens = 64
    dim = 32
    seq_len = 64
    depth = 2
    kproj = 16          # Linformer compression length k
    heads = 4
    dim_head = dim // heads

    key = jax.random.PRNGKey(0)
    kp, kt = jax.random.split(key)
    params = init_params(kp, num_tokens=num_tokens, dim=dim, seq_len=seq_len,
                         depth=depth, kproj=kproj, heads=heads, dim_head=dim_head)
    tokens = jax.random.randint(kt, (B, seq_len), 0, num_tokens)

    fwd = jax.jit(functools.partial(
        linformer_lm_forward, heads=heads, dim_head=dim_head))
    out = jax.block_until_ready(fwd(tokens, params))

    ref = reference_forward(tokens, params, heads=heads, dim_head=dim_head)
    assert out.shape == (B, seq_len, num_tokens)
    err = float(jnp.max(jnp.abs(out - ref)))
    assert jnp.allclose(out, ref, atol=3e-2, rtol=3e-2), f"max abs err = {err}"
    print("KERNEL_OK")
</pallas_src>

<mosaic_0001>
module attributes {stable_mosaic.version = 11 : i64} {
  func.func @_seq_proj_kernel(%arg0: i32, %arg1: memref<16x64xf32, #tpu.memory_space<vmem>>, %arg2: memref<1x64x32xf32, #tpu.memory_space<vmem>>, %arg3: memref<1x16x32xf32, #tpu.memory_space<vmem>>) attributes {dimension_semantics = [#tpu.dimension_semantics<parallel>], iteration_bounds = array<i64: 2>, scalar_prefetch = 0 : i64, scratch_operands = 0 : i64, tpu.core_type = #tpu.core_type<tc>, window_params = [{pipeline_mode = #tpu.pipeline_mode<synchronous>, transform_indices = @transform_0, window_bounds = array<i64: 16, 64>}, {transform_indices = @transform_1, window_bounds = array<i64: 1, 64, 32>}, {transform_indices = @transform_2, window_bounds = array<i64: 1, 16, 32>}]} {
    %c0 = arith.constant 0 : index
    %c0_0 = arith.constant 0 : index
    %0 = vector.load %arg1[%c0, %c0_0] : memref<16x64xf32, #tpu.memory_space<vmem>>, vector<16x64xf32>
    %1 = arith.truncf %0 : vector<16x64xf32> to vector<16x64xbf16>
    %c0_1 = arith.constant 0 : index
    %c0_2 = arith.constant 0 : index
    %c0_3 = arith.constant 0 : index
    %2 = vector.load %arg2[%c0_1, %c0_2, %c0_3] : memref<1x64x32xf32, #tpu.memory_space<vmem>>, vector<1x64x32xf32>
    %3 = vector.shape_cast %2 : vector<1x64x32xf32> to vector<64x32xf32>
    %4 = arith.truncf %3 : vector<64x32xf32> to vector<64x32xbf16>
    %cst = arith.constant dense<0.000000e+00> : vector<16x32xf32>
    %5 = tpu.matmul %1, %4, %cst {dimension_numbers = #tpu.dot_dimension_numbers<[1], [0], [0], [1], [0, 0, 1, 1], [], []>} : vector<16x64xbf16>, vector<64x32xbf16>, vector<16x32xf32> -> vector<16x32xf32>
    %c0_4 = arith.constant 0 : index
    %c0_5 = arith.constant 0 : index
    %c0_6 = arith.constant 0 : index
    %6 = vector.load %arg3[%c0_4, %c0_5, %c0_6] : memref<1x16x32xf32, #tpu.memory_space<vmem>>, vector<1x16x32xf32>
    %7 = vector.shape_cast %6 : vector<1x16x32xf32> to vector<16x32xf32>
    %8 = vector.shape_cast %5 : vector<16x32xf32> to vector<1x16x32xf32>
    tpu.vector_store %arg3[%c0_4, %c0_5, %c0_6], %8 {strides = array<i32>} : memref<1x16x32xf32, #tpu.memory_space<vmem>>, vector<1x16x32xf32>,
    return
  }
  func.func @transform_0(%arg0: i32) -> (i32, i32) {
    %c0_i32 = arith.constant 0 : i32
    %c0_i32_0 = arith.constant 0 : i32
    %c0_i32_1 = arith.constant 0 : i32
    return %c0_i32, %c0_i32_0 : i32, i32
  }
  func.func @transform_1(%arg0: i32) -> (i32, i32, i32) {
    %c0_i32 = arith.constant 0 : i32
    %c0_i32_0 = arith.constant 0 : i32
    %c0_i32_1 = arith.constant 0 : i32
    return %arg0, %c0_i32, %c0_i32_0 : i32, i32, i32
  }
  func.func @transform_2(%arg0: i32) -> (i32, i32, i32) {
    %c0_i32 = arith.constant 0 : i32
    %c0_i32_0 = arith.constant 0 : i32
    %c0_i32_1 = arith.constant 0 : i32
    return %arg0, %c0_i32, %c0_i32_0 : i32, i32, i32
  }
}

module attributes {stable_mosaic.version = 11 : i64} {
  func.func @_layernorm_kernel(%arg0: i32, %arg1: memref<128x32xf32, #tpu.memory_space<vmem>>, %arg2: memref<1x32xf32, #tpu.memory_space<vmem>>, %arg3: memref<1x32xf32, #tpu.memory_space<vmem>>, %arg4: memref<128x32xf32, #tpu.memory_space<vmem>>) attributes {dimension_semantics = [#tpu.dimension_semantics<parallel>], iteration_bounds = array<i64: 1>, scalar_prefetch = 0 : i64, scratch_operands = 0 : i64, tpu.core_type = #tpu.core_type<tc>, window_params = [{transform_indices = @transform_0, window_bounds = array<i64: 128, 32>}, {pipeline_mode = #tpu.pipeline_mode<synchronous>, transform_indices = @transform_1, window_bounds = array<i64: 1, 32>}, {pipeline_mode = #tpu.pipeline_mode<synchronous>, transform_indices = @transform_2, window_bounds = array<i64: 1, 32>}, {transform_indices = @transform_3, window_bounds = array<i64: 128, 32>}]} {
    %c0 = arith.constant 0 : index
    %c0_0 = arith.constant 0 : index
    %0 = vector.load %arg1[%c0, %c0_0] : memref<128x32xf32, #tpu.memory_space<vmem>>, vector<128x32xf32>
    %cst = arith.constant dense<0.000000e+00> : vector<128xf32>
    %1 = vector.multi_reduction <add>, %0, %cst [1] : vector<128x32xf32> to vector<128xf32>
    %2 = vector.shape_cast %1 : vector<128xf32> to vector<128x1xf32>
    %cst_1 = arith.constant 3.200000e+01 : f32
    %3 = vector.broadcast %cst_1 : f32 to vector<128x1xf32>
    %4 = arith.divf %2, %3 : vector<128x1xf32>
    %5 = vector.broadcast %4 : vector<128x1xf32> to vector<128x32xf32>
    %6 = arith.subf %0, %5 : vector<128x32xf32>
    %7 = arith.mulf %6, %6 : vector<128x32xf32>
    %cst_2 = arith.constant dense<0.000000e+00> : vector<128xf32>
    %8 = vector.multi_reduction <add>, %7, %cst_2 [1] : vector<128x32xf32> to vector<128xf32>
    %9 = vector.shape_cast %8 : vector<128xf32> to vector<128x1xf32>
    %cst_3 = arith.constant 3.200000e+01 : f32
    %10 = vector.broadcast %cst_3 : f32 to vector<128x1xf32>
    %11 = arith.divf %9, %10 : vector<128x1xf32>
    %cst_4 = arith.constant 9.99999974E-6 : f32
    %12 = vector.broadcast %cst_4 : f32 to vector<128x1xf32>
    %13 = arith.addf %11, %12 : vector<128x1xf32>
    %14 = math.rsqrt %13 : vector<128x1xf32>
    %15 = vector.broadcast %14 : vector<128x1xf32> to vector<128x32xf32>
    %16 = arith.mulf %6, %15 : vector<128x32xf32>
    %c0_5 = arith.constant 0 : index
    %c0_6 = arith.constant 0 : index
    %17 = vector.load %arg2[%c0_5, %c0_6] : memref<1x32xf32, #tpu.memory_space<vmem>>, vector<1x32xf32>
    %18 = vector.broadcast %17 : vector<1x32xf32> to vector<128x32xf32>
    %19 = arith.mulf %16, %18 : vector<128x32xf32>
    %c0_7 = arith.constant 0 : index
    %c0_8 = arith.constant 0 : index
    %20 = vector.load %arg3[%c0_7, %c0_8] : memref<1x32xf32, #tpu.memory_space<vmem>>, vector<1x32xf32>
    %21 = vector.broadcast %20 : vector<1x32xf32> to vector<128x32xf32>
    %22 = arith.addf %19, %21 : vector<128x32xf32>
    %c0_9 = arith.constant 0 : index
    %c0_10 = arith.constant 0 : index
    %23 = vector.load %arg4[%c0_9, %c0_10] : memref<128x32xf32, #tpu.memory_space<vmem>>, vector<128x32xf32>
    tpu.vector_store %arg4[%c0_9, %c0_10], %22 {strides = array<i32>} : memref<128x32xf32, #tpu.memory_space<vmem>>, vector<128x32xf32>,
    return
  }
  func.func @transform_0(%arg0: i32) -> (i32, i32) {
    %c0_i32 = arith.constant 0 : i32
    %c0_i32_0 = arith.constant 0 : i32
    return %arg0, %c0_i32 : i32, i32
  }
  func.func @transform_1(%arg0: i32) -> (i32, i32) {
    %c0_i32 = arith.constant 0 : i32
    %c0_i32_0 = arith.constant 0 : i32
    %c0_i32_1 = arith.constant 0 : i32
    return %c0_i32, %c0_i32_0 : i32, i32
  }
  func.func @transform_2(%arg0: i32) -> (i32, i32) {
    %c0_i32 = arith.constant 0 : i32
    %c0_i32_0 = arith.constant 0 : i32
    %c0_i32_1 = arith.constant 0 : i32
    return %c0_i32, %c0_i32_0 : i32, i32
  }
  func.func @transform_3(%arg0: i32) -> (i32, i32) {
    %c0_i32 = arith.constant 0 : i32
    %c0_i32_0 = arith.constant 0 : i32
    return %arg0, %c0_i32 : i32, i32
  }
}

module attributes {stable_mosaic.version = 11 : i64} {
  func.func @_linear_kernel(%arg0: i32, %arg1: i32, %arg2: i32, %arg3: memref<128x32xf32, #tpu.memory_space<vmem>>, %arg4: memref<32x32xf32, #tpu.memory_space<vmem>>, %arg5: memref<1x32xf32, #tpu.memory_space<vmem>>, %arg6: memref<128x32xf32, #tpu.memory_space<vmem>>, %arg7: memref<128x32xf32, #tpu.memory_space<vmem>>) attributes {dimension_semantics = [#tpu.dimension_semantics<parallel>, #tpu.dimension_semantics<parallel>, #tpu.dimension_semantics<arbitrary>], iteration_bounds = array<i64: 1, 1, 1>, scalar_prefetch = 0 : i64, scratch_operands = 1 : i64, tpu.core_type = #tpu.core_type<tc>, window_params = [{transform_indices = @transform_0, window_bounds = array<i64: 128, 32>}, {transform_indices = @transform_1, window_bounds = array<i64: 32, 32>}, {transform_indices = @transform_2, window_bounds = array<i64: 1, 32>}, {transform_indices = @transform_3, window_bounds = array<i64: 128, 32>}]} {
    %c0_i32 = arith.constant 0 : i32
    %0 = arith.cmpi eq, %arg2, %c0_i32 : i32
    %1 = arith.extui %0 : i1 to i32
    %c0_i32_0 = arith.constant 0 : i32
    %2 = arith.cmpi ne, %1, %c0_i32_0 : i32
    scf.if %2 {
      %cst_10 = arith.constant 0.000000e+00 : f32
      %14 = vector.broadcast %cst_10 : f32 to vector<128x32xf32>
      %c0_11 = arith.constant 0 : index
      %c0_12 = arith.constant 0 : index
      %15 = vector.load %arg7[%c0_11, %c0_12] : memref<128x32xf32, #tpu.memory_space<vmem>>, vector<128x32xf32>
      tpu.vector_store %arg7[%c0_11, %c0_12], %14 {strides = array<i32>} : memref<128x32xf32, #tpu.memory_space<vmem>>, vector<128x32xf32>,
    } else {
    }
    %c0 = arith.constant 0 : index
    %c0_1 = arith.constant 0 : index
    %3 = vector.load %arg7[%c0, %c0_1] : memref<128x32xf32, #tpu.memory_space<vmem>>, vector<128x32xf32>
    %c0_2 = arith.constant 0 : index
    %c0_3 = arith.constant 0 : index
    %4 = vector.load %arg3[%c0_2, %c0_3] : memref<128x32xf32, #tpu.memory_space<vmem>>, vector<128x32xf32>
    %5 = arith.truncf %4 : vector<128x32xf32> to vector<128x32xbf16>
    %c0_4 = arith.constant 0 : index
    %c0_5 = arith.constant 0 : index
    %6 = vector.load %arg4[%c0_4, %c0_5] : memref<32x32xf32, #tpu.memory_space<vmem>>, vector<32x32xf32>
    %7 = arith.truncf %6 : vector<32x32xf32> to vector<32x32xbf16>
    %cst = arith.constant dense<0.000000e+00> : vector<128x32xf32>
    %8 = tpu.matmul %5, %7, %cst {dimension_numbers = #tpu.dot_dimension_numbers<[1], [0], [0], [1], [0, 0, 1, 1], [], []>} : vector<128x32xbf16>, vector<32x32xbf16>, vector<128x32xf32> -> vector<128x32xf32>
    %9 = arith.addf %3, %8 : vector<128x32xf32>
    %c0_6 = arith.constant 0 : index
    %c0_7 = arith.constant 0 : index
    %10 = vector.load %arg7[%c0_6, %c0_7] : memref<128x32xf32, #tpu.memory_space<vmem>>, vector<128x32xf32>
    tpu.vector_store %arg7[%c0_6, %c0_7], %9 {strides = array<i32>} : memref<128x32xf32, #tpu.memory_space<vmem>>, vector<128x32xf32>,
    %c0_i32_8 = arith.constant 0 : i32
    %11 = arith.cmpi eq, %arg2, %c0_i32_8 : i32
    %12 = arith.extui %11 : i1 to i32
    %c0_i32_9 = arith.constant 0 : i32
    %13 = arith.cmpi ne, %12, %c0_i32_9 : i32
    scf.if %13 {
      %c0_10 = arith.constant 0 : index
      %c0_11 = arith.constant 0 : index
      %14 = vector.load %arg7[%c0_10, %c0_11] : memref<128x32xf32, #tpu.memory_space<vmem>>, vector<128x32xf32>
      %c0_12 = arith.constant 0 : index
      %c0_13 = arith.constant 0 : index
      %15 = vector.load %arg5[%c0_12, %c0_13] : memref<1x32xf32, #tpu.memory_space<vmem>>, vector<1x32xf32>
      %16 = vector.broadcast %15 : vector<1x32xf32> to vector<128x32xf32>
      %17 = arith.addf %14, %16 : vector<128x32xf32>
      %c0_14 = arith.constant 0 : index
      %c0_15 = arith.constant 0 : index
      %18 = vector.load %arg6[%c0_14, %c0_15] : memref<128x32xf32, #tpu.memory_space<vmem>>, vector<128x32xf32>
      tpu.vector_store %arg6[%c0_14, %c0_15], %17 {strides = array<i32>} : memref<128x32xf32, #tpu.memory_space<vmem>>, vector<128x32xf32>,
    } else {
    }
    return
  }
  func.func @transform_0(%arg0: i32, %arg1: i32, %arg2: i32) -> (i32, i32) {
    %c0_i32 = arith.constant 0 : i32
    return %arg0, %arg2 : i32, i32
  }
  func.func @transform_1(%arg0: i32, %arg1: i32, %arg2: i32) -> (i32, i32) {
    %c0_i32 = arith.constant 0 : i32
    return %arg2, %arg1 : i32, i32
  }
  func.func @transform_2(%arg0: i32, %arg1: i32, %arg2: i32) -> (i32, i32) {
    %c0_i32 = arith.constant 0 : i32
    %c0_i32_0 = arith.constant 0 : i32
    return %c0_i32, %arg1 : i32, i32
  }
  func.func @transform_3(%arg0: i32, %arg1: i32, %arg2: i32) -> (i32, i32) {
    %c0_i32 = arith.constant 0 : i32
    return %arg0, %arg1 : i32, i32
  }
}

module attributes {stable_mosaic.version = 11 : i64} {
  func.func @_linformer_attn_kernel(%arg0: i32, %arg1: i32, %arg2: memref<1x64x32xf32, #tpu.memory_space<vmem>>, %arg3: memref<1x16x32xf32, #tpu.memory_space<vmem>>, %arg4: memref<1x16x32xf32, #tpu.memory_space<vmem>>, %arg5: memref<1x64x32xf32, #tpu.memory_space<vmem>>) attributes {dimension_semantics = [#tpu.dimension_semantics<parallel>, #tpu.dimension_semantics<parallel>], iteration_bounds = array<i64: 2, 1>, scalar_prefetch = 0 : i64, scratch_operands = 0 : i64, tpu.core_type = #tpu.core_type<tc>, window_params = [{transform_indices = @transform_0, window_bounds = array<i64: 1, 64, 32>}, {transform_indices = @transform_1, window_bounds = array<i64: 1, 16, 32>}, {transform_indices = @transform_2, window_bounds = array<i64: 1, 16, 32>}, {transform_indices = @transform_3, window_bounds = array<i64: 1, 64, 32>}]} {
    %c0 = arith.constant 0 : index
    %c0_0 = arith.constant 0 : index
    %c0_1 = arith.constant 0 : index
    %0 = vector.load %arg2[%c0, %c0_0, %c0_1] : memref<1x64x32xf32, #tpu.memory_space<vmem>>, vector<1x64x32xf32>
    %1 = vector.shape_cast %0 : vector<1x64x32xf32> to vector<64x32xf32>
    %c0_2 = arith.constant 0 : index
    %c0_3 = arith.constant 0 : index
    %c0_4 = arith.constant 0 : index
    %2 = vector.load %arg3[%c0_2, %c0_3, %c0_4] : memref<1x16x32xf32, #tpu.memory_space<vmem>>, vector<1x16x32xf32>
    %3 = vector.shape_cast %2 : vector<1x16x32xf32> to vector<16x32xf32>
    %c0_5 = arith.constant 0 : index
    %c0_6 = arith.constant 0 : index
    %c0_7 = arith.constant 0 : index
    %4 = vector.load %arg4[%c0_5, %c0_6, %c0_7] : memref<1x16x32xf32, #tpu.memory_space<vmem>>, vector<1x16x32xf32>
    %5 = vector.shape_cast %4 : vector<1x16x32xf32> to vector<16x32xf32>
    %6 = vector.extract_strided_slice %1 {offsets = [0, 0], sizes = [64, 8], strides = [1, 1]} : vector<64x32xf32> to vector<64x8xf32>
    %7 = arith.truncf %6 : vector<64x8xf32> to vector<64x8xbf16>
    %8 = vector.extract_strided_slice %3 {offsets = [0, 0], sizes = [16, 8], strides = [1, 1]} : vector<16x32xf32> to vector<16x8xf32>
    %9 = arith.truncf %8 : vector<16x8xf32> to vector<16x8xbf16>
    %10 = vector.extract_strided_slice %5 {offsets = [0, 0], sizes = [16, 8], strides = [1, 1]} : vector<16x32xf32> to vector<16x8xf32>
    %11 = arith.truncf %10 : vector<16x8xf32> to vector<16x8xbf16>
    %cst = arith.constant dense<0.000000e+00> : vector<64x16xf32>
    %12 = tpu.matmul %7, %9, %cst {dimension_numbers = #tpu.dot_dimension_numbers<[1], [1], [0], [0], [0, 0, 1, 0], [], []>} : vector<64x8xbf16>, vector<16x8xbf16>, vector<64x16xf32> -> vector<64x16xf32>
    %cst_8 = arith.constant 0.353553385 : f32
    %13 = vector.broadcast %cst_8 : f32 to vector<64x16xf32>
    %14 = arith.mulf %12, %13 : vector<64x16xf32>
    %cst_9 = arith.constant dense<0xFF800000> : vector<64xf32>
    %15 = vector.multi_reduction <maximumf>, %14, %cst_9 [1] : vector<64x16xf32> to vector<64xf32>
    %16 = vector.shape_cast %15 : vector<64xf32> to vector<64x1xf32>
    %17 = vector.broadcast %16 : vector<64x1xf32> to vector<64x16xf32>
    %18 = arith.subf %14, %17 : vector<64x16xf32>
    %19 = math.exp %18 : vector<64x16xf32>
    %cst_10 = arith.constant dense<0.000000e+00> : vector<64xf32>
    %20 = vector.multi_reduction <add>, %19, %cst_10 [1] : vector<64x16xf32> to vector<64xf32>
    %21 = vector.shape_cast %20 : vector<64xf32> to vector<64x1xf32>
    %22 = tpu.reciprocal %21 {approx = true} : vector<64x1xf32> -> vector<64x1xf32>
    %23 = vector.broadcast %22 : vector<64x1xf32> to vector<64x16xf32>
    %24 = arith.mulf %19, %23 : vector<64x16xf32>
    %25 = arith.truncf %24 : vector<64x16xf32> to vector<64x16xbf16>
    %cst_11 = arith.constant dense<0.000000e+00> : vector<64x8xf32>
    %26 = tpu.matmul %25, %11, %cst_11 {dimension_numbers = #tpu.dot_dimension_numbers<[1], [0], [0], [1], [0, 0, 1, 1], [], []>} : vector<64x16xbf16>, vector<16x8xbf16>, vector<64x8xf32> -> vector<64x8xf32>
    %27 = vector.extract_strided_slice %1 {offsets = [0, 8], sizes = [64, 8], strides = [1, 1]} : vector<64x32xf32> to vector<64x8xf32>
    %28 = arith.truncf %27 : vector<64x8xf32> to vector<64x8xbf16>
    %29 = vector.extract_strided_slice %3 {offsets = [0, 8], sizes = [16, 8], strides = [1, 1]} : vector<16x32xf32> to vector<16x8xf32>
    %30 = arith.truncf %29 : vector<16x8xf32> to vector<16x8xbf16>
    %31 = vector.extract_strided_slice %5 {offsets = [0, 8], sizes = [16, 8], strides = [1, 1]} : vector<16x32xf32> to vector<16x8xf32>
    %32 = arith.truncf %31 : vector<16x8xf32> to vector<16x8xbf16>
    %cst_12 = arith.constant dense<0.000000e+00> : vector<64x16xf32>
    %33 = tpu.matmul %28, %30, %cst_12 {dimension_numbers = #tpu.dot_dimension_numbers<[1], [1], [0], [0], [0, 0, 1, 0], [], []>} : vector<64x8xbf16>, vector<16x8xbf16>, vector<64x16xf32> -> vector<64x16xf32>
    %cst_13 = arith.constant 0.353553385 : f32
    %34 = vector.broadcast %cst_13 : f32 to vector<64x16xf32>
    %35 = arith.mulf %33, %34 : vector<64x16xf32>
    %cst_14 = arith.constant dense<0xFF800000> : vector<64xf32>
    %36 = vector.multi_reduction <maximumf>, %35, %cst_14 [1] : vector<64x16xf32> to vector<64xf32>
    %37 = vector.shape_cast %36 : vector<64xf32> to vector<64x1xf32>
    %38 = vector.broadcast %37 : vector<64x1xf32> to vector<64x16xf32>
    %39 = arith.subf %35, %38 : vector<64x16xf32>
    %40 = math.exp %39 : vector<64x16xf32>
    %cst_15 = arith.constant dense<0.000000e+00> : vector<64xf32>
    %41 = vector.multi_reduction <add>, %40, %cst_15 [1] : vector<64x16xf32> to vector<64xf32>
    %42 = vector.shape_cast %41 : vector<64xf32> to vector<64x1xf32>
    %43 = tpu.reciprocal %42 {approx = true} : vector<64x1xf32> -> vector<64x1xf32>
    %44 = vector.broadcast %43 : vector<64x1xf32> to vector<64x16xf32>
    %45 = arith.mulf %40, %44 : vector<64x16xf32>
    %46 = arith.truncf %45 : vector<64x16xf32> to vector<64x16xbf16>
    %cst_16 = arith.constant dense<0.000000e+00> : vector<64x8xf32>
    %47 = tpu.matmul %46, %32, %cst_16 {dimension_numbers = #tpu.dot_dimension_numbers<[1], [0], [0], [1], [0, 0, 1, 1], [], []>} : vector<64x16xbf16>, vector<16x8xbf16>, vector<64x8xf32> -> vector<64x8xf32>
    %48 = vector.extract_strided_slice %1 {offsets = [0, 16], sizes = [64, 8], strides = [1, 1]} : vector<64x32xf32> to vector<64x8xf32>
    %49 = arith.truncf %48 : vector<64x8xf32> to vector<64x8xbf16>
    %50 = vector.extract_strided_slice %3 {offsets = [0, 16], sizes = [16, 8], strides = [1, 1]} : vector<16x32xf32> to vector<16x8xf32>
    %51 = arith.truncf %50 : vector<16x8xf32> to vector<16x8xbf16>
    %52 = vector.extract_strided_slice %5 {offsets = [0, 16], sizes = [16, 8], strides = [1, 1]} : vector<16x32xf32> to vector<16x8xf32>
    %53 = arith.truncf %52 : vector<16x8xf32> to vector<16x8xbf16>
    %cst_17 = arith.constant dense<0.000000e+00> : vector<64x16xf32>
    %54 = tpu.matmul %49, %51, %cst_17 {dimension_numbers = #tpu.dot_dimension_numbers<[1], [1], [0], [0], [0, 0, 1, 0], [], []>} : vector<64x8xbf16>, vector<16x8xbf16>, vector<64x16xf32> -> vector<64x16xf32>
    %cst_18 = arith.constant 0.353553385 : f32
    %55 = vector.broadcast %cst_18 : f32 to vector<64x16xf32>
    %56 = arith.mulf %54, %55 : vector<64x16xf32>
    %cst_19 = arith.constant dense<0xFF800000> : vector<64xf32>
    %57 = vector.multi_reduction <maximumf>, %56, %cst_19 [1] : vector<64x16xf32> to vector<64xf32>
    %58 = vector.shape_cast %57 : vector<64xf32> to vector<64x1xf32>
    %59 = vector.broadcast %58 : vector<64x1xf32> to vector<64x16xf32>
    %60 = arith.subf %56, %59 : vector<64x16xf32>
    %61 = math.exp %60 : vector<64x16xf32>
    %cst_20 = arith.constant dense<0.000000e+00> : vector<64xf32>
    %62 = vector.multi_reduction <add>, %61, %cst_20 [1] : vector<64x16xf32> to vector<64xf32>
    %63 = vector.shape_cast %62 : vector<64xf32> to vector<64x1xf32>
    %64 = tpu.reciprocal %63 {approx = true} : vector<64x1xf32> -> vector<64x1xf32>
    %65 = vector.broadcast %64 : vector<64x1xf32> to vector<64x16xf32>
    %66 = arith.mulf %61, %65 : vector<64x16xf32>
    %67 = arith.truncf %66 : vector<64x16xf32> to vector<64x16xbf16>
    %cst_21 = arith.constant dense<0.000000e+00> : vector<64x8xf32>
    %68 = tpu.matmul %67, %53, %cst_21 {dimension_numbers = #tpu.dot_dimension_numbers<[1], [0], [0], [1], [0, 0, 1, 1], [], []>} : vector<64x16xbf16>, vector<16x8xbf16>, vector<64x8xf32> -> vector<64x8xf32>
    %69 = vector.extract_strided_slice %1 {offsets = [0, 24], sizes = [64, 8], strides = [1, 1]} : vector<64x32xf32> to vector<64x8xf32>
    %70 = arith.truncf %69 : vector<64x8xf32> to vector<64x8xbf16>
    %71 = vector.extract_strided_slice %3 {offsets = [0, 24], sizes = [16, 8], strides = [1, 1]} : vector<16x32xf32> to vector<16x8xf32>
    %72 = arith.truncf %71 : vector<16x8xf32> to vector<16x8xbf16>
    %73 = vector.extract_strided_slice %5 {offsets = [0, 24], sizes = [16, 8], strides = [1, 1]} : vector<16x32xf32> to vector<16x8xf32>
    %74 = arith.truncf %73 : vector<16x8xf32> to vector<16x8xbf16>
    %cst_22 = arith.constant dense<0.000000e+00> : vector<64x16xf32>
    %75 = tpu.matmul %70, %72, %cst_22 {dimension_numbers = #tpu.dot_dimension_numbers<[1], [1], [0], [0], [0, 0, 1, 0], [], []>} : vector<64x8xbf16>, vector<16x8xbf16>, vector<64x16xf32> -> vector<64x16xf32>
    %cst_23 = arith.constant 0.353553385 : f32
    %76 = vector.broadcast %cst_23 : f32 to vector<64x16xf32>
    %77 = arith.mulf %75, %76 : vector<64x16xf32>
    %cst_24 = arith.constant dense<0xFF800000> : vector<64xf32>
    %78 = vector.multi_reduction <maximumf>, %77, %cst_24 [1] : vector<64x16xf32> to vector<64xf32>
    %79 = vector.shape_cast %78 : vector<64xf32> to vector<64x1xf32>
    %80 = vector.broadcast %79 : vector<64x1xf32> to vector<64x16xf32>
    %81 = arith.subf %77, %80 : vector<64x16xf32>
    %82 = math.exp %81 : vector<64x16xf32>
    %cst_25 = arith.constant dense<0.000000e+00> : vector<64xf32>
    %83 = vector.multi_reduction <add>, %82, %cst_25 [1] : vector<64x16xf32> to vector<64xf32>
    %84 = vector.shape_cast %83 : vector<64xf32> to vector<64x1xf32>
    %85 = tpu.reciprocal %84 {approx = true} : vector<64x1xf32> -> vector<64x1xf32>
    %86 = vector.broadcast %85 : vector<64x1xf32> to vector<64x16xf32>
    %87 = arith.mulf %82, %86 : vector<64x16xf32>
    %88 = arith.truncf %87 : vector<64x16xf32> to vector<64x16xbf16>
    %cst_26 = arith.constant dense<0.000000e+00> : vector<64x8xf32>
    %89 = tpu.matmul %88, %74, %cst_26 {dimension_numbers = #tpu.dot_dimension_numbers<[1], [0], [0], [1], [0, 0, 1, 1], [], []>} : vector<64x16xbf16>, vector<16x8xbf16>, vector<64x8xf32> -> vector<64x8xf32>
    %90 = tpu.concatenate %26, %47, %68, %89 in 1 : vector<64x8xf32>, vector<64x8xf32>, vector<64x8xf32>, vector<64x8xf32> -> vector<64x32xf32>
    %c0_27 = arith.constant 0 : index
    %c0_28 = arith.constant 0 : index
    %c0_29 = arith.constant 0 : index
    %91 = vector.load %arg5[%c0_27, %c0_28, %c0_29] : memref<1x64x32xf32, #tpu.memory_space<vmem>>, vector<1x64x32xf32>
    %92 = vector.shape_cast %91 : vector<1x64x32xf32> to vector<64x32xf32>
    %93 = vector.shape_cast %90 : vector<64x32xf32> to vector<1x64x32xf32>
    tpu.vector_store %arg5[%c0_27, %c0_28, %c0_29], %93 {strides = array<i32>} : memref<1x64x32xf32, #tpu.memory_space<vmem>>, vector<1x64x32xf32>,
    return
  }
  func.func @transform_0(%arg0: i32, %arg1: i32) -> (i32, i32, i32) {
    %c0_i32 = arith.constant 0 : i32
    %c0_i32_0 = arith.constant 0 : i32
    return %arg0, %arg1, %c0_i32 : i32, i32, i32
  }
  func.func @transform_1(%arg0: i32, %arg1: i32) -> (i32, i32, i32) {
    %c0_i32 = arith.constant 0 : i32
    %c0_i32_0 = arith.constant 0 : i32
    %c0_i32_1 = arith.constant 0 : i32
    return %arg0, %c0_i32, %c0_i32_0 : i32, i32, i32
  }
  func.func @transform_2(%arg0: i32, %arg1: i32) -> (i32, i32, i32) {
    %c0_i32 = arith.constant 0 : i32
    %c0_i32_0 = arith.constant 0 : i32
    %c0_i32_1 = arith.constant 0 : i32
    return %arg0, %c0_i32, %c0_i32_0 : i32, i32, i32
  }
  func.func @transform_3(%arg0: i32, %arg1: i32) -> (i32, i32, i32) {
    %c0_i32 = arith.constant 0 : i32
    %c0_i32_0 = arith.constant 0 : i32
    return %arg0, %arg1, %c0_i32 : i32, i32, i32
  }
}

module attributes {stable_mosaic.version = 11 : i64} {
  func.func @_linear_kernel(%arg0: i32, %arg1: i32, %arg2: i32, %arg3: memref<128x128xf32, #tpu.memory_space<vmem>>, %arg4: memref<128x32xf32, #tpu.memory_space<vmem>>, %arg5: memref<1x32xf32, #tpu.memory_space<vmem>>, %arg6: memref<128x32xf32, #tpu.memory_space<vmem>>, %arg7: memref<128x32xf32, #tpu.memory_space<vmem>>) attributes {dimension_semantics = [#tpu.dimension_semantics<parallel>, #tpu.dimension_semantics<parallel>, #tpu.dimension_semantics<arbitrary>], iteration_bounds = array<i64: 1, 1, 1>, scalar_prefetch = 0 : i64, scratch_operands = 1 : i64, tpu.core_type = #tpu.core_type<tc>, window_params = [{transform_indices = @transform_0, window_bounds = array<i64: 128, 128>}, {transform_indices = @transform_1, window_bounds = array<i64: 128, 32>}, {transform_indices = @transform_2, window_bounds = array<i64: 1, 32>}, {transform_indices = @transform_3, window_bounds = array<i64: 128, 32>}]} {
    %c0_i32 = arith.constant 0 : i32
    %0 = arith.cmpi eq, %arg2, %c0_i32 : i32
    %1 = arith.extui %0 : i1 to i32
    %c0_i32_0 = arith.constant 0 : i32
    %2 = arith.cmpi ne, %1, %c0_i32_0 : i32
    scf.if %2 {
      %cst_10 = arith.constant 0.000000e+00 : f32
      %14 = vector.broadcast %cst_10 : f32 to vector<128x32xf32>
      %c0_11 = arith.constant 0 : index
      %c0_12 = arith.constant 0 : index
      %15 = vector.load %arg7[%c0_11, %c0_12] : memref<128x32xf32, #tpu.memory_space<vmem>>, vector<128x32xf32>
      tpu.vector_store %arg7[%c0_11, %c0_12], %14 {strides = array<i32>} : memref<128x32xf32, #tpu.memory_space<vmem>>, vector<128x32xf32>,
    } else {
    }
    %c0 = arith.constant 0 : index
    %c0_1 = arith.constant 0 : index
    %3 = vector.load %arg7[%c0, %c0_1] : memref<128x32xf32, #tpu.memory_space<vmem>>, vector<128x32xf32>
    %c0_2 = arith.constant 0 : index
    %c0_3 = arith.constant 0 : index
    %4 = vector.load %arg3[%c0_2, %c0_3] : memref<128x128xf32, #tpu.memory_space<vmem>>, vector<128x128xf32>
    %5 = arith.truncf %4 : vector<128x128xf32> to vector<128x128xbf16>
    %c0_4 = arith.constant 0 : index
    %c0_5 = arith.constant 0 : index
    %6 = vector.load %arg4[%c0_4, %c0_5] : memref<128x32xf32, #tpu.memory_space<vmem>>, vector<128x32xf32>
    %7 = arith.truncf %6 : vector<128x32xf32> to vector<128x32xbf16>
    %cst = arith.constant dense<0.000000e+00> : vector<128x32xf32>
    %8 = tpu.matmul %5, %7, %cst {dimension_numbers = #tpu.dot_dimension_numbers<[1], [0], [0], [1], [0, 0, 1, 1], [], []>} : vector<128x128xbf16>, vector<128x32xbf16>, vector<128x32xf32> -> vector<128x32xf32>
    %9 = arith.addf %3, %8 : vector<128x32xf32>
    %c0_6 = arith.constant 0 : index
    %c0_7 = arith.constant 0 : index
    %10 = vector.load %arg7[%c0_6, %c0_7] : memref<128x32xf32, #tpu.memory_space<vmem>>, vector<128x32xf32>
    tpu.vector_store %arg7[%c0_6, %c0_7], %9 {strides = array<i32>} : memref<128x32xf32, #tpu.memory_space<vmem>>, vector<128x32xf32>,
    %c0_i32_8 = arith.constant 0 : i32
    %11 = arith.cmpi eq, %arg2, %c0_i32_8 : i32
    %12 = arith.extui %11 : i1 to i32
    %c0_i32_9 = arith.constant 0 : i32
    %13 = arith.cmpi ne, %12, %c0_i32_9 : i32
    scf.if %13 {
      %c0_10 = arith.constant 0 : index
      %c0_11 = arith.constant 0 : index
      %14 = vector.load %arg7[%c0_10, %c0_11] : memref<128x32xf32, #tpu.memory_space<vmem>>, vector<128x32xf32>
      %c0_12 = arith.constant 0 : index
      %c0_13 = arith.constant 0 : index
      %15 = vector.load %arg5[%c0_12, %c0_13] : memref<1x32xf32, #tpu.memory_space<vmem>>, vector<1x32xf32>
      %16 = vector.broadcast %15 : vector<1x32xf32> to vector<128x32xf32>
      %17 = arith.addf %14, %16 : vector<128x32xf32>
      %c0_14 = arith.constant 0 : index
      %c0_15 = arith.constant 0 : index
      %18 = vector.load %arg6[%c0_14, %c0_15] : memref<128x32xf32, #tpu.memory_space<vmem>>, vector<128x32xf32>
      tpu.vector_store %arg6[%c0_14, %c0_15], %17 {strides = array<i32>} : memref<128x32xf32, #tpu.memory_space<vmem>>, vector<128x32xf32>,
    } else {
    }
    return
  }
  func.func @transform_0(%arg0: i32, %arg1: i32, %arg2: i32) -> (i32, i32) {
    %c0_i32 = arith.constant 0 : i32
    return %arg0, %arg2 : i32, i32
  }
  func.func @transform_1(%arg0: i32, %arg1: i32, %arg2: i32) -> (i32, i32) {
    %c0_i32 = arith.constant 0 : i32
    return %arg2, %arg1 : i32, i32
  }
  func.func @transform_2(%arg0: i32, %arg1: i32, %arg2: i32) -> (i32, i32) {
    %c0_i32 = arith.constant 0 : i32
    %c0_i32_0 = arith.constant 0 : i32
    return %c0_i32, %arg1 : i32, i32
  }
  func.func @transform_3(%arg0: i32, %arg1: i32, %arg2: i32) -> (i32, i32) {
    %c0_i32 = arith.constant 0 : i32
    return %arg0, %arg1 : i32, i32
  }
}

module attributes {stable_mosaic.version = 11 : i64} {
  func.func @_linear_kernel(%arg0: i32, %arg1: i32, %arg2: i32, %arg3: memref<128x32xf32, #tpu.memory_space<vmem>>, %arg4: memref<32x128xf32, #tpu.memory_space<vmem>>, %arg5: memref<1x128xf32, #tpu.memory_space<vmem>>, %arg6: memref<128x128xf32, #tpu.memory_space<vmem>>, %arg7: memref<128x128xf32, #tpu.memory_space<vmem>>) attributes {dimension_semantics = [#tpu.dimension_semantics<parallel>, #tpu.dimension_semantics<parallel>, #tpu.dimension_semantics<arbitrary>], iteration_bounds = array<i64: 1, 1, 1>, scalar_prefetch = 0 : i64, scratch_operands = 1 : i64, tpu.core_type = #tpu.core_type<tc>, window_params = [{transform_indices = @transform_0, window_bounds = array<i64: 128, 32>}, {transform_indices = @transform_1, window_bounds = array<i64: 32, 128>}, {transform_indices = @transform_2, window_bounds = array<i64: 1, 128>}, {transform_indices = @transform_3, window_bounds = array<i64: 128, 128>}]} {
    %c0_i32 = arith.constant 0 : i32
    %0 = arith.cmpi eq, %arg2, %c0_i32 : i32
    %1 = arith.extui %0 : i1 to i32
    %c0_i32_0 = arith.constant 0 : i32
    %2 = arith.cmpi ne, %1, %c0_i32_0 : i32
    scf.if %2 {
      %cst_10 = arith.constant 0.000000e+00 : f32
      %14 = vector.broadcast %cst_10 : f32 to vector<128x128xf32>
      %c0_11 = arith.constant 0 : index
      %c0_12 = arith.constant 0 : index
      %15 = vector.load %arg7[%c0_11, %c0_12] : memref<128x128xf32, #tpu.memory_space<vmem>>, vector<128x128xf32>
      tpu.vector_store %arg7[%c0_11, %c0_12], %14 {strides = array<i32>} : memref<128x128xf32, #tpu.memory_space<vmem>>, vector<128x128xf32>,
    } else {
    }
    %c0 = arith.constant 0 : index
    %c0_1 = arith.constant 0 : index
    %3 = vector.load %arg7[%c0, %c0_1] : memref<128x128xf32, #tpu.memory_space<vmem>>, vector<128x128xf32>
    %c0_2 = arith.constant 0 : index
    %c0_3 = arith.constant 0 : index
    %4 = vector.load %arg3[%c0_2, %c0_3] : memref<128x32xf32, #tpu.memory_space<vmem>>, vector<128x32xf32>
    %5 = arith.truncf %4 : vector<128x32xf32> to vector<128x32xbf16>
    %c0_4 = arith.constant 0 : index
    %c0_5 = arith.constant 0 : index
    %6 = vector.load %arg4[%c0_4, %c0_5] : memref<32x128xf32, #tpu.memory_space<vmem>>, vector<32x128xf32>
    %7 = arith.truncf %6 : vector<32x128xf32> to vector<32x128xbf16>
    %cst = arith.constant dense<0.000000e+00> : vector<128x128xf32>
    %8 = tpu.matmul %5, %7, %cst {dimension_numbers = #tpu.dot_dimension_numbers<[1], [0], [0], [1], [0, 0, 1, 1], [], []>} : vector<128x32xbf16>, vector<32x128xbf16>, vector<128x128xf32> -> vector<128x128xf32>
    %9 = arith.addf %3, %8 : vector<128x128xf32>
    %c0_6 = arith.constant 0 : index
    %c0_7 = arith.constant 0 : index
    %10 = vector.load %arg7[%c0_6, %c0_7] : memref<128x128xf32, #tpu.memory_space<vmem>>, vector<128x128xf32>
    tpu.vector_store %arg7[%c0_6, %c0_7], %9 {strides = array<i32>} : memref<128x128xf32, #tpu.memory_space<vmem>>, vector<128x128xf32>,
    %c0_i32_8 = arith.constant 0 : i32
    %11 = arith.cmpi eq, %arg2, %c0_i32_8 : i32
    %12 = arith.extui %11 : i1 to i32
    %c0_i32_9 = arith.constant 0 : i32
    %13 = arith.cmpi ne, %12, %c0_i32_9 : i32
    scf.if %13 {
      %c0_10 = arith.constant 0 : index
      %c0_11 = arith.constant 0 : index
      %14 = vector.load %arg7[%c0_10, %c0_11] : memref<128x128xf32, #tpu.memory_space<vmem>>, vector<128x128xf32>
      %c0_12 = arith.constant 0 : index
      %c0_13 = arith.constant 0 : index
      %15 = vector.load %arg5[%c0_12, %c0_13] : memref<1x128xf32, #tpu.memory_space<vmem>>, vector<1x128xf32>
      %16 = vector.broadcast %15 : vector<1x128xf32> to vector<128x128xf32>
      %17 = arith.addf %14, %16 : vector<128x128xf32>
      %cst_14 = arith.constant 5.000000e-01 : f32
      %18 = vector.broadcast %cst_14 : f32 to vector<128x128xf32>
      %19 = arith.mulf %18, %17 : vector<128x128xf32>
      %cst_15 = arith.constant 4.471500e-02 : f32
      %20 = vector.broadcast %cst_15 : f32 to vector<128x128xf32>
      %21 = arith.mulf %20, %17 : vector<128x128xf32>
      %22 = arith.mulf %21, %17 : vector<128x128xf32>
      %23 = arith.mulf %22, %17 : vector<128x128xf32>
      %24 = arith.addf %17, %23 : vector<128x128xf32>
      %cst_16 = arith.constant 0.797884583 : f32
      %25 = vector.broadcast %cst_16 : f32 to vector<128x128xf32>
      %26 = arith.mulf %25, %24 : vector<128x128xf32>
      %27 = math.tanh %26 : vector<128x128xf32>
      %cst_17 = arith.constant 1.000000e+00 : f32
      %28 = vector.broadcast %cst_17 : f32 to vector<128x128xf32>
      %29 = arith.addf %28, %27 : vector<128x128xf32>
      %30 = arith.mulf %19, %29 : vector<128x128xf32>
      %c0_18 = arith.constant 0 : index
      %c0_19 = arith.constant 0 : index
      %31 = vector.load %arg6[%c0_18, %c0_19] : memref<128x128xf32, #tpu.memory_space<vmem>>, vector<128x128xf32>
      tpu.vector_store %arg6[%c0_18, %c0_19], %30 {strides = array<i32>} : memref<128x128xf32, #tpu.memory_space<vmem>>, vector<128x128xf32>,
    } else {
    }
    return
  }
  func.func @transform_0(%arg0: i32, %arg1: i32, %arg2: i32) -> (i32, i32) {
    %c0_i32 = arith.constant 0 : i32
    return %arg0, %arg2 : i32, i32
  }
  func.func @transform_1(%arg0: i32, %arg1: i32, %arg2: i32) -> (i32, i32) {
    %c0_i32 = arith.constant 0 : i32
    return %arg2, %arg1 : i32, i32
  }
  func.func @transform_2(%arg0: i32, %arg1: i32, %arg2: i32) -> (i32, i32) {
    %c0_i32 = arith.constant 0 : i32
    %c0_i32_0 = arith.constant 0 : i32
    return %c0_i32, %arg1 : i32, i32
  }
  func.func @transform_3(%arg0: i32, %arg1: i32, %arg2: i32) -> (i32, i32) {
    %c0_i32 = arith.constant 0 : i32
    return %arg0, %arg1 : i32, i32
  }
}

module attributes {stable_mosaic.version = 11 : i64} {
  func.func @_linear_kernel(%arg0: i32, %arg1: i32, %arg2: i32, %arg3: memref<128x32xf32, #tpu.memory_space<vmem>>, %arg4: memref<32x64xf32, #tpu.memory_space<vmem>>, %arg5: memref<1x64xf32, #tpu.memory_space<vmem>>, %arg6: memref<128x64xf32, #tpu.memory_space<vmem>>, %arg7: memref<128x64xf32, #tpu.memory_space<vmem>>) attributes {dimension_semantics = [#tpu.dimension_semantics<parallel>, #tpu.dimension_semantics<parallel>, #tpu.dimension_semantics<arbitrary>], iteration_bounds = array<i64: 1, 1, 1>, scalar_prefetch = 0 : i64, scratch_operands = 1 : i64, tpu.core_type = #tpu.core_type<tc>, window_params = [{transform_indices = @transform_0, window_bounds = array<i64: 128, 32>}, {transform_indices = @transform_1, window_bounds = array<i64: 32, 64>}, {transform_indices = @transform_2, window_bounds = array<i64: 1, 64>}, {transform_indices = @transform_3, window_bounds = array<i64: 128, 64>}]} {
    %c0_i32 = arith.constant 0 : i32
    %0 = arith.cmpi eq, %arg2, %c0_i32 : i32
    %1 = arith.extui %0 : i1 to i32
    %c0_i32_0 = arith.constant 0 : i32
    %2 = arith.cmpi ne, %1, %c0_i32_0 : i32
    scf.if %2 {
      %cst_10 = arith.constant 0.000000e+00 : f32
      %14 = vector.broadcast %cst_10 : f32 to vector<128x64xf32>
      %c0_11 = arith.constant 0 : index
      %c0_12 = arith.constant 0 : index
      %15 = vector.load %arg7[%c0_11, %c0_12] : memref<128x64xf32, #tpu.memory_space<vmem>>, vector<128x64xf32>
      tpu.vector_store %arg7[%c0_11, %c0_12], %14 {strides = array<i32>} : memref<128x64xf32, #tpu.memory_space<vmem>>, vector<128x64xf32>,
    } else {
    }
    %c0 = arith.constant 0 : index
    %c0_1 = arith.constant 0 : index
    %3 = vector.load %arg7[%c0, %c0_1] : memref<128x64xf32, #tpu.memory_space<vmem>>, vector<128x64xf32>
    %c0_2 = arith.constant 0 : index
    %c0_3 = arith.constant 0 : index
    %4 = vector.load %arg3[%c0_2, %c0_3] : memref<128x32xf32, #tpu.memory_space<vmem>>, vector<128x32xf32>
    %5 = arith.truncf %4 : vector<128x32xf32> to vector<128x32xbf16>
    %c0_4 = arith.constant 0 : index
    %c0_5 = arith.constant 0 : index
    %6 = vector.load %arg4[%c0_4, %c0_5] : memref<32x64xf32, #tpu.memory_space<vmem>>, vector<32x64xf32>
    %7 = arith.truncf %6 : vector<32x64xf32> to vector<32x64xbf16>
    %cst = arith.constant dense<0.000000e+00> : vector<128x64xf32>
    %8 = tpu.matmul %5, %7, %cst {dimension_numbers = #tpu.dot_dimension_numbers<[1], [0], [0], [1], [0, 0, 1, 1], [], []>} : vector<128x32xbf16>, vector<32x64xbf16>, vector<128x64xf32> -> vector<128x64xf32>
    %9 = arith.addf %3, %8 : vector<128x64xf32>
    %c0_6 = arith.constant 0 : index
    %c0_7 = arith.constant 0 : index
    %10 = vector.load %arg7[%c0_6, %c0_7] : memref<128x64xf32, #tpu.memory_space<vmem>>, vector<128x64xf32>
    tpu.vector_store %arg7[%c0_6, %c0_7], %9 {strides = array<i32>} : memref<128x64xf32, #tpu.memory_space<vmem>>, vector<128x64xf32>,
    %c0_i32_8 = arith.constant 0 : i32
    %11 = arith.cmpi eq, %arg2, %c0_i32_8 : i32
    %12 = arith.extui %11 : i1 to i32
    %c0_i32_9 = arith.constant 0 : i32
    %13 = arith.cmpi ne, %12, %c0_i32_9 : i32
    scf.if %13 {
      %c0_10 = arith.constant 0 : index
      %c0_11 = arith.constant 0 : index
      %14 = vector.load %arg7[%c0_10, %c0_11] : memref<128x64xf32, #tpu.memory_space<vmem>>, vector<128x64xf32>
      %c0_12 = arith.constant 0 : index
      %c0_13 = arith.constant 0 : index
      %15 = vector.load %arg5[%c0_12, %c0_13] : memref<1x64xf32, #tpu.memory_space<vmem>>, vector<1x64xf32>
      %16 = vector.broadcast %15 : vector<1x64xf32> to vector<128x64xf32>
      %17 = arith.addf %14, %16 : vector<128x64xf32>
      %c0_14 = arith.constant 0 : index
      %c0_15 = arith.constant 0 : index
      %18 = vector.load %arg6[%c0_14, %c0_15] : memref<128x64xf32, #tpu.memory_space<vmem>>, vector<128x64xf32>
      tpu.vector_store %arg6[%c0_14, %c0_15], %17 {strides = array<i32>} : memref<128x64xf32, #tpu.memory_space<vmem>>, vector<128x64xf32>,
    } else {
    }
    return
  }
  func.func @transform_0(%arg0: i32, %arg1: i32, %arg2: i32) -> (i32, i32) {
    %c0_i32 = arith.constant 0 : i32
    return %arg0, %arg2 : i32, i32
  }
  func.func @transform_1(%arg0: i32, %arg1: i32, %arg2: i32) -> (i32, i32) {
    %c0_i32 = arith.constant 0 : i32
    return %arg2, %arg1 : i32, i32
  }
  func.func @transform_2(%arg0: i32, %arg1: i32, %arg2: i32) -> (i32, i32) {
    %c0_i32 = arith.constant 0 : i32
    %c0_i32_0 = arith.constant 0 : i32
    return %c0_i32, %arg1 : i32, i32
  }
  func.func @transform_3(%arg0: i32, %arg1: i32, %arg2: i32) -> (i32, i32) {
    %c0_i32 = arith.constant 0 : i32
    return %arg0, %arg1 : i32, i32
  }
}

</mosaic_0001>

<bundles_post_ra>
// kernel: linformer_lm_forward.27
= control target key start
LH: loop header
LB: loop body
LE: loop exit
PB: predicated region body
PF: predicated region fallthrough
CT: control target
= control target key end

     0   :  { %s329_s9 = smov 0   ;;  %s356_s0 = inlined_call_operand.vmem [shape: f32[16,64], index: 0, kind: input, shape index: {}]   ;;  %s357_s1 = inlined_call_operand.vmem [shape: f32[2,64,32], index: 1, kind: input, shape index: {}]   ;;  %s358_s2 = inlined_call_operand.vmem [shape: f32[2,16,32], index: 2, kind: output, shape index: {}]  }
   0x1 LB: > { %s263_s10 = sadd.s32 4294967295, %s310_s9   ;;  %p267_p0 = scmp.ge.s32.totalorder %s310_s9, 1  ;;  %s310_s9 = sphi %s329_s9, %s12_s9  }
   0x2   : > { %p112_p1 = scmp.lt.s32.totalorder %s310_s9, 3 }
   0x4   : > { %p113_p2 = pnand %p267_p0, %p112_p1 }
   0x5   : > { %p134_p3 = scmp.lt.s32.totalorder (!%p113_p2), %s263_s10, 1  ;;  %v312_v0 = vmov (!%p113_p2), 0.0   ;;  %vm313_vm0 = vmmov (!%p113_p2), 0   ;;  %v145_v13 = vld [vmem:[%s356_s0] sm:$0xff] (!%p113_p2)  ;;  %v146_v14 = vld [vmem:[%s356_s0 + $0x8] sm:$0xff] (!%p113_p2)  ;;  %vm160_vm1 = vcmask (!%p113_p2), 523264  }
   0x6   : > { %116 = sbr.rel (%p113_p2) target bundleno = 249 (0xf9), region = 28  ;;  %282 = vmatprep.subr.bf16.mxu0 (!%p113_p2), %v312_v0  ;;  %290 = vmatprep.mubr.msk.bf16.mxu0 (!%p113_p2), %vm313_vm0, %v312_v0  ;;  %v147_v15 = vpack.c.bf16 (!%p113_p2), %v146_v14, %v145_v13  ;;  %vm205_vm2 = vcmask (!%p113_p2), 261120  }
   0xd   : > { %s360_s10 = smov (!%p134_p3, %s263_s10), 1 }
   0xe   : > { %s275_s11 = sshll.u32 %s360_s10, 6  ;;  %s276_s19 = sshll.u32 %s360_s10, 4 }
   0xf   : > { %s138_s14 = scalar_lea.vmem %s357_s1, %s275_s11  ;;  %s143_s22 = scalar_lea.vmem %s358_s2, %s276_s19 }
  0x10   : > { %v148_v1 = vld [vmem:[%s138_s14] sm:$0xff]  ;;  %v149_v2 = vld [vmem:[%s138_s14 + $0x8] sm:$0xff]  ;;  %v150_v3 = vld [vmem:[%s138_s14 + $0x10] sm:$0xff] }
  0x11   : > { %v156_v4 = vpack.c.bf16 %v149_v2, %v148_v1  ;;  %v151_v5 = vld [vmem:[%s138_s14 + $0x18] sm:$0xff]  ;;  %v152_v7 = vld [vmem:[%s138_s14 + $0x20] sm:$0xff]  ;;  %v153_v8 = vld [vmem:[%s138_s14 + $0x28] sm:$0xff] }
  0x12   : > { %v157_v6 = vpack.c.bf16 %v151_v5, %v150_v3  ;;  %v158_v9 = vpack.c.bf16 %v153_v8, %v152_v7  ;;  %v154_v10 = vld [vmem:[%s138_s14 + $0x30] sm:$0xff]  ;;  %v155_v11 = vld [vmem:[%s138_s14 + $0x38] sm:$0xff] }
  0x13   : > { %283 = vmatpush3.bf16.msra.mxu0 %v156_v4  ;;  %v159_v12 = vpack.c.bf16 %v155_v11, %v154_v10 }
  0x14   : > { %284 = vmatprep.subr.bf16.mxu0 %v312_v0 }
  0x17   : > { %285 = vmatpush3.bf16.msra.mxu0 %v157_v6 }
  0x18   : > { %286 = vmatprep.subr.bf16.mxu0 %v312_v0 }
  0x1b   : > { %287 = vmatpush3.bf16.msra.mxu0 %v158_v9 }
  0x1c   : > { %288 = vmatprep.subr.bf16.mxu0 %v312_v0 }
  0x1f   : > { %289 = vmatpush3.bf16.msra.mxu0 %v159_v12 }
  0x22   : > { %291 = vmatmul.mubr.msk.bf16.vlgmr.msra.gmra.mrb[0].mxu0 %vm160_vm1, %v147_v15 }
  0xf5   : > { %v198_v16 = vpop.f32.mrb[0].mxu0 }
  0xf6   : > { %206 = vst.msk [vmem:[%s143_s22] sm:$0xff] %vm205_vm2, %v198_v16  ;;  %v292_v17 = vpop.f32.mrb[1].mxu0 }
  0xf7   : > { %v201_v18 = vpop.f32.mrb[2].mxu0 }
  0xf8   : > { %207 = vst.msk [vmem:[%s143_s22 + $0x8] sm:$0xff] %vm205_vm2, %v201_v18  ;;  %v293_v19 = vpop.f32.mrb[3].mxu0 }
  0xf9 PF: > { %s12_s9 = sadd.s32 1, %s310_s9  }
  0xfa   : > { %p9_p4 = scmp.ge.s32.totalorder %s12_s9, 4  }
  0xfc   :  { %11 = sbr.rel (!%p9_p4) target bundleno = 1 (0x1), region = 58 }

// kernel: linformer_lm_forward.25
= control target key start
LH: loop header
LB: loop body
LE: loop exit
PB: predicated region body
PF: predicated region fallthrough
CT: control target
= control target key end

     0   :  { %vm19_vm0 = vcmask 261120   ;;  %v342_v3 = vmov 0.0   ;;  %s548_s1 = inlined_call_operand.vmem [shape: f32[32,32], index: 1, kind: input, shape index: {}]   ;;  %s549_s0 = inlined_call_operand.vmem [shape: f32[128,32], index: 0, kind: input, shape index: {}]   ;;  %s550_s2 = inlined_call_operand.vmem [shape: f32[1,32], index: 2, kind: input, shape index: {}]   ;;  %s551_s3 = inlined_call_operand.vmem [shape: f32[128,32], index: 3, kind: output, shape index: {}]  }
   0x1   :  { %v76_v0 = vld [vmem:[%s548_s1] sm:$0xff]  ;;  %v77_v1 = vld [vmem:[%s548_s1 + $0x8] sm:$0xff]  ;;  %v78_v2 = vld [vmem:[%s548_s1 + $0x10] sm:$0xff]  ;;  %22 = vst.msk [vmem:[#allocation2 + $0x10] sm:$0xff] %vm19_vm0, %v342_v3 }
   0x2   :  { %20 = vst.msk [vmem:[#allocation2] sm:$0xff] %vm19_vm0, %v342_v3  ;;  %21 = vst.msk [vmem:[#allocation2 + $0x8] sm:$0xff] %vm19_vm0, %v342_v3  ;;  %v80_v4 = vpack.c.bf16 %v77_v1, %v76_v0  ;;  %v79_v5 = vld [vmem:[%s548_s1 + $0x18] sm:$0xff]  ;;  %v52_v6 = vld [vmem:[%s549_s0] sm:$0xff] }
   0x3   :  { %23 = vst.msk [vmem:[#allocation2 + $0x18] sm:$0xff] %vm19_vm0, %v342_v3  ;;  %24 = vst.msk [vmem:[#allocation2 + $0x20] sm:$0xff] %vm19_vm0, %v342_v3  ;;  %v53_v7 = vld [vmem:[%s549_s0 + $0x8] sm:$0xff]  ;;  %v81_v8 = vpack.c.bf16 %v79_v5, %v78_v2  ;;  %v60_v10 = vld [vmem:[%s549_s0 + $0x40] sm:$0xff] }
   0x4   :  { %25 = vst.msk [vmem:[#allocation2 + $0x28] sm:$0xff] %vm19_vm0, %v342_v3  ;;  %26 = vst.msk [vmem:[#allocation2 + $0x30] sm:$0xff] %vm19_vm0, %v342_v3  ;;  %v68_v9 = vpack.c.bf16 %v53_v7, %v52_v6  ;;  %v61_v11 = vld [vmem:[%s549_s0 + $0x48] sm:$0xff]  ;;  %317 = vmatprep.subr.bf16.mxu0 %v80_v4  ;;  %337 = vmatprep.subr.bf16.mxu1 %v80_v4  ;;  %v54_v13 = vld [vmem:[%s549_s0 + $0x10] sm:$0xff] }
   0x5   :  { %27 = vst.msk [vmem:[#allocation2 + $0x38] sm:$0xff] %vm19_vm0, %v342_v3  ;;  %28 = vst.msk [vmem:[#allocation2 + $0x40] sm:$0xff] %vm19_vm0, %v342_v3  ;;  %v72_v12 = vpack.c.bf16 %v61_v11, %v60_v10  ;;  %v55_v14 = vld [vmem:[%s549_s0 + $0x18] sm:$0xff]  ;;  %318 = vmatpush3.bf16.msra.mxu0 %v80_v4  ;;  %339 = vmatpush3.bf16.msra.mxu1 %v80_v4  ;;  %v62_v15 = vld [vmem:[%s549_s0 + $0x50] sm:$0xff] }
   0x6   :  { %29 = vst.msk [vmem:[#allocation2 + $0x48] sm:$0xff] %vm19_vm0, %v342_v3  ;;  %30 = vst.msk [vmem:[#allocation2 + $0x50] sm:$0xff] %vm19_vm0, %v342_v3  ;;  %v63_v16 = vld [vmem:[%s549_s0 + $0x58] sm:$0xff]  ;;  %v56_v17 = vld [vmem:[%s549_s0 + $0x20] sm:$0xff]  ;;  %319 = vmatprep.subr.bf16.mxu0 %v81_v8  ;;  %338 = vmatprep.subr.bf16.mxu1 %v81_v8  ;;  %v69_v21 = vpack.c.bf16 %v55_v14, %v54_v13 }
   0x7   :  { %31 = vst.msk [vmem:[#allocation2 + $0x58] sm:$0xff] %vm19_vm0, %v342_v3  ;;  %32 = vst.msk [vmem:[#allocation2 + $0x60] sm:$0xff] %vm19_vm0, %v342_v3  ;;  %v57_v18 = vld [vmem:[%s549_s0 + $0x28] sm:$0xff]  ;;  %v64_v19 = vld [vmem:[%s549_s0 + $0x60] sm:$0xff]  ;;  %321 = vmatprep.mubr.msk.bf16.mxu0 %vm19_vm0, %v68_v9  ;;  %329 = vmatprep.mubr.msk.bf16.mxu1 %vm19_vm0, %v72_v12  ;;  %v73_v22 = vpack.c.bf16 %v63_v16, %v62_v15 }
   0x8   :  { %33 = vst.msk [vmem:[#allocation2 + $0x68] sm:$0xff] %vm19_vm0, %v342_v3  ;;  %34 = vst.msk [vmem:[#allocation2 + $0x70] sm:$0xff] %vm19_vm0, %v342_v3  ;;  %v65_v20 = vld [vmem:[%s549_s0 + $0x68] sm:$0xff]  ;;  %v70_v23 = vpack.c.bf16 %v57_v18, %v56_v17  ;;  %v58_v25 = vld [vmem:[%s549_s0 + $0x30] sm:$0xff] }
   0x9   :  { %35 = vst.msk [vmem:[#allocation2 + $0x78] sm:$0xff] %vm19_vm0, %v342_v3  ;;  %320 = vmatpush3.bf16.msra.mxu0 %v81_v8  ;;  %340 = vmatpush3.bf16.msra.mxu1 %v81_v8  ;;  %v74_v24 = vpack.c.bf16 %v65_v20, %v64_v19  ;;  %v59_v26 = vld [vmem:[%s549_s0 + $0x38] sm:$0xff]  ;;  %v66_v27 = vld [vmem:[%s549_s0 + $0x70] sm:$0xff]  ;;  %v36_v33 = vld [vmem:[#allocation2] sm:$0xff] }
   0xa   :  { %v67_v28 = vld [vmem:[%s549_s0 + $0x78] sm:$0xff]  ;;  %v71_v29 = vpack.c.bf16 %v59_v26, %v58_v25  ;;  %v38_v31 = vld [vmem:[#allocation2 + $0x10] sm:$0xff]  ;;  %v37_v43 = vld [vmem:[#allocation2 + $0x8] sm:$0xff] }
   0xb   :  { %v75_v30 = vpack.c.bf16 %v67_v28, %v66_v27  ;;  %v39_v37 = vld [vmem:[#allocation2 + $0x18] sm:$0xff]  ;;  %v42_v55 = vld [vmem:[#allocation2 + $0x30] sm:$0xff]  ;;  %v40_v57 = vld [vmem:[#allocation2 + $0x20] sm:$0xff] }
   0xc   :  { %322 = vmatmul.mubr.msk.bf16.vlgmr.msra.gmra.mrb[0].mxu0 %vm19_vm0, %v69_v21  ;;  %330 = vmatmul.mubr.msk.bf16.vlgmr.msra.gmra.mrb[0].mxu1 %vm19_vm0, %v73_v22  ;;  %v44_v34 = vld [vmem:[#allocation2 + $0x40] sm:$0xff]  ;;  %v43_v62 = vld [vmem:[#allocation2 + $0x38] sm:$0xff]  ;;  %v41_v4 = vld [vmem:[#allocation2 + $0x28] sm:$0xff] }
   0xd   :  { %325 = vmatprep.mubr.msk.bf16.mxu0 %vm19_vm0, %v70_v23  ;;  %333 = vmatprep.mubr.msk.bf16.mxu1 %vm19_vm0, %v74_v24  ;;  %v46_v32 = vld [vmem:[#allocation2 + $0x50] sm:$0xff]  ;;  %v45_v44 = vld [vmem:[#allocation2 + $0x48] sm:$0xff]  ;;  %v458_v59 = vld [vmem:[%s550_s2] ss:$0 sm:$0xff] }
   0xe   :  { %v47_v38 = vld [vmem:[#allocation2 + $0x58] sm:$0xff]  ;;  %v48_v58 = vld [vmem:[#allocation2 + $0x60] sm:$0xff] }
   0xf   :  { %v50_v56 = vld [vmem:[#allocation2 + $0x70] sm:$0xff]  ;;  %v49_v5 = vld [vmem:[#allocation2 + $0x68] sm:$0xff] }
  0x10   :  { %v51_v63 = vld [vmem:[#allocation2 + $0x78] sm:$0xff] }
  0x14   :  { %326 = vmatmul.mubr.msk.bf16.gmra.mrb[4].mxu0 %vm19_vm0, %v71_v29  ;;  %334 = vmatmul.mubr.msk.bf16.gmra.mrb[4].mxu1 %vm19_vm0, %v75_v30 }
  0xdf   :  { %v323_v35 = vpop.f32.mrb[0].mxu0  ;;  %v331_v36 = vpop.f32.mrb[0].mxu1 }
  0xe0   :  { %v206_v39 = vadd.f32 %v323_v35, %v38_v31  ;;  %v214_v40 = vadd.f32 %v331_v36, %v46_v32  ;;  %v141_v41 = vpop.f32.mrb[1].mxu0  ;;  %v173_v42 = vpop.f32.mrb[1].mxu1 }
  0xe1   :  { %v204_v45 = vadd.f32 %v141_v41, %v36_v33  ;;  %v212_v46 = vadd.f32 %v173_v42, %v44_v34  ;;  %v324_v47 = vpop.f32.mrb[2].mxu0  ;;  %v332_v48 = vpop.f32.mrb[2].mxu1 }
  0xe2   :  { %222 = vst.msk [vmem:[#allocation2 + $0x10] sm:$0xff] %vm19_vm0, %v206_v39  ;;  %230 = vst.msk [vmem:[#allocation2 + $0x50] sm:$0xff] %vm19_vm0, %v214_v40  ;;  %v207_v49 = vadd.f32 %v324_v47, %v39_v37  ;;  %v215_v50 = vadd.f32 %v332_v48, %v47_v38  ;;  %v144_v51 = vpop.f32.mrb[3].mxu0  ;;  %v176_v52 = vpop.f32.mrb[3].mxu1 }
  0xe3   :  { %220 = vst.msk [vmem:[#allocation2] sm:$0xff] %vm19_vm0, %v204_v45  ;;  %228 = vst.msk [vmem:[#allocation2 + $0x40] sm:$0xff] %vm19_vm0, %v212_v46  ;;  %v205_v53 = vadd.f32 %v144_v51, %v37_v43  ;;  %v213_v54 = vadd.f32 %v176_v52, %v45_v44 }
  0xe4   :  { %223 = vst.msk [vmem:[#allocation2 + $0x18] sm:$0xff] %vm19_vm0, %v207_v49  ;;  %231 = vst.msk [vmem:[#allocation2 + $0x58] sm:$0xff] %vm19_vm0, %v215_v50 }
  0xe5   :  { %221 = vst.msk [vmem:[#allocation2 + $0x8] sm:$0xff] %vm19_vm0, %v205_v53  ;;  %229 = vst.msk [vmem:[#allocation2 + $0x48] sm:$0xff] %vm19_vm0, %v213_v54 }
  0xe7   :  { %v327_v60 = vpop.f32.mrb[4].mxu0  ;;  %v335_v61 = vpop.f32.mrb[4].mxu1 }
  0xe8   :  { %v210_v0 = vadd.f32 %v327_v60, %v42_v55  ;;  %v218_v1 = vadd.f32 %v335_v61, %v50_v56  ;;  %v157_v2 = vpop.f32.mrb[5].mxu0  ;;  %v189_v3 = vpop.f32.mrb[5].mxu1 }
  0xe9   :  { %v241_v6 = vld [vmem:[#allocation2 + $0x10] sm:$0xff]  ;;  %v208_v8 = vadd.f32 %v157_v2, %v40_v57  ;;  %v216_v9 = vadd.f32 %v189_v3, %v48_v58  ;;  %v328_v10 = vpop.f32.mrb[6].mxu0  ;;  %v336_v11 = vpop.f32.mrb[6].mxu1 }
  0xea   :  { %v249_v7 = vld [vmem:[#allocation2 + $0x50] sm:$0xff]  ;;  %v264_v12 = vadd.f32 %v458_v59, %v241_v6  ;;  %v239_v14 = vld [vmem:[#allocation2] sm:$0xff]  ;;  %226 = vst.msk [vmem:[#allocation2 + $0x30] sm:$0xff] %vm19_vm0, %v210_v0  ;;  %234 = vst.msk [vmem:[#allocation2 + $0x70] sm:$0xff] %vm19_vm0, %v218_v1  ;;  %v211_v16 = vadd.f32 %v328_v10, %v43_v62  ;;  %v219_v17 = vadd.f32 %v336_v11, %v51_v63  ;;  %v160_v18 = vpop.f32.mrb[7].mxu0  ;;  %v192_v19 = vpop.f32.mrb[7].mxu1 }
  0xeb   :  { %v272_v13 = vadd.f32 %v458_v59, %v249_v7  ;;  %v247_v15 = vld [vmem:[#allocation2 + $0x40] sm:$0xff]  ;;  %v262_v20 = vadd.f32 %v458_v59, %v239_v14  ;;  %v242_v22 = vld [vmem:[#allocation2 + $0x18] sm:$0xff]  ;;  %224 = vst.msk [vmem:[#allocation2 + $0x20] sm:$0xff] %vm19_vm0, %v208_v8  ;;  %232 = vst.msk [vmem:[#allocation2 + $0x60] sm:$0xff] %vm19_vm0, %v216_v9  ;;  %v209_v24 = vadd.f32 %v160_v18, %v41_v4 }
  0xec   :  { %v270_v21 = vadd.f32 %v458_v59, %v247_v15  ;;  %v250_v23 = vld [vmem:[#allocation2 + $0x58] sm:$0xff]  ;;  %v217_v25 = vadd.f32 %v192_v19, %v49_v5  ;;  %280 = vst.msk [vmem:[%s551_s3 + $0x10] sm:$0xff] %vm19_vm0, %v264_v12  ;;  %v265_v26 = vadd.f32 %v458_v59, %v242_v22  ;;  %v240_v28 = vld [vmem:[#allocation2 + $0x8] sm:$0xff]  ;;  %227 = vst.msk [vmem:[#allocation2 + $0x38] sm:$0xff] %vm19_vm0, %v211_v16 }
  0xed   :  { %288 = vst.msk [vmem:[%s551_s3 + $0x50] sm:$0xff] %vm19_vm0, %v272_v13  ;;  %v273_v27 = vadd.f32 %v458_v59, %v250_v23  ;;  %v248_v29 = vld [vmem:[#allocation2 + $0x48] sm:$0xff]  ;;  %235 = vst.msk [vmem:[#allocation2 + $0x78] sm:$0xff] %vm19_vm0, %v219_v17  ;;  %v263_v30 = vadd.f32 %v458_v59, %v240_v28 }
  0xee   :  { %278 = vst.msk [vmem:[%s551_s3] sm:$0xff] %vm19_vm0, %v262_v20  ;;  %286 = vst.msk [vmem:[%s551_s3 + $0x40] sm:$0xff] %vm19_vm0, %v270_v21  ;;  %v271_v31 = vadd.f32 %v458_v59, %v248_v29 }
  0xef   :  { %225 = vst.msk [vmem:[#allocation2 + $0x28] sm:$0xff] %vm19_vm0, %v209_v24  ;;  %233 = vst.msk [vmem:[#allocation2 + $0x68] sm:$0xff] %vm19_vm0, %v217_v25 }
  0xf0   :  { %281 = vst.msk [vmem:[%s551_s3 + $0x18] sm:$0xff] %vm19_vm0, %v265_v26  ;;  %289 = vst.msk [vmem:[%s551_s3 + $0x58] sm:$0xff] %vm19_vm0, %v273_v27 }
  0xf1   :  { %279 = vst.msk [vmem:[%s551_s3 + $0x8] sm:$0xff] %vm19_vm0, %v263_v30  ;;  %287 = vst.msk [vmem:[%s551_s3 + $0x48] sm:$0xff] %vm19_vm0, %v271_v31  ;;  %v245_v32 = vld [vmem:[#allocation2 + $0x30] sm:$0xff] }
  0xf2   :  { %v253_v33 = vld [vmem:[#allocation2 + $0x70] sm:$0xff]  ;;  %v268_v34 = vadd.f32 %v458_v59, %v245_v32  ;;  %v243_v36 = vld [vmem:[#allocation2 + $0x20] sm:$0xff] }
  0xf3   :  { %v276_v35 = vadd.f32 %v458_v59, %v253_v33  ;;  %v251_v37 = vld [vmem:[#allocation2 + $0x60] sm:$0xff]  ;;  %v266_v38 = vadd.f32 %v458_v59, %v243_v36  ;;  %v246_v40 = vld [vmem:[#allocation2 + $0x38] sm:$0xff] }
  0xf4   :  { %v274_v39 = vadd.f32 %v458_v59, %v251_v37  ;;  %v254_v41 = vld [vmem:[#allocation2 + $0x78] sm:$0xff]  ;;  %284 = vst.msk [vmem:[%s551_s3 + $0x30] sm:$0xff] %vm19_vm0, %v268_v34  ;;  %v269_v42 = vadd.f32 %v458_v59, %v246_v40 }
  0xf5   :  { %292 = vst.msk [vmem:[%s551_s3 + $0x70] sm:$0xff] %vm19_vm0, %v276_v35  ;;  %v277_v43 = vadd.f32 %v458_v59, %v254_v41  ;;  %282 = vst.msk [vmem:[%s551_s3 + $0x20] sm:$0xff] %vm19_vm0, %v266_v38 }
  0xf6   :  { %v244_v44 = vld [vmem:[#allocation2 + $0x28] sm:$0xff]  ;;  %290 = vst.msk [vmem:[%s551_s3 + $0x60] sm:$0xff] %vm19_vm0, %v274_v39  ;;  %285 = vst.msk [vmem:[%s551_s3 + $0x38] sm:$0xff] %vm19_vm0, %v269_v42 }
  0xf7   :  { %v252_v45 = vld [vmem:[#allocation2 + $0x68] sm:$0xff]  ;;  %v267_v46 = vadd.f32 %v458_v59, %v244_v44  ;;  %293 = vst.msk [vmem:[%s551_s3 + $0x78] sm:$0xff] %vm19_vm0, %v277_v43 }
  0xf8   :  { %v275_v47 = vadd.f32 %v458_v59, %v252_v45 }
  0xf9   :  { %283 = vst.msk [vmem:[%s551_s3 + $0x28] sm:$0xff] %vm19_vm0, %v267_v46 }
  0xfa   :  { %291 = vst.msk [vmem:[%s551_s3 + $0x68] sm:$0xff] %vm19_vm0, %v275_v47 }

// kernel: linformer_lm_forward.23
= control target key start
LH: loop header
LB: loop body
LE: loop exit
PB: predicated region body
PF: predicated region fallthrough
CT: control target
= control target key end

     0   :  { %vm30_vm0 = vcmask 261120   ;;  %s666_s0 = inlined_call_operand.vmem [shape: f32[128,32], index: 0, kind: input, shape index: {}]   ;;  %s667_s1 = inlined_call_operand.vmem [shape: f32[1,32], index: 1, kind: input, shape index: {}]   ;;  %s668_s2 = inlined_call_operand.vmem [shape: f32[1,32], index: 2, kind: input, shape index: {}]   ;;  %s669_s3 = inlined_call_operand.vmem [shape: f32[128,32], index: 3, kind: output, shape index: {}]  }
   0x1   :  { %v14_v0 = vld [vmem:[%s666_s0] sm:$0xff]  ;;  %v16_v1 = vld [vmem:[%s666_s0 + $0x10] sm:$0xff]  ;;  %v15_v2 = vld [vmem:[%s666_s0 + $0x8] sm:$0xff] }
   0x2   :  { %v31_v3 = vsel %vm30_vm0, %v14_v0, 0.0  ;;  %v37_v4 = vsel %vm30_vm0, %v16_v1, 0.0  ;;  %v17_v5 = vld [vmem:[%s666_s0 + $0x18] sm:$0xff]  ;;  %v34_v6 = vsel %vm30_vm0, %v15_v2, 0.0  ;;  %v18_v8 = vld [vmem:[%s666_s0 + $0x20] sm:$0xff]  ;;  %v19_v9 = vld [vmem:[%s666_s0 + $0x28] sm:$0xff] }
   0x3   :  { %32 = vadd.xlane.f32.xlu0 %v31_v3  ;;  %38 = vadd.xlane.f32.xlu1 %v37_v4  ;;  %v40_v7 = vsel %vm30_vm0, %v17_v5, 0.0  ;;  %v43_v10 = vsel %vm30_vm0, %v18_v8, 0.0  ;;  %v46_v11 = vsel %vm30_vm0, %v19_v9, 0.0  ;;  %v387_v12 = vld [vmem:[%s666_s0 + $0x30] sm:$0xff]  ;;  %v392_v13 = vld [vmem:[%s666_s0 + $0x38] sm:$0xff]  ;;  %v401_v16 = vld [vmem:[%s666_s0 + $0x40] sm:$0xff] }
   0x4   :  { %v49_v14 = vsel %vm30_vm0, %v387_v12, 0.0  ;;  %v52_v15 = vsel %vm30_vm0, %v392_v13, 0.0  ;;  %v406_v17 = vld [vmem:[%s666_s0 + $0x48] sm:$0xff]  ;;  %v55_v18 = vsel %vm30_vm0, %v401_v16, 0.0  ;;  %v415_v20 = vld [vmem:[%s666_s0 + $0x50] sm:$0xff]  ;;  %v420_v21 = vld [vmem:[%s666_s0 + $0x58] sm:$0xff] }
   0x5   :  { %v58_v19 = vsel %vm30_vm0, %v406_v17, 0.0  ;;  %v61_v22 = vsel %vm30_vm0, %v415_v20, 0.0  ;;  %v64_v23 = vsel %vm30_vm0, %v420_v21, 0.0  ;;  %v429_v24 = vld [vmem:[%s666_s0 + $0x60] sm:$0xff]  ;;  %v434_v25 = vld [vmem:[%s666_s0 + $0x68] sm:$0xff]  ;;  %v443_v28 = vld [vmem:[%s666_s0 + $0x70] sm:$0xff] }
   0x6   :  { %v67_v26 = vsel %vm30_vm0, %v429_v24, 0.0  ;;  %v70_v27 = vsel %vm30_vm0, %v434_v25, 0.0  ;;  %v448_v29 = vld [vmem:[%s666_s0 + $0x78] sm:$0xff]  ;;  %v73_v30 = vsel %vm30_vm0, %v443_v28, 0.0 }
   0x7   :  { %35 = vadd.xlane.f32.xlu0 %v34_v6  ;;  %41 = vadd.xlane.f32.xlu1 %v40_v7  ;;  %v76_v31 = vsel %vm30_vm0, %v448_v29, 0.0 }
   0xb   :  { %44 = vadd.xlane.f32.xlu0 %v43_v10  ;;  %47 = vadd.xlane.f32.xlu1 %v46_v11 }
   0xf   :  { %50 = vadd.xlane.f32.xlu0 %v49_v14  ;;  %53 = vadd.xlane.f32.xlu1 %v52_v15 }
  0x13   :  { %56 = vadd.xlane.f32.xlu0 %v55_v18  ;;  %59 = vadd.xlane.f32.xlu1 %v58_v19 }
  0x17   :  { %62 = vadd.xlane.f32.xlu0 %v61_v22  ;;  %65 = vadd.xlane.f32.xlu1 %v64_v23 }
  0x1b   :  { %68 = vadd.xlane.f32.xlu0 %v67_v26  ;;  %71 = vadd.xlane.f32.xlu1 %v70_v27 }
  0x1f   :  { %74 = vadd.xlane.f32.xlu0 %v73_v30  ;;  %77 = vadd.xlane.f32.xlu1 %v76_v31 }
  0x90   :  { %v33_v32 = vpop.xlane.xlu0 %32  ;;  %v39_v33 = vpop.xlane.xlu1 %38 }
  0x91   :  { %v80_v34 = vmul.f32 0.03125, %v33_v32  ;;  %v82_v35 = vmul.f32 0.03125, %v39_v33 }
  0x93   :  { %v454_v36 = vsub.f32 %v14_v0, %v80_v34  ;;  %v456_v37 = vsub.f32 %v16_v1, %v82_v35 }
  0x94   :  { %v36_v38 = vpop.xlane.xlu0 %35  ;;  %v42_v39 = vpop.xlane.xlu1 %41 }
  0x95   :  { %v81_v40 = vmul.f32 0.03125, %v36_v38  ;;  %v83_v41 = vmul.f32 0.03125, %v42_v39  ;;  %v112_v42 = vmul.f32 %v454_v36, %v454_v36  ;;  %v114_v43 = vmul.f32 %v456_v37, %v456_v37 }
  0x97   :  { %v462_v44 = vsub.f32 %v15_v2, %v81_v40  ;;  %v464_v45 = vsub.f32 %v17_v5, %v83_v41  ;;  %v128_v46 = vsel %vm30_vm0, %v112_v42, 0.0  ;;  %v134_v49 = vsel %vm30_vm0, %v114_v43, 0.0 }
  0x98   :  { %129 = vadd.xlane.f32.xlu0 %v128_v46  ;;  %v45_v47 = vpop.xlane.xlu0 %44  ;;  %v48_v48 = vpop.xlane.xlu1 %47 }
  0x99   :  { %v84_v50 = vmul.f32 0.03125, %v45_v47  ;;  %v85_v51 = vmul.f32 0.03125, %v48_v48  ;;  %v113_v52 = vmul.f32 %v462_v44, %v462_v44  ;;  %v115_v53 = vmul.f32 %v464_v45, %v464_v45 }
  0x9b   :  { %v472_v54 = vsub.f32 %v18_v8, %v84_v50  ;;  %v474_v55 = vsub.f32 %v19_v9, %v85_v51  ;;  %v131_v56 = vsel %vm30_vm0, %v113_v52, 0.0  ;;  %v137_v59 = vsel %vm30_vm0, %v115_v53, 0.0 }
  0x9c   :  { %135 = vadd.xlane.f32.xlu0 %v134_v49  ;;  %132 = vadd.xlane.f32.xlu1 %v131_v56  ;;  %v51_v57 = vpop.xlane.xlu0 %50  ;;  %v54_v58 = vpop.xlane.xlu1 %53 }
  0x9d   :  { %v86_v60 = vmul.f32 0.03125, %v51_v57  ;;  %v87_v61 = vmul.f32 0.03125, %v54_v58  ;;  %v116_v62 = vmul.f32 %v472_v54, %v472_v54  ;;  %v117_v63 = vmul.f32 %v474_v55, %v474_v55 }
  0x9f   :  { %v483_v0 = vsub.f32 %v387_v12, %v86_v60  ;;  %v486_v1 = vsub.f32 %v392_v13, %v87_v61  ;;  %v140_v2 = vsel %vm30_vm0, %v116_v62, 0.0  ;;  %v143_v5 = vsel %vm30_vm0, %v117_v63, 0.0 }
  0xa0   :  { %138 = vadd.xlane.f32.xlu1 %v137_v59  ;;  %141 = vadd.xlane.f32.xlu0 %v140_v2  ;;  %v57_v3 = vpop.xlane.xlu0 %56  ;;  %v60_v4 = vpop.xlane.xlu1 %59 }
  0xa1   :  { %v88_v6 = vmul.f32 0.03125, %v57_v3  ;;  %v89_v7 = vmul.f32 0.03125, %v60_v4  ;;  %v118_v8 = vmul.f32 %v483_v0, %v483_v0  ;;  %v119_v9 = vmul.f32 %v486_v1, %v486_v1 }
  0xa3   :  { %v495_v10 = vsub.f32 %v401_v16, %v88_v6  ;;  %v498_v11 = vsub.f32 %v406_v17, %v89_v7  ;;  %v146_v12 = vsel %vm30_vm0, %v118_v8, 0.0  ;;  %v149_v15 = vsel %vm30_vm0, %v119_v9, 0.0 }
  0xa4   :  { %144 = vadd.xlane.f32.xlu1 %v143_v5  ;;  %147 = vadd.xlane.f32.xlu0 %v146_v12  ;;  %v63_v13 = vpop.xlane.xlu0 %62  ;;  %v66_v14 = vpop.xlane.xlu1 %65 }
  0xa5   :  { %v90_v18 = vmul.f32 0.03125, %v63_v13  ;;  %v91_v19 = vmul.f32 0.03125, %v66_v14  ;;  %v120_v22 = vmul.f32 %v495_v10, %v495_v10  ;;  %v121_v16 = vmul.f32 %v498_v11, %v498_v11  ;;  %v547_v14 = vld [vmem:[%s667_s1] ss:$0 sm:$0xff] }
  0xa7   :  { %v507_v23 = vsub.f32 %v415_v20, %v90_v18  ;;  %v510_v17 = vsub.f32 %v420_v21, %v91_v19  ;;  %v152_v26 = vsel %vm30_vm0, %v120_v22, 0.0  ;;  %v155_v31 = vsel %vm30_vm0, %v121_v16, 0.0 }
  0xa8   :  { %150 = vadd.xlane.f32.xlu1 %v149_v15  ;;  %153 = vadd.xlane.f32.xlu0 %v152_v26  ;;  %v69_v27 = vpop.xlane.xlu0 %68  ;;  %v72_v30 = vpop.xlane.xlu1 %71  ;;  %v553_v26 = vld [vmem:[%s668_s2] ss:$0 sm:$0xff] }
  0xa9   :  { %v92_v32 = vmul.f32 0.03125, %v69_v27  ;;  %v93_v33 = vmul.f32 0.03125, %v72_v30  ;;  %v122_v34 = vmul.f32 %v507_v23, %v507_v23  ;;  %v123_v20 = vmul.f32 %v510_v17, %v510_v17 }
  0xab   :  { %v519_v35 = vsub.f32 %v429_v24, %v92_v32  ;;  %v522_v21 = vsub.f32 %v434_v25, %v93_v33  ;;  %v158_v38 = vsel %vm30_vm0, %v122_v34, 0.0  ;;  %v161_v41 = vsel %vm30_vm0, %v123_v20, 0.0 }
  0xac   :  { %156 = vadd.xlane.f32.xlu1 %v155_v31  ;;  %159 = vadd.xlane.f32.xlu0 %v158_v38  ;;  %v75_v39 = vpop.xlane.xlu0 %74  ;;  %v78_v40 = vpop.xlane.xlu1 %77 }
  0xad   :  { %v94_v42 = vmul.f32 0.03125, %v75_v39  ;;  %v95_v43 = vmul.f32 0.03125, %v78_v40  ;;  %v124_v46 = vmul.f32 %v519_v35, %v519_v35  ;;  %v125_v24 = vmul.f32 %v522_v21, %v522_v21 }
  0xaf   :  { %v531_v47 = vsub.f32 %v443_v28, %v94_v42  ;;  %v534_v25 = vsub.f32 %v448_v29, %v95_v43  ;;  %v164_v48 = vsel %vm30_vm0, %v124_v46, 0.0  ;;  %v167_v49 = vsel %vm30_vm0, %v125_v24, 0.0 }
  0xb0   :  { %162 = vadd.xlane.f32.xlu1 %v161_v41  ;;  %165 = vadd.xlane.f32.xlu0 %v164_v48 }
  0xb1   :  { %v126_v50 = vmul.f32 %v531_v47, %v531_v47  ;;  %v127_v51 = vmul.f32 %v534_v25, %v534_v25 }
  0xb3   :  { %v170_v52 = vsel %vm30_vm0, %v126_v50, 0.0  ;;  %v173_v28 = vsel %vm30_vm0, %v127_v51, 0.0 }
  0xb4   :  { %168 = vadd.xlane.f32.xlu1 %v167_v49  ;;  %171 = vadd.xlane.f32.xlu0 %v170_v52 }
  0xb8   :  { %174 = vadd.xlane.f32.xlu1 %v173_v28 }
 0x125   :  { %v130_v29 = vpop.xlane.xlu0 %129 }
 0x126   :  { %v176_v53 = vmul.f32 0.03125, %v130_v29 }
 0x128   :  { %v192_v56 = vadd.f32 1e-05, %v176_v53 }
 0x129   :  { %v133_v57 = vpop.xlane.xlu1 %132  ;;  %v136_v58 = vpop.xlane.xlu0 %135 }
 0x12a   :  { %308 = vrsqrt.f32 %v192_v56  ;;  %v177_v59 = vmul.f32 0.03125, %v133_v57  ;;  %v178_v60 = vmul.f32 0.03125, %v136_v58 }
 0x12c   :  { %v193_v61 = vadd.f32 1e-05, %v177_v59  ;;  %v194_v62 = vadd.f32 1e-05, %v178_v60 }
 0x12d   :  { %v139_v63 = vpop.xlane.xlu1 %138  ;;  %v142_v2 = vpop.xlane.xlu0 %141 }
 0x12e   :  { %310 = vrsqrt.f32 %v193_v61  ;;  %v179_v3 = vmul.f32 0.03125, %v139_v63  ;;  %v180_v4 = vmul.f32 0.03125, %v142_v2 }
 0x12f   :  { %312 = vrsqrt.f32 %v194_v62 }
 0x130   :  { %v195_v5 = vadd.f32 1e-05, %v179_v3  ;;  %v196_v6 = vadd.f32 1e-05, %v180_v4 }
 0x131   :  { %v145_v7 = vpop.xlane.xlu1 %144  ;;  %v148_v8 = vpop.xlane.xlu0 %147 }
 0x132   :  { %314 = vrsqrt.f32 %v195_v5  ;;  %v181_v9 = vmul.f32 0.03125, %v145_v7  ;;  %v182_v12 = vmul.f32 0.03125, %v148_v8 }
 0x133   :  { %316 = vrsqrt.f32 %v196_v6 }
 0x134   :  { %v309_v13 = vpop.eup %308  ;;  %v197_v15 = vadd.f32 1e-05, %v181_v9  ;;  %v198_v18 = vadd.f32 1e-05, %v182_v12 }
 0x135   :  { %v224_v19 = vmul.f32 %v309_v13, %v454_v36  ;;  %v151_v22 = vpop.xlane.xlu1 %150  ;;  %v154_v16 = vpop.xlane.xlu0 %153 }
 0x136   :  { %318 = vrsqrt.f32 %v197_v15  ;;  %v183_v27 = vmul.f32 0.03125, %v151_v22  ;;  %v184_v30 = vmul.f32 0.03125, %v154_v16 }
 0x137   :  { %v247_v31 = vmul.f32 %v547_v14, %v224_v19  ;;  %320 = vrsqrt.f32 %v198_v18 }
 0x138   :  { %v311_v32 = vpop.eup %310  ;;  %v199_v33 = vadd.f32 1e-05, %v183_v27  ;;  %v200_v34 = vadd.f32 1e-05, %v184_v30 }
 0x139   :  { %v313_v20 = vpop.eup %312  ;;  %v270_v38 = vadd.f32 %v553_v26, %v247_v31  ;;  %v225_v36 = vmul.f32 %v311_v32, %v462_v44  ;;  %v157_v39 = vpop.xlane.xlu1 %156 }
 0x13a   :  { %v160_v40 = vpop.xlane.xlu0 %159  ;;  %v226_v41 = vmul.f32 %v313_v20, %v456_v37  ;;  %322 = vrsqrt.f32 %v199_v33  ;;  %v185_v42 = vmul.f32 0.03125, %v157_v39 }
 0x13b   :  { %v186_v43 = vmul.f32 0.03125, %v160_v40  ;;  %286 = vst.msk [vmem:[%s669_s3] sm:$0xff] %vm30_vm0, %v270_v38  ;;  %v248_v46 = vmul.f32 %v547_v14, %v225_v36  ;;  %324 = vrsqrt.f32 %v200_v34 }
 0x13c   :  { %v315_v24 = vpop.eup %314  ;;  %v249_v48 = vmul.f32 %v547_v14, %v226_v41  ;;  %v201_v49 = vadd.f32 1e-05, %v185_v42 }
 0x13d   :  { %v202_v44 = vadd.f32 1e-05, %v186_v43  ;;  %v317_v50 = vpop.eup %316  ;;  %v271_v51 = vadd.f32 %v553_v26, %v248_v46  ;;  %v227_v37 = vmul.f32 %v315_v24, %v464_v45  ;;  %v163_v52 = vpop.xlane.xlu1 %162 }
 0x13e   :  { %v166_v28 = vpop.xlane.xlu0 %165  ;;  %v272_v29 = vadd.f32 %v553_v26, %v249_v48  ;;  %v228_v53 = vmul.f32 %v317_v50, %v472_v54  ;;  %326 = vrsqrt.f32 %v201_v49  ;;  %v187_v56 = vmul.f32 0.03125, %v163_v52 }
 0x13f   :  { %287 = vst.msk [vmem:[%s669_s3 + $0x8] sm:$0xff] %vm30_vm0, %v271_v51  ;;  %v250_v57 = vmul.f32 %v547_v14, %v227_v37  ;;  %328 = vrsqrt.f32 %v202_v44  ;;  %v188_v58 = vmul.f32 0.03125, %v166_v28 }
 0x140   :  { %v319_v59 = vpop.eup %318  ;;  %288 = vst.msk [vmem:[%s669_s3 + $0x10] sm:$0xff] %vm30_vm0, %v272_v29  ;;  %v251_v45 = vmul.f32 %v547_v14, %v228_v53  ;;  %v203_v54 = vadd.f32 1e-05, %v187_v56 }
 0x141   :  { %v321_v60 = vpop.eup %320  ;;  %v273_v61 = vadd.f32 %v553_v26, %v250_v57  ;;  %v229_v62 = vmul.f32 %v319_v59, %v474_v55  ;;  %v204_v63 = vadd.f32 1e-05, %v188_v58  ;;  %v169_v2 = vpop.xlane.xlu1 %168 }
 0x142   :  { %v172_v3 = vpop.xlane.xlu0 %171  ;;  %v274_v4 = vadd.f32 %v553_v26, %v251_v45  ;;  %v230_v5 = vmul.f32 %v321_v60, %v483_v0  ;;  %330 = vrsqrt.f32 %v203_v54  ;;  %v189_v6 = vmul.f32 0.03125, %v169_v2 }
 0x143   :  { %289 = vst.msk [vmem:[%s669_s3 + $0x18] sm:$0xff] %vm30_vm0, %v273_v61  ;;  %v252_v7 = vmul.f32 %v547_v14, %v229_v62  ;;  %332 = vrsqrt.f32 %v204_v63  ;;  %v190_v8 = vmul.f32 0.03125, %v172_v3 }
 0x144   :  { %v323_v9 = vpop.eup %322  ;;  %290 = vst.msk [vmem:[%s669_s3 + $0x20] sm:$0xff] %vm30_vm0, %v274_v4  ;;  %v253_v55 = vmul.f32 %v547_v14, %v230_v5  ;;  %v205_v0 = vadd.f32 1e-05, %v189_v6 }
 0x145   :  { %v325_v12 = vpop.eup %324  ;;  %v275_v13 = vadd.f32 %v553_v26, %v252_v7  ;;  %v231_v15 = vmul.f32 %v323_v9, %v486_v1  ;;  %v206_v18 = vadd.f32 1e-05, %v190_v8  ;;  %v175_v19 = vpop.xlane.xlu1 %174 }
 0x146   :  { %v276_v22 = vadd.f32 %v553_v26, %v253_v55  ;;  %v232_v16 = vmul.f32 %v325_v12, %v495_v10  ;;  %334 = vrsqrt.f32 %v205_v0  ;;  %v191_v27 = vmul.f32 0.03125, %v175_v19 }
 0x147   :  { %291 = vst.msk [vmem:[%s669_s3 + $0x28] sm:$0xff] %vm30_vm0, %v275_v13  ;;  %v254_v30 = vmul.f32 %v547_v14, %v231_v15  ;;  %336 = vrsqrt.f32 %v206_v18 }
 0x148   :  { %v327_v31 = vpop.eup %326  ;;  %292 = vst.msk [vmem:[%s669_s3 + $0x30] sm:$0xff] %vm30_vm0, %v276_v22  ;;  %v255_v1 = vmul.f32 %v547_v14, %v232_v16  ;;  %v207_v32 = vadd.f32 1e-05, %v191_v27 }
 0x149   :  { %v329_v10 = vpop.eup %328  ;;  %v277_v33 = vadd.f32 %v553_v26, %v254_v30  ;;  %v233_v34 = vmul.f32 %v327_v31, %v498_v11 }
 0x14a   :  { %v278_v20 = vadd.f32 %v553_v26, %v255_v1  ;;  %v234_v38 = vmul.f32 %v329_v10, %v507_v23  ;;  %338 = vrsqrt.f32 %v207_v32 }
 0x14b   :  { %293 = vst.msk [vmem:[%s669_s3 + $0x38] sm:$0xff] %vm30_vm0, %v277_v33  ;;  %v256_v36 = vmul.f32 %v547_v14, %v233_v34 }
 0x14c   :  { %v331_v39 = vpop.eup %330  ;;  %294 = vst.msk [vmem:[%s669_s3 + $0x40] sm:$0xff] %vm30_vm0, %v278_v20  ;;  %v257_v11 = vmul.f32 %v547_v14, %v234_v38 }
 0x14d   :  { %v333_v40 = vpop.eup %332  ;;  %v279_v41 = vadd.f32 %v553_v26, %v256_v36  ;;  %v235_v23 = vmul.f32 %v331_v39, %v510_v17 }
 0x14e   :  { %v280_v42 = vadd.f32 %v553_v26, %v257_v11  ;;  %v236_v43 = vmul.f32 %v333_v40, %v519_v35 }
 0x14f   :  { %295 = vst.msk [vmem:[%s669_s3 + $0x48] sm:$0xff] %vm30_vm0, %v279_v41  ;;  %v258_v46 = vmul.f32 %v547_v14, %v235_v23 }
 0x150   :  { %v335_v24 = vpop.eup %334  ;;  %296 = vst.msk [vmem:[%s669_s3 + $0x50] sm:$0xff] %vm30_vm0, %v280_v42  ;;  %v259_v48 = vmul.f32 %v547_v14, %v236_v43 }
 0x151   :  { %v337_v17 = vpop.eup %336  ;;  %v281_v49 = vadd.f32 %v553_v26, %v258_v46  ;;  %v237_v35 = vmul.f32 %v335_v24, %v522_v21 }
 0x152   :  { %v282_v44 = vadd.f32 %v553_v26, %v259_v48  ;;  %v238_v50 = vmul.f32 %v337_v17, %v531_v47 }
 0x153   :  { %297 = vst.msk [vmem:[%s669_s3 + $0x58] sm:$0xff] %vm30_vm0, %v281_v49  ;;  %v260_v51 = vmul.f32 %v547_v14, %v237_v35 }
 0x154   :  { %v339_v37 = vpop.eup %338  ;;  %298 = vst.msk [vmem:[%s669_s3 + $0x60] sm:$0xff] %vm30_vm0, %v282_v44  ;;  %v261_v52 = vmul.f32 %v547_v14, %v238_v50 }
 0x155   :  { %v283_v21 = vadd.f32 %v553_v26, %v260_v51  ;;  %v239_v28 = vmul.f32 %v339_v37, %v534_v25 }
 0x156   :  { %v284_v47 = vadd.f32 %v553_v26, %v261_v52 }
 0x157   :  { %299 = vst.msk [vmem:[%s669_s3 + $0x68] sm:$0xff] %vm30_vm0, %v283_v21  ;;  %v262_v29 = vmul.f32 %v547_v14, %v239_v28 }
 0x158   :  { %300 = vst.msk [vmem:[%s669_s3 + $0x70] sm:$0xff] %vm30_vm0, %v284_v47 }
 0x159   :  { %v285_v53 = vadd.f32 %v553_v26, %v262_v29 }
 0x15b   :  { %301 = vst.msk [vmem:[%s669_s3 + $0x78] sm:$0xff] %vm30_vm0, %v285_v53 }

// kernel: linformer_lm_forward.29
= control target key start
LH: loop header
LB: loop body
LE: loop exit
PB: predicated region body
PF: predicated region fallthrough
CT: control target
= control target key end

     0   :  { %s1968_s12 = smov 0   ;;  %s1970_s13 = smov 0   ;;  %s2469_s0 = inlined_call_operand.vmem [shape: f32[2,64,32], index: 0, kind: input, shape index: {}]   ;;  %s2470_s1 = inlined_call_operand.vmem [shape: f32[2,16,32], index: 1, kind: input, shape index: {}]   ;;  %s2471_s2 = inlined_call_operand.vmem [shape: f32[2,16,32], index: 2, kind: input, shape index: {}]   ;;  %s2472_s3 = inlined_call_operand.vmem [shape: f32[2,64,32], index: 3, kind: output, shape index: {}]  }
   0x1   :  { %s1972_s14 = smov 0  }
   0x2 LB: > { %s25_s15 = sadd.s32 1, %s1936_s13  ;;  %p1589_p0 = scmp.ge.s32.totalorder %s1940_s14, 1  ;;  %s1940_s14 = sphi %s1972_s14, %s13_s14   ;;  %s1936_s13 = sphi %s1970_s13, %s2474_s13   ;;  %s1932_s12 = sphi %s1968_s12, %s2473_s12  }
   0x3   : > { %p27_p1 = scmp.ge.s32.totalorder %s25_s15, 2  ;;  %p178_p2 = scmp.lt.s32.totalorder %s1940_s14, 3 }
   0x5   : > { %s2476_s15 = smov (%p27_p1, %s25_s15), 0  ;;  %p179_p3 = pnand %p1589_p0, %p178_p2 }
   0x6   : > { %p221_p4 = scmp.lt.s32.totalorder (!%p179_p3), %s1932_s12, 1  ;;  %vm269_vm0 = vcmask (!%p179_p3), 64512   ;;  %vm358_vm1 = vcmask (!%p179_p3), 130048   ;;  %s1942_s27 = smov (!%p179_p3), 120   ;;  %vm1456_vm2 = vcmask (!%p179_p3), 195584   ;;  %vm1465_vm3 = vcmask (!%p179_p3), 261120  }
   0x7   : > { %182 = sbr.rel (%p179_p3) target bundleno = 1529 (0x5f9), region = 32  ;;  %s1943_s28 = smov (!%p179_p3), 112  }
   0x8   : > { %s1944_s29 = smov (!%p179_p3), 104   ;;  %s1945_s30 = smov (!%p179_p3), 8  }
   0x9   : > { %s1946_s4 = smov (!%p179_p3), 16   ;;  %s1947_s5 = smov (!%p179_p3), 24  }
   0xe   : > { %s2478_s12 = smov (!%p221_p4, %s1932_s12), 1 }
   0xf   : > { %s1632_s16 = sshll.u32 %s2478_s12, 6  ;;  %s1633_s17 = sshll.u32 %s2478_s12, 4 }
  0x10   : > { %s228_s20 = scalar_lea.vmem %s2469_s0, %s1632_s16  ;;  %s234_s23 = scalar_lea.vmem %s2470_s1, %s1633_s17 }
  0x11   : > { %v259_v0 = vld [vmem:[%s234_s23] sm:$0xff]  ;;  %v260_v1 = vld [vmem:[%s234_s23 + $0x8] sm:$0xff]  ;;  %v253_v7 = vld [vmem:[%s228_s20 + $0x10] sm:$0xff]  ;;  %s239_s26 = scalar_lea.vmem %s2471_s2, %s1633_s17  ;;  %s2412_s8 = scalar_lea.vmem %s2472_s3, %s1632_s16 }
  0x12   : > { %v251_v2 = vld [vmem:[%s228_s20] sm:$0xff]  ;;  %v2000_v3 = vpack.c.bf16 %v260_v1, %v259_v0  ;;  %v252_v4 = vld [vmem:[%s228_s20 + $0x8] sm:$0xff]  ;;  %v254_v8 = vld [vmem:[%s228_s20 + $0x18] sm:$0xff] }
  0x13   : > { %v2002_v5 = vpack.c.bf16 %v252_v4, %v251_v2  ;;  %v255_v9 = vld [vmem:[%s228_s20 + $0x20] sm:$0xff]  ;;  %v256_v10 = vld [vmem:[%s228_s20 + $0x28] sm:$0xff]  ;;  %v2010_v11 = vpack.c.bf16 %v254_v8, %v253_v7  ;;  %v257_v13 = vld [vmem:[%s228_s20 + $0x30] sm:$0xff] }
  0x14   : > { %1756 = vmatprep.subr.msk.bf16.mxu0 %vm269_vm0, %v2000_v3  ;;  %v283_v6 = vsel %vm269_vm0, %v2000_v3, 0  ;;  %v2012_v12 = vpack.c.bf16 %v256_v10, %v255_v9  ;;  %v258_v14 = vld [vmem:[%s228_s20 + $0x38] sm:$0xff] }
  0x15   : > { %1677 = vmatpush3.bf16.xpose.msra.mxu0 %v283_v6  ;;  %1678 = vmatprep.mubr.msk.bf16.mxu0 %vm269_vm0, %v2002_v5  ;;  %v2018_v15 = vpack.c.bf16 %v258_v14, %v257_v13 }
  0x1c   : > { %1679 = vmatmul.mubr.msk.bf16.vlgmr.msra.gmra.mrb[0].mxu0 %vm269_vm0, %v2010_v11 }
  0x1d   : > { %1682 = vmatprep.mubr.msk.bf16.mxu0 %vm269_vm0, %v2012_v12 }
  0x24   : > { %1683 = vmatmul.mubr.msk.bf16.gmra.mrb[4].mxu0 %vm269_vm0, %v2018_v15 }
  0xef   : > { %v1680_v16 = vpop.f32.mrb[0].mxu0 }
  0xf0   : > { %v352_v17 = vmul.f32 0.35355338, %v1680_v16  ;;  %v319_v18 = vpop.f32.mrb[1].mxu0 }
  0xf1   : > { %v350_v19 = vmul.f32 0.35355338, %v319_v18  ;;  %v1681_v20 = vpop.f32.mrb[2].mxu0 }
  0xf2   : > { %v353_v21 = vmul.f32 0.35355338, %v1681_v20  ;;  %v322_v22 = vpop.f32.mrb[3].mxu0  ;;  %v365_v23 = vsel %vm358_vm1, %v352_v17, -inf }
  0xf3   : > { %v351_v24 = vmul.f32 0.35355338, %v322_v22  ;;  %366 = vmax.xlane.f32.xlu1 %v365_v23  ;;  %v359_v25 = vsel %vm358_vm1, %v350_v19, -inf  ;;  %v262_v22 = vld [vmem:[%s239_s26 + $0x8] sm:$0xff] }
  0xf4   : > { %360 = vmax.xlane.f32.xlu0 %v359_v25  ;;  %v368_v26 = vsel %vm358_vm1, %v353_v21, -inf }
  0xf5   : > { %v362_v28 = vsel %vm358_vm1, %v351_v24, -inf }
  0xf7   : > { %369 = vmax.xlane.f32.xlu1 %v368_v26  ;;  %v1684_v27 = vpop.f32.mrb[4].mxu0 }
  0xf8   : > { %363 = vmax.xlane.f32.xlu0 %v362_v28  ;;  %v335_v29 = vpop.f32.mrb[5].mxu0  ;;  %v356_v33 = vmul.f32 0.35355338, %v1684_v27 }
  0xf9   : > { %v354_v30 = vmul.f32 0.35355338, %v335_v29  ;;  %v1685_v31 = vpop.f32.mrb[6].mxu0 }
  0xfa   : > { %v338_v32 = vpop.f32.mrb[7].mxu0  ;;  %v357_v36 = vmul.f32 0.35355338, %v1685_v31  ;;  %v377_v38 = vsel %vm358_vm1, %v356_v33, -inf }
  0xfb   : > { %v355_v34 = vmul.f32 0.35355338, %v338_v32  ;;  %v371_v35 = vsel %vm358_vm1, %v354_v30, -inf }
  0xfc   : > { %372 = vmax.xlane.f32.xlu0 %v371_v35  ;;  %v380_v39 = vsel %vm358_vm1, %v357_v36, -inf }
  0xfd   : > { %v374_v37 = vsel %vm358_vm1, %v355_v34, -inf }
  0xfe   : > { %375 = vmax.xlane.f32.xlu1 %v374_v37 }
 0x100   : > { %378 = vmax.xlane.f32.xlu0 %v377_v38 }
 0x102   : > { %381 = vmax.xlane.f32.xlu1 %v380_v39 }
 0x180   : > { %v367_v40 = vpop.xlane.xlu1 %366 }
 0x181   : > { %v385_v41 = vsub.f32 %v352_v17, %v367_v40  ;;  %v361_v42 = vpop.xlane.xlu0 %360 }
 0x182   : > { %v383_v43 = vsub.f32 %v350_v19, %v361_v42 }
 0x183   : > { %v395_v44 = vmul.f32 1.442695, %v385_v41 }
 0x184   : > { %v391_v45 = vmul.f32 1.442695, %v383_v43  ;;  %v370_v46 = vpop.xlane.xlu1 %369 }
 0x185   : > { %1790 = vpow2.f32 %v395_v44  ;;  %v386_v47 = vsub.f32 %v353_v21, %v370_v46  ;;  %v364_v48 = vpop.xlane.xlu0 %363  ;;  %v261_v21 = vld [vmem:[%s239_s26] sm:$0xff] }
 0x186   : > { %v384_v49 = vsub.f32 %v351_v24, %v364_v48  ;;  %1792 = vpow2.f32 %v391_v45  ;;  %v2067_v23 = vpack.c.bf16 %v262_v22, %v261_v21 }
 0x187   : > { %v397_v50 = vmul.f32 1.442695, %v386_v47 }
 0x188   : > { %v393_v51 = vmul.f32 1.442695, %v384_v49  ;;  %1686 = vmatprep.subr.bf16.mxu1 %v2067_v23 }
 0x189   : > { %1794 = vpow2.f32 %v397_v50  ;;  %v373_v52 = vpop.xlane.xlu0 %372  ;;  %1687 = vmatpush3.bf16.msra.mxu1 %v2067_v23 }
 0x18a   : > { %1796 = vpow2.f32 %v393_v51  ;;  %v387_v53 = vsub.f32 %v354_v30, %v373_v52 }
 0x18b   : > { %v376_v54 = vpop.xlane.xlu1 %375 }
 0x18c   : > { %v388_v56 = vsub.f32 %v355_v34, %v376_v54  ;;  %v399_v59 = vmul.f32 1.442695, %v387_v53 }
 0x18d   : > { %v379_v55 = vpop.xlane.xlu0 %378 }
 0x18e   : > { %v389_v57 = vsub.f32 %v356_v33, %v379_v55  ;;  %v401_v1 = vmul.f32 1.442695, %v388_v56 }
 0x18f   : > { %v2030_v58 = vpop.eup %1790  ;;  %v382_v60 = vpop.xlane.xlu1 %381 }
 0x190   : > { %v403_v61 = vmul.f32 1.442695, %v389_v57  ;;  %v390_v62 = vsub.f32 %v357_v36, %v382_v60  ;;  %v413_v63 = vsel %vm358_vm1, %v2030_v58, 0.0  ;;  %v2034_v0 = vpop.eup %1792 }
 0x191   : > { %414 = vadd.xlane.f32.xlu0 %v413_v63  ;;  %v407_v6 = vsel %vm358_vm1, %v2034_v0, 0.0 }
 0x192   : > { %1798 = vpow2.f32 %v403_v61  ;;  %v405_v2 = vmul.f32 1.442695, %v390_v62 }
 0x193   : > { %v2036_v4 = vpop.eup %1794  ;;  %1800 = vpow2.f32 %v399_v59 }
 0x194   : > { %1802 = vpow2.f32 %v405_v2  ;;  %v416_v7 = vsel %vm358_vm1, %v2036_v4, 0.0  ;;  %v2042_v8 = vpop.eup %1796 }
 0x195   : > { %408 = vadd.xlane.f32.xlu0 %v407_v6  ;;  %417 = vadd.xlane.f32.xlu1 %v416_v7  ;;  %1804 = vpow2.f32 %v401_v1  ;;  %v410_v9 = vsel %vm358_vm1, %v2042_v8, 0.0 }
 0x199   : > { %411 = vadd.xlane.f32.xlu1 %v410_v9 }
 0x19c   : > { %v2046_v10 = vpop.eup %1798 }
 0x19d   : > { %v2048_v13 = vpop.eup %1800  ;;  %v425_v14 = vsel %vm358_vm1, %v2046_v10, 0.0 }
 0x19e   : > { %v2052_v16 = vpop.eup %1802  ;;  %426 = vadd.xlane.f32.xlu0 %v425_v14  ;;  %v419_v19 = vsel %vm358_vm1, %v2048_v13, 0.0 }
 0x19f   : > { %v428_v17 = vsel %vm358_vm1, %v2052_v16, 0.0  ;;  %v2056_v18 = vpop.eup %1804 }
 0x1a0   : > { %429 = vadd.xlane.f32.xlu1 %v428_v17  ;;  %v422_v20 = vsel %vm358_vm1, %v2056_v18, 0.0 }
 0x1a2   : > { %420 = vadd.xlane.f32.xlu0 %v419_v19 }
 0x1a4   : > { %423 = vadd.xlane.f32.xlu1 %v422_v20 }
 0x1b5   : > { %532 = vrot.lane.b32.xlu1 %v2002_v5, %s1942_s27 }
 0x1b8   : > { %541 = vrot.lane.b32.xlu0 %v2000_v3, %s1942_s27 }
 0x1b9   : > { %534 = vrot.lane.b32.xlu1 %v2010_v11, %s1942_s27 }
 0x1bc   : > { %538 = vrot.lane.b32.xlu0 %v2018_v15, %s1942_s27 }
 0x1bd   : > { %536 = vrot.lane.b32.xlu1 %v2012_v12, %s1942_s27 }
 0x1c0   : > { %804 = vrot.lane.b32.xlu0 %v2002_v5, %s1943_s28 }
 0x1c1   : > { %812 = vrot.lane.b32.xlu1 %v2000_v3, %s1943_s28 }
 0x1c4   : > { %808 = vrot.lane.b32.xlu0 %v2012_v12, %s1943_s28 }
 0x1c5   : > { %806 = vrot.lane.b32.xlu1 %v2010_v11, %s1943_s28 }
 0x1c8   : > { %1082 = vrot.lane.b32.xlu0 %v2000_v3, %s1944_s29 }
 0x1c9   : > { %810 = vrot.lane.b32.xlu1 %v2018_v15, %s1943_s28 }
 0x1cc   : > { %1076 = vrot.lane.b32.xlu0 %v2010_v11, %s1944_s29 }
 0x1cd   : > { %1074 = vrot.lane.b32.xlu1 %v2002_v5, %s1944_s29 }
 0x1d0   : > { %1080 = vrot.lane.b32.xlu0 %v2018_v15, %s1944_s29 }
 0x1d1   : > { %1078 = vrot.lane.b32.xlu1 %v2012_v12, %s1944_s29 }
 0x21e   : > { %v415_v24 = vpop.xlane.xlu0 %414 }
 0x222   : > { %v409_v25 = vpop.xlane.xlu0 %408  ;;  %v418_v26 = vpop.xlane.xlu1 %417 }
 0x223   : > { %1806 = vrcp.f32 %v418_v26 }
 0x224   : > { %1808 = vrcp.f32 %v409_v25 }
 0x225   : > { %1810 = vrcp.f32 %v415_v24 }
 0x226   : > { %v412_v3 = vpop.xlane.xlu1 %411 }
 0x227   : > { %1812 = vrcp.f32 %v412_v3 }
 0x22b   : > { %v427_v27 = vpop.xlane.xlu0 %426 }
 0x22d   : > { %v430_v28 = vpop.xlane.xlu1 %429  ;;  %v1807_v11 = vpop.eup %1806 }
 0x22e   : > { %v1809_v29 = vpop.eup %1808  ;;  %1814 = vrcp.f32 %v430_v28  ;;  %v442_v12 = vmul.f32 %v1807_v11, %v2036_v4 }
 0x22f   : > { %v421_v5 = vpop.xlane.xlu0 %420  ;;  %v1811_v30 = vpop.eup %1810  ;;  %v439_v32 = vmul.f32 %v1809_v29, %v2034_v0 }
 0x230   : > { %1816 = vrcp.f32 %v421_v5  ;;  %v441_v34 = vmul.f32 %v1811_v30, %v2030_v58 }
 0x231   : > { %v1813_v15 = vpop.eup %1812  ;;  %1818 = vrcp.f32 %v427_v27  ;;  %v424_v31 = vpop.xlane.xlu1 %423 }
 0x232   : > { %1820 = vrcp.f32 %v424_v31  ;;  %v440_v33 = vmul.f32 %v1813_v15, %v2042_v8  ;;  %v448_v37 = vpack.c.bf16 %v442_v12, %v441_v34 }
 0x233   : > { %v542_v35 = vpop.permute.xlu0 %541 }
 0x234   : > { %v447_v36 = vpack.c.bf16 %v440_v33, %v439_v32  ;;  %1757 = vmatprep.subr.msk.bf16.mxu1 %vm269_vm0, %v542_v35  ;;  %v556_v38 = vsel %vm269_vm0, %v542_v35, 0 }
 0x235   : > { %v533_v39 = vpop.permute.xlu1 %532 }
 0x236   : > { %1688 = vmatprep.mubr.msk.bf16.mxu1 %vm358_vm1, %v447_v36 }
 0x237   : > { %1689 = vmatmul.mubr.msk.bf16.vlgmr.msra.gmra.mrb[0].mxu1 %vm358_vm1, %v448_v37  ;;  %v539_v42 = vpop.permute.xlu0 %538 }
 0x238   : > { %1697 = vmatpush3.bf16.xpose.msra.mxu1 %v556_v38  ;;  %v1815_v40 = vpop.eup %1814 }
 0x239   : > { %v535_v41 = vpop.permute.xlu1 %534  ;;  %v446_v46 = vmul.f32 %v1815_v40, %v2052_v16 }
 0x23a   : > { %v1817_v43 = vpop.eup %1816 }
 0x23b   : > { %v1819_v44 = vpop.eup %1818  ;;  %v443_v47 = vmul.f32 %v1817_v43, %v2048_v13  ;;  %v805_v50 = vpop.permute.xlu0 %804 }
 0x23c   : > { %v1821_v45 = vpop.eup %1820  ;;  %v445_v51 = vmul.f32 %v1819_v44, %v2046_v10 }
 0x23d   : > { %v444_v48 = vmul.f32 %v1821_v45, %v2056_v18  ;;  %v537_v49 = vpop.permute.xlu1 %536 }
 0x23e   : > { %v450_v53 = vpack.c.bf16 %v446_v46, %v445_v51 }
 0x23f   : > { %v449_v52 = vpack.c.bf16 %v444_v48, %v443_v47  ;;  %v809_v55 = vpop.permute.xlu0 %808 }
 0x241   : > { %1692 = vmatprep.mubr.msk.bf16.mxu1 %vm358_vm1, %v449_v52  ;;  %v813_v54 = vpop.permute.xlu1 %812 }
 0x242   : > { %1693 = vmatmul.mubr.msk.bf16.gmra.mrb[4].mxu1 %vm358_vm1, %v450_v53  ;;  %1758 = vmatprep.subr.msk.bf16.mxu1 %vm269_vm0, %v813_v54  ;;  %v827_v56 = vsel %vm269_vm0, %v813_v54, 0 }
 0x243   : > { %1698 = vmatprep.mubr.msk.bf16.mxu1 %vm269_vm0, %v533_v39  ;;  %v1083_v57 = vpop.permute.xlu0 %1082 }
 0x244   : > { %v1097_v59 = vsel %vm269_vm0, %v1083_v57, 0 }
 0x245   : > { %v807_v58 = vpop.permute.xlu1 %806 }
 0x247   : > { %v1077_v62 = vpop.permute.xlu0 %1076 }
 0x249   : > { %v811_v60 = vpop.permute.xlu1 %810 }
 0x24a   : > { %1699 = vmatmul.mubr.msk.bf16.vlgmr.msra.gmra.mrb[8].mxu1 %vm269_vm0, %v535_v41 }
 0x24b   : > { %1702 = vmatprep.mubr.msk.bf16.mxu1 %vm269_vm0, %v537_v49  ;;  %1717 = vmatpush3.bf16.xpose.msra.mxu1 %v827_v56  ;;  %v1081_v0 = vpop.permute.xlu0 %1080 }
 0x24c   : > { %1759 = vmatprep.subr.msk.bf16.mxu1 %vm269_vm0, %v1083_v57 }
 0x24d   : > { %v1075_v61 = vpop.permute.xlu1 %1074 }
 0x251   : > { %v1079_v63 = vpop.permute.xlu1 %1078 }
 0x252   : > { %1703 = vmatmul.mubr.msk.bf16.gmra.mrb[12].mxu1 %vm269_vm0, %v539_v42 }
 0x253   : > { %1718 = vmatprep.mubr.msk.bf16.mxu1 %vm269_vm0, %v805_v50 }
 0x25a   : > { %1719 = vmatmul.mubr.msk.bf16.vlgmr.msra.gmra.mrb[16].mxu1 %vm269_vm0, %v807_v58 }
 0x25b   : > { %1722 = vmatprep.mubr.msk.bf16.mxu1 %vm269_vm0, %v809_v55  ;;  %1737 = vmatpush3.bf16.xpose.msra.mxu1 %v1097_v59 }
 0x262   : > { %1723 = vmatmul.mubr.msk.bf16.gmra.mrb[20].mxu1 %vm269_vm0, %v811_v60 }
 0x263   : > { %1738 = vmatprep.mubr.msk.bf16.mxu1 %vm269_vm0, %v1075_v61 }
 0x26a   : > { %1739 = vmatmul.mubr.msk.bf16.vlgmr.msra.gmra.mrb[24].mxu1 %vm269_vm0, %v1077_v62 }
 0x26b   : > { %1742 = vmatprep.mubr.msk.bf16.mxu1 %vm269_vm0, %v1079_v63 }
 0x272   : > { %1743 = vmatmul.mubr.msk.bf16.gmra.mrb[28].mxu1 %vm269_vm0, %v1081_v0 }
 0x30a   : > { %v2131_v1 = vpop.f32.mrb[0].mxu1 }
 0x30b   : > { %v2133_v2 = vpop.f32.mrb[1].mxu1 }
 0x30c   : > { %v2135_v4 = vpop.f32.mrb[2].mxu1 }
 0x30d   : > { %v2137_v6 = vpop.f32.mrb[3].mxu1 }
 0x315   : > { %v2139_v7 = vpop.f32.mrb[4].mxu1 }
 0x316   : > { %v2141_v8 = vpop.f32.mrb[5].mxu1 }
 0x317   : > { %v2143_v9 = vpop.f32.mrb[6].mxu1 }
 0x318   : > { %v2145_v10 = vpop.f32.mrb[7].mxu1 }
 0x31d   : > { %v1700_v13 = vpop.f32.mrb[8].mxu1 }
 0x31e   : > { %v2147_v14 = vmul.f32 0.35355338, %v1700_v13  ;;  %v592_v16 = vpop.f32.mrb[9].mxu1 }
 0x31f   : > { %v2149_v17 = vmul.f32 0.35355338, %v592_v16  ;;  %v1701_v18 = vpop.f32.mrb[10].mxu1 }
 0x320   : > { %v2151_v19 = vmul.f32 0.35355338, %v1701_v18  ;;  %v595_v20 = vpop.f32.mrb[11].mxu1  ;;  %v637_v21 = vsel %vm358_vm1, %v2147_v14, -inf }
 0x321   : > { %638 = vmax.xlane.f32.xlu0 %v637_v21  ;;  %v631_v22 = vsel %vm358_vm1, %v2149_v17, -inf  ;;  %v2157_v24 = vmul.f32 0.35355338, %v595_v20 }
 0x322   : > { %632 = vmax.xlane.f32.xlu1 %v631_v22  ;;  %v640_v25 = vsel %vm358_vm1, %v2151_v19, -inf }
 0x323   : > { %v634_v11 = vsel %vm358_vm1, %v2157_v24, -inf }
 0x325   : > { %641 = vmax.xlane.f32.xlu0 %v640_v25  ;;  %v1704_v26 = vpop.f32.mrb[12].mxu1 }
 0x326   : > { %v2161_v3 = vmul.f32 0.35355338, %v1704_v26  ;;  %v608_v27 = vpop.f32.mrb[13].mxu1 }
 0x327   : > { %v1705_v28 = vpop.f32.mrb[14].mxu1  ;;  %v2165_v29 = vmul.f32 0.35355338, %v608_v27 }
 0x328   : > { %v2167_v5 = vmul.f32 0.35355338, %v1705_v28  ;;  %v611_v30 = vpop.f32.mrb[15].mxu1  ;;  %v649_v15 = vsel %vm358_vm1, %v2161_v3, -inf }
 0x329   : > { %635 = vmax.xlane.f32.xlu0 %v634_v11  ;;  %650 = vmax.xlane.f32.xlu1 %v649_v15  ;;  %v2171_v31 = vmul.f32 0.35355338, %v611_v30  ;;  %v643_v12 = vsel %vm358_vm1, %v2165_v29, -inf }
 0x32a   : > { %v652_v32 = vsel %vm358_vm1, %v2167_v5, -inf }
 0x32b   : > { %v646_v37 = vsel %vm358_vm1, %v2171_v31, -inf }
 0x32d   : > { %644 = vmax.xlane.f32.xlu1 %v643_v12  ;;  %653 = vmax.xlane.f32.xlu0 %v652_v32  ;;  %v1720_v33 = vpop.f32.mrb[16].mxu1 }
 0x32e   : > { %v2177_v34 = vmul.f32 0.35355338, %v1720_v33  ;;  %v863_v35 = vpop.f32.mrb[17].mxu1 }
 0x32f   : > { %v1721_v36 = vpop.f32.mrb[18].mxu1  ;;  %v2181_v38 = vmul.f32 0.35355338, %v863_v35 }
 0x330   : > { %v2183_v39 = vmul.f32 0.35355338, %v1721_v36  ;;  %v866_v40 = vpop.f32.mrb[19].mxu1  ;;  %v908_v41 = vsel %vm358_vm1, %v2177_v34, -inf }
 0x331   : > { %647 = vmax.xlane.f32.xlu0 %v646_v37  ;;  %909 = vmax.xlane.f32.xlu1 %v908_v41  ;;  %v2187_v42 = vmul.f32 0.35355338, %v866_v40  ;;  %v902_v43 = vsel %vm358_vm1, %v2181_v38, -inf }
 0x332   : > { %v911_v44 = vsel %vm358_vm1, %v2183_v39, -inf }
 0x333   : > { %v905_v49 = vsel %vm358_vm1, %v2187_v42, -inf }
 0x335   : > { %903 = vmax.xlane.f32.xlu1 %v902_v43  ;;  %912 = vmax.xlane.f32.xlu0 %v911_v44  ;;  %v1724_v45 = vpop.f32.mrb[20].mxu1 }
 0x336   : > { %v2193_v46 = vmul.f32 0.35355338, %v1724_v45  ;;  %v879_v47 = vpop.f32.mrb[21].mxu1 }
 0x337   : > { %v1725_v48 = vpop.f32.mrb[22].mxu1  ;;  %v2197_v50 = vmul.f32 0.35355338, %v879_v47 }
 0x338   : > { %v2199_v51 = vmul.f32 0.35355338, %v1725_v48  ;;  %v882_v52 = vpop.f32.mrb[23].mxu1  ;;  %v920_v53 = vsel %vm358_vm1, %v2193_v46, -inf }
 0x339   : > { %906 = vmax.xlane.f32.xlu0 %v905_v49  ;;  %921 = vmax.xlane.f32.xlu1 %v920_v53  ;;  %v2203_v54 = vmul.f32 0.35355338, %v882_v52  ;;  %v914_v55 = vsel %vm358_vm1, %v2197_v50, -inf }
 0x33a   : > { %v923_v56 = vsel %vm358_vm1, %v2199_v51, -inf }
 0x33b   : > { %v917_v63 = vsel %vm358_vm1, %v2203_v54, -inf }
 0x33d   : > { %915 = vmax.xlane.f32.xlu1 %v914_v55  ;;  %924 = vmax.xlane.f32.xlu0 %v923_v56  ;;  %v1740_v57 = vpop.f32.mrb[24].mxu1 }
 0x33e   : > { %v2209_v58 = vmul.f32 0.35355338, %v1740_v57  ;;  %v1133_v59 = vpop.f32.mrb[25].mxu1 }
 0x33f   : > { %v2211_v60 = vmul.f32 0.35355338, %v1133_v59  ;;  %v1741_v61 = vpop.f32.mrb[26].mxu1 }
 0x340   : > { %v2213_v62 = vmul.f32 0.35355338, %v1741_v61  ;;  %v1178_v0 = vsel %vm358_vm1, %v2209_v58, -inf  ;;  %v1136_v13 = vpop.f32.mrb[27].mxu1 }
 0x341   : > { %918 = vmax.xlane.f32.xlu0 %v917_v63  ;;  %1179 = vmax.xlane.f32.xlu1 %v1178_v0  ;;  %v1172_v16 = vsel %vm358_vm1, %v2211_v60, -inf  ;;  %v2223_v20 = vmul.f32 0.35355338, %v1136_v13 }
 0x342   : > { %v1181_v18 = vsel %vm358_vm1, %v2213_v62, -inf }
 0x343   : > { %v1175_v28 = vsel %vm358_vm1, %v2223_v20, -inf }
 0x345   : > { %1173 = vmax.xlane.f32.xlu1 %v1172_v16  ;;  %1182 = vmax.xlane.f32.xlu0 %v1181_v18  ;;  %v1744_v21 = vpop.f32.mrb[28].mxu1 }
 0x346   : > { %v2225_v22 = vmul.f32 0.35355338, %v1744_v21  ;;  %v1149_v25 = vpop.f32.mrb[29].mxu1 }
 0x347   : > { %v2227_v26 = vmul.f32 0.35355338, %v1149_v25  ;;  %v1745_v27 = vpop.f32.mrb[30].mxu1 }
 0x348   : > { %v1190_v11 = vsel %vm358_vm1, %v2225_v22, -inf  ;;  %v2233_v30 = vmul.f32 0.35355338, %v1745_v27  ;;  %v1152_v15 = vpop.f32.mrb[31].mxu1 }
 0x349   : > { %1176 = vmax.xlane.f32.xlu0 %v1175_v28  ;;  %1191 = vmax.xlane.f32.xlu1 %v1190_v11  ;;  %v1184_v12 = vsel %vm358_vm1, %v2227_v26, -inf  ;;  %v2239_v33 = vmul.f32 0.35355338, %v1152_v15 }
 0x34a   : > { %v1193_v32 = vsel %vm358_vm1, %v2233_v30, -inf }
 0x34b   : > { %v1187_v35 = vsel %vm358_vm1, %v2239_v33, -inf }
 0x34d   : > { %1185 = vmax.xlane.f32.xlu1 %v1184_v12  ;;  %1194 = vmax.xlane.f32.xlu0 %v1193_v32 }
 0x351   : > { %1188 = vmax.xlane.f32.xlu0 %v1187_v35 }
 0x35e   : > { %724 = vrot.lane.b32.xlu1 %v2067_v23, %s1942_s27 }
 0x3ae   : > { %v639_v36 = vpop.xlane.xlu0 %638 }
 0x3af   : > { %v657_v37 = vsub.f32 %v2147_v14, %v639_v36  ;;  %v633_v40 = vpop.xlane.xlu1 %632 }
 0x3b0   : > { %v655_v41 = vsub.f32 %v2149_v17, %v633_v40 }
 0x3b1   : > { %v667_v43 = vmul.f32 1.442695, %v657_v37 }
 0x3b2   : > { %v663_v44 = vmul.f32 1.442695, %v655_v41  ;;  %v642_v45 = vpop.xlane.xlu0 %641 }
 0x3b3   : > { %1822 = vpow2.f32 %v667_v43  ;;  %v658_v47 = vsub.f32 %v2151_v19, %v642_v45 }
 0x3b4   : > { %1824 = vpow2.f32 %v663_v44 }
 0x3b5   : > { %v669_v48 = vmul.f32 1.442695, %v658_v47 }
 0x3b6   : > { %v636_v49 = vpop.xlane.xlu0 %635  ;;  %v651_v52 = vpop.xlane.xlu1 %650 }
 0x3b7   : > { %1826 = vpow2.f32 %v669_v48  ;;  %v656_v53 = vsub.f32 %v2157_v24, %v636_v49  ;;  %v661_v55 = vsub.f32 %v2161_v3, %v651_v52 }
 0x3b9   : > { %v665_v56 = vmul.f32 1.442695, %v656_v53  ;;  %v675_v14 = vmul.f32 1.442695, %v661_v55 }
 0x3ba   : > { %v654_v57 = vpop.xlane.xlu0 %653  ;;  %v645_v59 = vpop.xlane.xlu1 %644 }
 0x3bb   : > { %1828 = vpow2.f32 %v665_v56  ;;  %v662_v17 = vsub.f32 %v2167_v5, %v654_v57  ;;  %v659_v61 = vsub.f32 %v2165_v29, %v645_v59 }
 0x3bc   : > { %1830 = vpow2.f32 %v675_v14 }
 0x3bd   : > { %v2252_v19 = vpop.eup %1822  ;;  %v677_v63 = vmul.f32 1.442695, %v662_v17  ;;  %v671_v0 = vmul.f32 1.442695, %v659_v61 }
 0x3be   : > { %v648_v13 = vpop.xlane.xlu0 %647  ;;  %v910_v16 = vpop.xlane.xlu1 %909  ;;  %v685_v24 = vsel %vm358_vm1, %v2252_v19, 0.0 }
 0x3bf   : > { %v2256_v3 = vpop.eup %1824  ;;  %1832 = vpow2.f32 %v677_v63  ;;  %v660_v18 = vsub.f32 %v2171_v31, %v648_v13  ;;  %v928_v21 = vsub.f32 %v2177_v34, %v910_v16  ;;  %686 = vadd.xlane.f32.xlu1 %v685_v24 }
 0x3c0   : > { %1834 = vpow2.f32 %v671_v0  ;;  %v679_v15 = vsel %vm358_vm1, %v2256_v3, 0.0 }
 0x3c1   : > { %v2260_v29 = vpop.eup %1826  ;;  %v673_v5 = vmul.f32 1.442695, %v660_v18  ;;  %v938_v25 = vmul.f32 1.442695, %v928_v21 }
 0x3c2   : > { %v913_v27 = vpop.xlane.xlu0 %912  ;;  %v904_v28 = vpop.xlane.xlu1 %903  ;;  %v688_v11 = vsel %vm358_vm1, %v2260_v29, 0.0 }
 0x3c3   : > { %1836 = vpow2.f32 %v673_v5  ;;  %v929_v12 = vsub.f32 %v2183_v39, %v913_v27  ;;  %v926_v31 = vsub.f32 %v2181_v38, %v904_v28  ;;  %689 = vadd.xlane.f32.xlu0 %v688_v11  ;;  %680 = vadd.xlane.f32.xlu1 %v679_v15 }
 0x3c4   : > { %1838 = vpow2.f32 %v938_v25 }
 0x3c5   : > { %v2268_v34 = vpop.eup %1828  ;;  %v940_v32 = vmul.f32 1.442695, %v929_v12  ;;  %v934_v35 = vmul.f32 1.442695, %v926_v31 }
 0x3c6   : > { %v2270_v36 = vpop.eup %1830  ;;  %v907_v37 = vpop.xlane.xlu0 %906  ;;  %v682_v41 = vsel %vm358_vm1, %v2268_v34, 0.0 }
 0x3c7   : > { %v922_v40 = vpop.xlane.xlu1 %921  ;;  %1840 = vpow2.f32 %v940_v32  ;;  %v927_v43 = vsub.f32 %v2187_v42, %v907_v37  ;;  %683 = vadd.xlane.f32.xlu0 %v682_v41  ;;  %v697_v38 = vsel %vm358_vm1, %v2270_v36, 0.0 }
 0x3c8   : > { %v932_v39 = vsub.f32 %v2193_v46, %v922_v40  ;;  %1842 = vpow2.f32 %v934_v35  ;;  %698 = vadd.xlane.f32.xlu1 %v697_v38 }
 0x3c9   : > { %v2278_v44 = vpop.eup %1832  ;;  %v936_v45 = vmul.f32 1.442695, %v927_v43 }
 0x3ca   : > { %v946_v47 = vmul.f32 1.442695, %v932_v39  ;;  %v2280_v48 = vpop.eup %1834  ;;  %v925_v49 = vpop.xlane.xlu0 %924  ;;  %v700_v53 = vsel %vm358_vm1, %v2278_v44, 0.0 }
 0x3cb   : > { %v916_v52 = vpop.xlane.xlu1 %915  ;;  %1844 = vpow2.f32 %v936_v45  ;;  %v933_v42 = vsub.f32 %v2199_v51, %v925_v49  ;;  %701 = vadd.xlane.f32.xlu0 %v700_v53  ;;  %v691_v55 = vsel %vm358_vm1, %v2280_v48, 0.0 }
 0x3cc   : > { %v930_v46 = vsub.f32 %v2197_v50, %v916_v52  ;;  %1846 = vpow2.f32 %v946_v47  ;;  %692 = vadd.xlane.f32.xlu1 %v691_v55 }
 0x3cd   : > { %v2288_v56 = vpop.eup %1836  ;;  %v948_v14 = vmul.f32 1.442695, %v933_v42 }
 0x3ce   : > { %v942_v57 = vmul.f32 1.442695, %v930_v46  ;;  %v2290_v59 = vpop.eup %1838  ;;  %v919_v17 = vpop.xlane.xlu0 %918  ;;  %v694_v63 = vsel %vm358_vm1, %v2288_v56, 0.0 }
 0x3cf   : > { %v1180_v61 = vpop.xlane.xlu1 %1179  ;;  %1848 = vpow2.f32 %v948_v14  ;;  %v931_v50 = vsub.f32 %v2203_v54, %v919_v17  ;;  %695 = vadd.xlane.f32.xlu0 %v694_v63  ;;  %v956_v0 = vsel %vm358_vm1, %v2290_v59, 0.0 }
 0x3d0   : > { %v1198_v51 = vsub.f32 %v2209_v58, %v1180_v61  ;;  %1850 = vpow2.f32 %v942_v57  ;;  %957 = vadd.xlane.f32.xlu1 %v956_v0 }
 0x3d1   : > { %v2298_v13 = vpop.eup %1840  ;;  %v944_v16 = vmul.f32 1.442695, %v931_v50 }
 0x3d2   : > { %v1208_v24 = vmul.f32 1.442695, %v1198_v51  ;;  %v2300_v18 = vpop.eup %1842  ;;  %v1183_v21 = vpop.xlane.xlu0 %1182  ;;  %v959_v25 = vsel %vm358_vm1, %v2298_v13, 0.0 }
 0x3d3   : > { %v1174_v5 = vpop.xlane.xlu1 %1173  ;;  %1852 = vpow2.f32 %v944_v16  ;;  %960 = vadd.xlane.f32.xlu0 %v959_v25  ;;  %v950_v58 = vsel %vm358_vm1, %v2300_v18, 0.0  ;;  %v1199_v28 = vsub.f32 %v2213_v62, %v1183_v21 }
 0x3d4   : > { %v1196_v54 = vsub.f32 %v2211_v60, %v1174_v5  ;;  %951 = vadd.xlane.f32.xlu1 %v950_v58  ;;  %1854 = vpow2.f32 %v1208_v24 }
 0x3d5   : > { %v2307_v27 = vpop.eup %1844  ;;  %v1210_v37 = vmul.f32 1.442695, %v1199_v28 }
 0x3d6   : > { %v1204_v11 = vmul.f32 1.442695, %v1196_v54  ;;  %v2310_v15 = vpop.eup %1846  ;;  %v1177_v12 = vpop.xlane.xlu0 %1176  ;;  %v953_v32 = vsel %vm358_vm1, %v2307_v27, 0.0 }
 0x3d7   : > { %v1192_v31 = vpop.xlane.xlu1 %1191  ;;  %954 = vadd.xlane.f32.xlu0 %v953_v32  ;;  %v968_v60 = vsel %vm358_vm1, %v2310_v15, 0.0  ;;  %v1197_v40 = vsub.f32 %v2223_v20, %v1177_v12 }
 0x3d8   : > { %969 = vadd.xlane.f32.xlu1 %v968_v60  ;;  %1856 = vpow2.f32 %v1204_v11  ;;  %v1202_v20 = vsub.f32 %v2225_v22, %v1192_v31 }
 0x3d9   : > { %v2316_v35 = vpop.eup %1848  ;;  %1858 = vpow2.f32 %v1210_v37  ;;  %v1206_v49 = vmul.f32 1.442695, %v1197_v40 }
 0x3da   : > { %v2319_v62 = vpop.eup %1850  ;;  %v971_v43 = vsel %vm358_vm1, %v2316_v35, 0.0  ;;  %v1195_v45 = vpop.xlane.xlu0 %1194 }
 0x3db   : > { %v1186_v41 = vpop.xlane.xlu1 %1185  ;;  %972 = vadd.xlane.f32.xlu0 %v971_v43  ;;  %v962_v38 = vsel %vm358_vm1, %v2319_v62, 0.0  ;;  %v1203_v55 = vsub.f32 %v2233_v30, %v1195_v45 }
 0x3dc   : > { %v1200_v39 = vsub.f32 %v2227_v26, %v1186_v41  ;;  %963 = vadd.xlane.f32.xlu1 %v962_v38  ;;  %v1216_v26 = vmul.f32 1.442695, %v1202_v20 }
 0x3dd   : > { %v2326_v47 = vpop.eup %1852  ;;  %v1218_v17 = vmul.f32 1.442695, %v1203_v55 }
 0x3de   : > { %v1212_v52 = vmul.f32 1.442695, %v1200_v39  ;;  %v965_v53 = vsel %vm358_vm1, %v2326_v47, 0.0  ;;  %v2331_v46 = vpop.eup %1854  ;;  %v1189_v14 = vpop.xlane.xlu0 %1188 }
 0x3df   : > { %v725_v42 = vpop.permute.xlu1 %724  ;;  %966 = vadd.xlane.f32.xlu0 %v965_v53  ;;  %v1226_v57 = vsel %vm358_vm1, %v2331_v46, 0.0  ;;  %v1201_v61 = vsub.f32 %v2239_v33, %v1189_v14 }
 0x3e0   : > { %1706 = vmatprep.subr.bf16.mxu0 %v725_v42  ;;  %1860 = vpow2.f32 %v1212_v52 }
 0x3e1   : > { %1707 = vmatpush3.bf16.msra.mxu0 %v725_v42  ;;  %1862 = vpow2.f32 %v1206_v49  ;;  %v1214_v51 = vmul.f32 1.442695, %v1201_v61 }
 0x3e2   : > { %v2336_v22 = vpop.eup %1856  ;;  %1864 = vpow2.f32 %v1216_v26 }
 0x3e3   : > { %1227 = vadd.xlane.f32.xlu0 %v1226_v57  ;;  %v1220_v63 = vsel %vm358_vm1, %v2336_v22, 0.0  ;;  %v2341_v50 = vpop.eup %1858  ;;  %1866 = vpow2.f32 %v1218_v17 }
 0x3e4   : > { %v1229_v0 = vsel %vm358_vm1, %v2341_v50, 0.0  ;;  %1868 = vpow2.f32 %v1214_v51 }
 0x3e7   : > { %1221 = vadd.xlane.f32.xlu0 %v1220_v63 }
 0x3ea   : > { %v2343_v30 = vpop.eup %1860 }
 0x3eb   : > { %v2347_v16 = vpop.eup %1862  ;;  %1230 = vadd.xlane.f32.xlu0 %v1229_v0  ;;  %v1232_v24 = vsel %vm358_vm1, %v2343_v30, 0.0 }
 0x3ec   : > { %1233 = vadd.xlane.f32.xlu1 %v1232_v24  ;;  %v1223_v33 = vsel %vm358_vm1, %v2347_v16, 0.0  ;;  %v2353_v21 = vpop.eup %1864 }
 0x3ed   : > { %v1238_v5 = vsel %vm358_vm1, %v2353_v21, 0.0  ;;  %v2357_v25 = vpop.eup %1866 }
 0x3ee   : > { %v1241_v54 = vsel %vm358_vm1, %v2357_v25, 0.0  ;;  %v2361_v58 = vpop.eup %1868 }
 0x3ef   : > { %1224 = vadd.xlane.f32.xlu0 %v1223_v33  ;;  %v1235_v28 = vsel %vm358_vm1, %v2361_v58, 0.0 }
 0x3f3   : > { %1239 = vadd.xlane.f32.xlu0 %v1238_v5 }
 0x3f7   : > { %1242 = vadd.xlane.f32.xlu0 %v1241_v54 }
 0x3fb   : > { %1236 = vadd.xlane.f32.xlu0 %v1235_v28 }
 0x3fd   : > { %1264 = vrot.lane.b32.xlu1 %v2067_v23, %s1944_s29 }
 0x411   : > { %994 = vrot.lane.b32.xlu0 %v2067_v23, %s1943_s28 }
 0x44c   : > { %v687_v11 = vpop.xlane.xlu1 %686 }
 0x450   : > { %v690_v12 = vpop.xlane.xlu0 %689  ;;  %v681_v31 = vpop.xlane.xlu1 %680 }
 0x451   : > { %1870 = vrcp.f32 %v690_v12 }
 0x452   : > { %1872 = vrcp.f32 %v681_v31 }
 0x453   : > { %1874 = vrcp.f32 %v687_v11 }
 0x454   : > { %v684_v32 = vpop.xlane.xlu0 %683 }
 0x455   : > { %1876 = vrcp.f32 %v684_v32  ;;  %v699_v60 = vpop.xlane.xlu1 %698 }
 0x458   : > { %v702_v37 = vpop.xlane.xlu0 %701 }
 0x459   : > { %v693_v40 = vpop.xlane.xlu1 %692  ;;  %1878 = vrcp.f32 %v702_v37 }
 0x45a   : > { %1880 = vrcp.f32 %v693_v40 }
 0x45b   : > { %v1871_v41 = vpop.eup %1870  ;;  %1882 = vrcp.f32 %v699_v60 }
 0x45c   : > { %v696_v43 = vpop.xlane.xlu0 %695  ;;  %v1873_v39 = vpop.eup %1872  ;;  %v714_v49 = vmul.f32 %v1871_v41, %v2260_v29 }
 0x45d   : > { %1884 = vrcp.f32 %v696_v43  ;;  %v958_v38 = vpop.xlane.xlu1 %957  ;;  %v1875_v23 = vpop.eup %1874  ;;  %v711_v52 = vmul.f32 %v1873_v39, %v2256_v3 }
 0x45e   : > { %v713_v42 = vmul.f32 %v1875_v23, %v2252_v19 }
 0x45f   : > { %v1877_v45 = vpop.eup %1876 }
 0x460   : > { %v961_v20 = vpop.xlane.xlu0 %960  ;;  %v712_v53 = vmul.f32 %v1877_v45, %v2268_v34  ;;  %v720_v14 = vpack.c.bf16 %v714_v49, %v713_v42 }
 0x461   : > { %v952_v26 = vpop.xlane.xlu1 %951 }
 0x462   : > { %v719_v55 = vpack.c.bf16 %v712_v53, %v711_v52  ;;  %1886 = vrcp.f32 %v952_v26 }
 0x463   : > { %v1879_v57 = vpop.eup %1878 }
 0x464   : > { %v955_v17 = vpop.xlane.xlu0 %954  ;;  %1708 = vmatprep.mubr.msk.bf16.mxu0 %vm358_vm1, %v719_v55  ;;  %v1881_v61 = vpop.eup %1880  ;;  %v718_v3 = vmul.f32 %v1879_v57, %v2278_v44 }
 0x465   : > { %1888 = vrcp.f32 %v955_v17  ;;  %1709 = vmatmul.mubr.msk.bf16.vlgmr.msra.gmra.mrb[8].mxu0 %vm358_vm1, %v720_v14  ;;  %v1883_v29 = vpop.eup %1882  ;;  %v715_v34 = vmul.f32 %v1881_v61, %v2280_v48 }
 0x466   : > { %v717_v0 = vmul.f32 %v1883_v29, %v2270_v36  ;;  %1890 = vrcp.f32 %v961_v20 }
 0x467   : > { %v1885_v63 = vpop.eup %1884 }
 0x468   : > { %v973_v51 = vpop.xlane.xlu0 %972  ;;  %v716_v19 = vmul.f32 %v1885_v63, %v2288_v56  ;;  %v722_v33 = vpack.c.bf16 %v718_v3, %v717_v0  ;;  %v970_v56 = vpop.xlane.xlu1 %969 }
 0x46a   : > { %v721_v24 = vpack.c.bf16 %v716_v19, %v715_v34 }
 0x46c   : > { %v967_v5 = vpop.xlane.xlu0 %966  ;;  %1712 = vmatprep.mubr.msk.bf16.mxu0 %vm358_vm1, %v721_v24  ;;  %v1887_v54 = vpop.eup %1886 }
 0x46d   : > { %1713 = vmatmul.mubr.msk.bf16.gmra.mrb[12].mxu0 %vm358_vm1, %v722_v33  ;;  %v982_v12 = vmul.f32 %v1887_v54, %v2300_v18  ;;  %v964_v60 = vpop.xlane.xlu1 %963  ;;  %1892 = vrcp.f32 %v967_v5 }
 0x46e   : > { %1894 = vrcp.f32 %v958_v38 }
 0x46f   : > { %v1889_v28 = vpop.eup %1888  ;;  %1896 = vrcp.f32 %v964_v60 }
 0x470   : > { %v1228_v11 = vpop.xlane.xlu0 %1227  ;;  %v983_v44 = vmul.f32 %v1889_v28, %v2307_v27  ;;  %1898 = vrcp.f32 %v973_v51  ;;  %v1891_v41 = vpop.eup %1890 }
 0x471   : > { %v985_v45 = vmul.f32 %v1891_v41, %v2298_v13 }
 0x472   : > { %v990_v31 = vpack.c.bf16 %v983_v44, %v982_v12 }
 0x474   : > { %v1222_v48 = vpop.xlane.xlu0 %1221  ;;  %1728 = vmatprep.mubr.msk.bf16.mxu0 %vm358_vm1, %v990_v31 }
 0x477   : > { %v1893_v43 = vpop.eup %1892 }
 0x478   : > { %v1231_v36 = vpop.xlane.xlu0 %1230  ;;  %v1895_v39 = vpop.eup %1894  ;;  %v987_v20 = vmul.f32 %v1893_v43, %v2326_v47 }
 0x479   : > { %v1234_v18 = vpop.xlane.xlu1 %1233  ;;  %v1897_v23 = vpop.eup %1896  ;;  %v984_v38 = vmul.f32 %v1895_v39, %v2290_v59 }
 0x47a   : > { %v986_v53 = vmul.f32 %v1897_v23, %v2319_v62  ;;  %v1899_v26 = vpop.eup %1898 }
 0x47b   : > { %v991_v42 = vpack.c.bf16 %v985_v45, %v984_v38  ;;  %v989_v47 = vmul.f32 %v1899_v26, %v2316_v35 }
 0x47c   : > { %v1225_v32 = vpop.xlane.xlu0 %1224  ;;  %v992_v55 = vpack.c.bf16 %v987_v20, %v986_v53 }
 0x47d   : > { %1900 = vrcp.f32 %v1225_v32  ;;  %v1265_v52 = vpop.permute.xlu1 %1264 }
 0x47e   : > { %1902 = vrcp.f32 %v970_v56 }
 0x47f   : > { %1904 = vrcp.f32 %v1222_v48 }
 0x480   : > { %v1240_v37 = vpop.xlane.xlu0 %1239  ;;  %1906 = vrcp.f32 %v1231_v36 }
 0x484   : > { %v1243_v40 = vpop.xlane.xlu0 %1242 }
 0x487   : > { %v1901_v14 = vpop.eup %1900 }
 0x488   : > { %v1237_v27 = vpop.xlane.xlu0 %1236  ;;  %v1903_v13 = vpop.eup %1902  ;;  %v1253_v57 = vmul.f32 %v1901_v14, %v2347_v16 }
 0x489   : > { %1908 = vrcp.f32 %v1237_v27  ;;  %v1905_v59 = vpop.eup %1904  ;;  %v988_v62 = vmul.f32 %v1903_v13, %v2310_v15 }
 0x48a   : > { %1910 = vrcp.f32 %v1228_v11  ;;  %v1252_v17 = vmul.f32 %v1905_v59, %v2336_v22  ;;  %v1907_v29 = vpop.eup %1906 }
 0x48b   : > { %1912 = vrcp.f32 %v1234_v18  ;;  %v993_v61 = vpack.c.bf16 %v989_v47, %v988_v62  ;;  %v1255_v35 = vmul.f32 %v1907_v29, %v2341_v50 }
 0x48c   : > { %v995_v49 = vpop.permute.xlu0 %994  ;;  %1914 = vrcp.f32 %v1243_v40  ;;  %v1260_v63 = vpack.c.bf16 %v1253_v57, %v1252_v17 }
 0x48d   : > { %1726 = vmatprep.subr.bf16.mxu0 %v995_v49  ;;  %1916 = vrcp.f32 %v1240_v37 }
 0x48e   : > { %1727 = vmatpush3.bf16.msra.mxu0 %v995_v49 }
 0x48f   : > { %1746 = vmatprep.subr.bf16.mxu0 %v1265_v52 }
 0x491   : > { %1729 = vmatmul.mubr.msk.bf16.vlgmr.msra.gmra.mrb[16].mxu0 %vm358_vm1, %v991_v42 }
 0x492   : > { %1732 = vmatprep.mubr.msk.bf16.mxu0 %vm358_vm1, %v992_v55  ;;  %1747 = vmatpush3.bf16.msra.mxu0 %v1265_v52 }
 0x493   : > { %v1909_v3 = vpop.eup %1908 }
 0x494   : > { %v1911_v51 = vpop.eup %1910  ;;  %v1257_v16 = vmul.f32 %v1909_v3, %v2361_v58 }
 0x495   : > { %v1913_v34 = vpop.eup %1912  ;;  %v1254_v15 = vmul.f32 %v1911_v51, %v2331_v46 }
 0x496   : > { %v1256_v19 = vmul.f32 %v1913_v34, %v2343_v30  ;;  %v1915_v0 = vpop.eup %1914 }
 0x497   : > { %v1261_v22 = vpack.c.bf16 %v1255_v35, %v1254_v15  ;;  %v1917_v33 = vpop.eup %1916  ;;  %v1259_v5 = vmul.f32 %v1915_v0, %v2357_v25 }
 0x498   : > { %v1262_v24 = vpack.c.bf16 %v1257_v16, %v1256_v19  ;;  %v1258_v54 = vmul.f32 %v1917_v33, %v2353_v21 }
 0x499   : > { %1733 = vmatmul.mubr.msk.bf16.gmra.mrb[20].mxu0 %vm358_vm1, %v993_v61 }
 0x49a   : > { %1748 = vmatprep.mubr.msk.bf16.mxu0 %vm358_vm1, %v1260_v63  ;;  %v1263_v28 = vpack.c.bf16 %v1259_v5, %v1258_v54 }
 0x4a1   : > { %1749 = vmatmul.mubr.msk.bf16.vlgmr.msra.gmra.mrb[24].mxu0 %vm358_vm1, %v1261_v22 }
 0x4a2   : > { %1752 = vmatprep.mubr.msk.bf16.mxu0 %vm358_vm1, %v1262_v24 }
 0x4a9   : > { %1753 = vmatmul.mubr.msk.bf16.gmra.mrb[28].mxu0 %vm358_vm1, %v1263_v28 }
 0x538   : > { %v1710_v50 = vpop.f32.mrb[8].mxu0 }
 0x539   : > { %1356 = vrot.lane.b32.xlu0 %v1710_v50, %s1945_s30  ;;  %v773_v46 = vpop.f32.mrb[9].mxu0 }
 0x53a   : > { %v1711_v30 = vpop.f32.mrb[10].mxu0 }
 0x53b   : > { %v776_v58 = vpop.f32.mrb[11].mxu0 }
 0x53d   : > { %1352 = vrot.lane.b32.xlu0 %v773_v46, %s1945_s30 }
 0x540   : > { %v1714_v11 = vpop.f32.mrb[12].mxu0 }
 0x541   : > { %1358 = vrot.lane.b32.xlu0 %v1711_v30, %s1945_s30  ;;  %v789_v12 = vpop.f32.mrb[13].mxu0 }
 0x542   : > { %v1715_v44 = vpop.f32.mrb[14].mxu0 }
 0x543   : > { %1366 = vrot.lane.b32.xlu1 %v1715_v44, %s1945_s30  ;;  %v792_v31 = vpop.f32.mrb[15].mxu0 }
 0x545   : > { %1354 = vrot.lane.b32.xlu0 %v776_v58, %s1945_s30 }
 0x547   : > { %1362 = vrot.lane.b32.xlu1 %v792_v31, %s1945_s30 }
 0x549   : > { %1364 = vrot.lane.b32.xlu0 %v1714_v11, %s1945_s30 }
 0x54d   : > { %1360 = vrot.lane.b32.xlu0 %v789_v12, %s1945_s30 }
 0x564   : > { %v1730_v21 = vpop.f32.mrb[16].mxu0 }
 0x565   : > { %1388 = vrot.lane.b32.xlu0 %v1730_v21, %s1946_s4  ;;  %v1043_v25 = vpop.f32.mrb[17].mxu0 }
 0x566   : > { %v1731_v48 = vpop.f32.mrb[18].mxu0 }
 0x567   : > { %1390 = vrot.lane.b32.xlu1 %v1731_v48, %s1946_s4  ;;  %v1046_v56 = vpop.f32.mrb[19].mxu0 }
 0x569   : > { %1384 = vrot.lane.b32.xlu0 %v1043_v25, %s1946_s4 }
 0x56b   : > { %1386 = vrot.lane.b32.xlu1 %v1046_v56, %s1946_s4 }
 0x56c   : > { %v1734_v36 = vpop.f32.mrb[20].mxu0 }
 0x56d   : > { %1396 = vrot.lane.b32.xlu0 %v1734_v36, %s1946_s4  ;;  %v1059_v32 = vpop.f32.mrb[21].mxu0 }
 0x56e   : > { %v1735_v60 = vpop.f32.mrb[22].mxu0 }
 0x56f   : > { %1398 = vrot.lane.b32.xlu1 %v1735_v60, %s1946_s4  ;;  %v1062_v37 = vpop.f32.mrb[23].mxu0 }
 0x571   : > { %1392 = vrot.lane.b32.xlu0 %v1059_v32, %s1946_s4 }
 0x573   : > { %1394 = vrot.lane.b32.xlu1 %v1062_v37, %s1946_s4 }
 0x574   : > { %v1750_v40 = vpop.f32.mrb[24].mxu0 }
 0x575   : > { %1420 = vrot.lane.b32.xlu0 %v1750_v40, %s1947_s5  ;;  %v1313_v41 = vpop.f32.mrb[25].mxu0 }
 0x576   : > { %v1751_v18 = vpop.f32.mrb[26].mxu0 }
 0x577   : > { %1422 = vrot.lane.b32.xlu1 %v1751_v18, %s1947_s5  ;;  %v1316_v27 = vpop.f32.mrb[27].mxu0 }
 0x579   : > { %1416 = vrot.lane.b32.xlu0 %v1313_v41, %s1947_s5 }
 0x57b   : > { %1418 = vrot.lane.b32.xlu1 %v1316_v27, %s1947_s5 }
 0x57c   : > { %v1754_v43 = vpop.f32.mrb[28].mxu0 }
 0x57d   : > { %v1329_v39 = vpop.f32.mrb[29].mxu0 }
 0x57e   : > { %1424 = vrot.lane.b32.xlu0 %v1329_v39, %s1947_s5  ;;  %v1755_v23 = vpop.f32.mrb[30].mxu0 }
 0x57f   : > { %v1332_v45 = vpop.f32.mrb[31].mxu0 }
 0x580   : > { %1426 = vrot.lane.b32.xlu1 %v1332_v45, %s1947_s5 }
 0x582   : > { %1428 = vrot.lane.b32.xlu0 %v1754_v43, %s1947_s5 }
 0x584   : > { %1430 = vrot.lane.b32.xlu1 %v1755_v23, %s1947_s5 }
 0x5ab   : > { %v1357_v49 = vpop.permute.xlu0 %1356 }
 0x5ac   : > { %v1442_v29 = vsel %vm269_vm0, %v2131_v1, %v1357_v49 }
 0x5af   : > { %v1353_v20 = vpop.permute.xlu0 %1352 }
 0x5b0   : > { %v1440_v16 = vsel %vm269_vm0, %v2133_v2, %v1353_v20 }
 0x5b3   : > { %v1359_v52 = vpop.permute.xlu0 %1358 }
 0x5b4   : > { %v1443_v51 = vsel %vm269_vm0, %v2135_v4, %v1359_v52 }
 0x5b5   : > { %v1367_v42 = vpop.permute.xlu1 %1366 }
 0x5b7   : > { %v1355_v38 = vpop.permute.xlu0 %1354 }
 0x5b8   : > { %v1441_v4 = vsel %vm269_vm0, %v2137_v6, %v1355_v38 }
 0x5b9   : > { %v1363_v55 = vpop.permute.xlu1 %1362 }
 0x5ba   : > { %v1445_v6 = vsel %vm269_vm0, %v2145_v10, %v1363_v55  ;;  %v1447_v10 = vsel %vm269_vm0, %v2143_v9, %v1367_v42 }
 0x5bb   : > { %v1365_v53 = vpop.permute.xlu0 %1364 }
 0x5bf   : > { %v1361_v26 = vpop.permute.xlu0 %1360 }
 0x5c0   : > { %v1444_v5 = vsel %vm269_vm0, %v2141_v8, %v1361_v26  ;;  %v1446_v8 = vsel %vm269_vm0, %v2139_v7, %v1365_v53 }
 0x5d7   : > { %v1389_v14 = vpop.permute.xlu0 %1388 }
 0x5d8   : > { %v1450_v63 = vsel %vm358_vm1, %v1442_v29, %v1389_v14 }
 0x5d9   : > { %v1391_v13 = vpop.permute.xlu1 %1390 }
 0x5da   : > { %v1451_v1 = vsel %vm358_vm1, %v1443_v51, %v1391_v13 }
 0x5db   : > { %v1385_v59 = vpop.permute.xlu0 %1384 }
 0x5dc   : > { %v1448_v19 = vsel %vm358_vm1, %v1440_v16, %v1385_v59 }
 0x5dd   : > { %v1387_v47 = vpop.permute.xlu1 %1386 }
 0x5de   : > { %v1449_v24 = vsel %vm358_vm1, %v1441_v4, %v1387_v47 }
 0x5df   : > { %v1397_v57 = vpop.permute.xlu0 %1396 }
 0x5e0   : > { %v1454_v11 = vsel %vm358_vm1, %v1446_v8, %v1397_v57 }
 0x5e1   : > { %v1399_v62 = vpop.permute.xlu1 %1398 }
 0x5e2   : > { %v1455_v31 = vsel %vm358_vm1, %v1447_v10, %v1399_v62 }
 0x5e3   : > { %v1393_v17 = vpop.permute.xlu0 %1392 }
 0x5e4   : > { %v1452_v54 = vsel %vm358_vm1, %v1444_v5, %v1393_v17 }
 0x5e5   : > { %v1395_v61 = vpop.permute.xlu1 %1394 }
 0x5e6   : > { %v1453_v46 = vsel %vm358_vm1, %v1445_v6, %v1395_v61 }
 0x5e7   : > { %v1421_v3 = vpop.permute.xlu0 %1420 }
 0x5e8   : > { %v1459_v34 = vsel %vm1456_vm2, %v1450_v63, %v1421_v3 }
 0x5e9   : > { %1468 = vst.msk [vmem:[%s2412_s8 + $0x10] sm:$0xff] %vm1465_vm3, %v1459_v34  ;;  %v1423_v35 = vpop.permute.xlu1 %1422 }
 0x5ea   : > { %v1460_v15 = vsel %vm1456_vm2, %v1451_v1, %v1423_v35 }
 0x5eb   : > { %1469 = vst.msk [vmem:[%s2412_s8 + $0x18] sm:$0xff] %vm1465_vm3, %v1460_v15  ;;  %v1417_v22 = vpop.permute.xlu0 %1416 }
 0x5ec   : > { %v1457_v0 = vsel %vm1456_vm2, %v1448_v19, %v1417_v22 }
 0x5ed   : > { %1466 = vst.msk [vmem:[%s2412_s8] sm:$0xff] %vm1465_vm3, %v1457_v0  ;;  %v1419_v33 = vpop.permute.xlu1 %1418 }
 0x5ee   : > { %v1458_v2 = vsel %vm1456_vm2, %v1449_v24, %v1419_v33 }
 0x5ef   : > { %1467 = vst.msk [vmem:[%s2412_s8 + $0x8] sm:$0xff] %vm1465_vm3, %v1458_v2 }
 0x5f0   : > { %v1425_v28 = vpop.permute.xlu0 %1424 }
 0x5f1   : > { %v1461_v50 = vsel %vm1456_vm2, %v1452_v54, %v1425_v28 }
 0x5f2   : > { %1470 = vst.msk [vmem:[%s2412_s8 + $0x20] sm:$0xff] %vm1465_vm3, %v1461_v50  ;;  %v1427_v30 = vpop.permute.xlu1 %1426 }
 0x5f3   : > { %v1462_v58 = vsel %vm1456_vm2, %v1453_v46, %v1427_v30 }
 0x5f4   : > { %1471 = vst.msk [vmem:[%s2412_s8 + $0x28] sm:$0xff] %vm1465_vm3, %v1462_v58  ;;  %v1429_v12 = vpop.permute.xlu0 %1428 }
 0x5f5   : > { %v1463_v44 = vsel %vm1456_vm2, %v1454_v11, %v1429_v12 }
 0x5f6   : > { %1472 = vst.msk [vmem:[%s2412_s8 + $0x30] sm:$0xff] %vm1465_vm3, %v1463_v44  ;;  %v1431_v21 = vpop.permute.xlu1 %1430 }
 0x5f7   : > { %v1464_v25 = vsel %vm1456_vm2, %v1455_v31, %v1431_v21 }
 0x5f8   : > { %1473 = vst.msk [vmem:[%s2412_s8 + $0x38] sm:$0xff] %vm1465_vm3, %v1464_v25 }
 0x5f9 PF: > { %s13_s14 = sadd.s32 1, %s1940_s14   ;;  %s2473_s12 = smov %s1936_s13 }
 0x5fa   : > { %p10_p5 = scmp.ge.s32.totalorder %s13_s14, 4   ;;  %s2474_s13 = smov %s2476_s15 }
 0x5fc   :  { %12 = sbr.rel (!%p10_p5) target bundleno = 2 (0x2), region = 68 }

// kernel: linformer_lm_forward.33
= control target key start
LH: loop header
LB: loop body
LE: loop exit
PB: predicated region body
PF: predicated region fallthrough
CT: control target
= control target key end

     0   :  { %vm19_vm0 = vcmask 261120   ;;  %v358_v3 = vmov 0.0   ;;  %s592_s1 = inlined_call_operand.vmem [shape: f32[128,32], index: 1, kind: input, shape index: {}]   ;;  %s593_s0 = inlined_call_operand.vmem [shape: f32[128,128], index: 0, kind: input, shape index: {}]   ;;  %s594_s2 = inlined_call_operand.vmem [shape: f32[1,32], index: 2, kind: input, shape index: {}]   ;;  %s595_s3 = inlined_call_operand.vmem [shape: f32[128,32], index: 3, kind: output, shape index: {}]  }
   0x1   :  { %v76_v0 = vld [vmem:[%s592_s1] sm:$0xff]  ;;  %v77_v1 = vld [vmem:[%s592_s1 + $0x8] sm:$0xff]  ;;  %v78_v2 = vld [vmem:[%s592_s1 + $0x10] sm:$0xff]  ;;  %22 = vst.msk [vmem:[#allocation2 + $0x10] sm:$0xff] %vm19_vm0, %v358_v3 }
   0x2   :  { %20 = vst.msk [vmem:[#allocation2] sm:$0xff] %vm19_vm0, %v358_v3  ;;  %21 = vst.msk [vmem:[#allocation2 + $0x8] sm:$0xff] %vm19_vm0, %v358_v3  ;;  %v92_v4 = vpack.c.bf16 %v77_v1, %v76_v0  ;;  %v79_v5 = vld [vmem:[%s592_s1 + $0x18] sm:$0xff]  ;;  %v80_v7 = vld [vmem:[%s592_s1 + $0x20] sm:$0xff] }
   0x3   :  { %23 = vst.msk [vmem:[#allocation2 + $0x18] sm:$0xff] %vm19_vm0, %v358_v3  ;;  %24 = vst.msk [vmem:[#allocation2 + $0x20] sm:$0xff] %vm19_vm0, %v358_v3  ;;  %v93_v6 = vpack.c.bf16 %v79_v5, %v78_v2  ;;  %v81_v8 = vld [vmem:[%s592_s1 + $0x28] sm:$0xff]  ;;  %v82_v10 = vld [vmem:[%s592_s1 + $0x30] sm:$0xff] }
   0x4   :  { %25 = vst.msk [vmem:[#allocation2 + $0x28] sm:$0xff] %vm19_vm0, %v358_v3  ;;  %26 = vst.msk [vmem:[#allocation2 + $0x30] sm:$0xff] %vm19_vm0, %v358_v3  ;;  %309 = vmatprep.subr.bf16.mxu0 %v92_v4  ;;  %341 = vmatprep.subr.bf16.mxu1 %v92_v4  ;;  %v94_v9 = vpack.c.bf16 %v81_v8, %v80_v7  ;;  %v52_v11 = vld [vmem:[%s593_s0] sm:$0xff]  ;;  %v53_v12 = vld [vmem:[%s593_s0 + $0x8] sm:$0xff] }
   0x5   :  { %27 = vst.msk [vmem:[#allocation2 + $0x38] sm:$0xff] %vm19_vm0, %v358_v3  ;;  %28 = vst.msk [vmem:[#allocation2 + $0x40] sm:$0xff] %vm19_vm0, %v358_v3  ;;  %310 = vmatpush3.bf16.msra.mxu0 %v92_v4  ;;  %349 = vmatpush3.bf16.msra.mxu1 %v92_v4  ;;  %v83_v13 = vld [vmem:[%s592_s1 + $0x38] sm:$0xff]  ;;  %v68_v14 = vpack.c.bf16 %v53_v12, %v52_v11  ;;  %v60_v15 = vld [vmem:[%s593_s0 + $0x40] sm:$0xff] }
   0x6   :  { %29 = vst.msk [vmem:[#allocation2 + $0x48] sm:$0xff] %vm19_vm0, %v358_v3  ;;  %30 = vst.msk [vmem:[#allocation2 + $0x50] sm:$0xff] %vm19_vm0, %v358_v3  ;;  %311 = vmatprep.subr.bf16.mxu0 %v93_v6  ;;  %342 = vmatprep.subr.bf16.mxu1 %v93_v6  ;;  %v61_v16 = vld [vmem:[%s593_s0 + $0x48] sm:$0xff]  ;;  %v95_v18 = vpack.c.bf16 %v83_v13, %v82_v10  ;;  %v84_v19 = vld [vmem:[%s592_s1 + $0x40] sm:$0xff] }
   0x7   :  { %31 = vst.msk [vmem:[#allocation2 + $0x58] sm:$0xff] %vm19_vm0, %v358_v3  ;;  %32 = vst.msk [vmem:[#allocation2 + $0x60] sm:$0xff] %vm19_vm0, %v358_v3  ;;  %v72_v17 = vpack.c.bf16 %v61_v16, %v60_v15  ;;  %v85_v20 = vld [vmem:[%s592_s1 + $0x48] sm:$0xff]  ;;  %325 = vmatprep.mubr.bf16.mxu0 %v68_v14  ;;  %v86_v22 = vld [vmem:[%s592_s1 + $0x50] sm:$0xff] }
   0x8   :  { %33 = vst.msk [vmem:[#allocation2 + $0x68] sm:$0xff] %vm19_vm0, %v358_v3  ;;  %34 = vst.msk [vmem:[#allocation2 + $0x70] sm:$0xff] %vm19_vm0, %v358_v3  ;;  %v96_v21 = vpack.c.bf16 %v85_v20, %v84_v19  ;;  %v87_v23 = vld [vmem:[%s592_s1 + $0x58] sm:$0xff]  ;;  %v88_v25 = vld [vmem:[%s592_s1 + $0x60] sm:$0xff] }
   0x9   :  { %35 = vst.msk [vmem:[#allocation2 + $0x78] sm:$0xff] %vm19_vm0, %v358_v3  ;;  %312 = vmatpush3.bf16.msra.mxu0 %v93_v6  ;;  %350 = vmatpush3.bf16.msra.mxu1 %v93_v6  ;;  %v97_v24 = vpack.c.bf16 %v87_v23, %v86_v22  ;;  %v89_v26 = vld [vmem:[%s592_s1 + $0x68] sm:$0xff]  ;;  %v90_v28 = vld [vmem:[%s592_s1 + $0x70] sm:$0xff]  ;;  %v91_v29 = vld [vmem:[%s592_s1 + $0x78] sm:$0xff] }
   0xa   :  { %313 = vmatprep.subr.bf16.mxu0 %v94_v9  ;;  %343 = vmatprep.subr.bf16.mxu1 %v94_v9  ;;  %v98_v27 = vpack.c.bf16 %v89_v26, %v88_v25  ;;  %v99_v30 = vpack.c.bf16 %v91_v29, %v90_v28  ;;  %v54_v31 = vld [vmem:[%s593_s0 + $0x10] sm:$0xff]  ;;  %v55_v32 = vld [vmem:[%s593_s0 + $0x18] sm:$0xff]  ;;  %v56_v35 = vld [vmem:[%s593_s0 + $0x20] sm:$0xff] }
   0xb   :  { %333 = vmatprep.mubr.bf16.mxu1 %v72_v17  ;;  %v62_v33 = vld [vmem:[%s593_s0 + $0x50] sm:$0xff]  ;;  %v63_v34 = vld [vmem:[%s593_s0 + $0x58] sm:$0xff]  ;;  %v57_v36 = vld [vmem:[%s593_s0 + $0x28] sm:$0xff]  ;;  %v69_v39 = vpack.c.bf16 %v55_v32, %v54_v31 }
   0xc   :  { %v64_v37 = vld [vmem:[%s593_s0 + $0x60] sm:$0xff]  ;;  %v65_v38 = vld [vmem:[%s593_s0 + $0x68] sm:$0xff]  ;;  %v73_v40 = vpack.c.bf16 %v63_v34, %v62_v33  ;;  %v70_v41 = vpack.c.bf16 %v57_v36, %v56_v35  ;;  %v58_v43 = vld [vmem:[%s593_s0 + $0x30] sm:$0xff] }
   0xd   :  { %314 = vmatpush3.bf16.msra.mxu0 %v94_v9  ;;  %351 = vmatpush3.bf16.msra.mxu1 %v94_v9  ;;  %v74_v42 = vpack.c.bf16 %v65_v38, %v64_v37  ;;  %v59_v44 = vld [vmem:[%s593_s0 + $0x38] sm:$0xff]  ;;  %v66_v45 = vld [vmem:[%s593_s0 + $0x70] sm:$0xff]  ;;  %v36_v51 = vld [vmem:[#allocation2] sm:$0xff] }
   0xe   :  { %315 = vmatprep.subr.bf16.mxu0 %v95_v18  ;;  %344 = vmatprep.subr.bf16.mxu1 %v95_v18  ;;  %v67_v46 = vld [vmem:[%s593_s0 + $0x78] sm:$0xff]  ;;  %v71_v47 = vpack.c.bf16 %v59_v44, %v58_v43  ;;  %v38_v49 = vld [vmem:[#allocation2 + $0x10] sm:$0xff]  ;;  %v44_v52 = vld [vmem:[#allocation2 + $0x40] sm:$0xff] }
   0xf   :  { %v75_v48 = vpack.c.bf16 %v67_v46, %v66_v45  ;;  %v46_v50 = vld [vmem:[#allocation2 + $0x50] sm:$0xff]  ;;  %v39_v55 = vld [vmem:[#allocation2 + $0x18] sm:$0xff]  ;;  %v37_v61 = vld [vmem:[#allocation2 + $0x8] sm:$0xff] }
  0x10   :  { %v47_v56 = vld [vmem:[#allocation2 + $0x58] sm:$0xff]  ;;  %v45_v62 = vld [vmem:[#allocation2 + $0x48] sm:$0xff]  ;;  %v42_v9 = vld [vmem:[#allocation2 + $0x30] sm:$0xff] }
  0x11   :  { %316 = vmatpush3.bf16.msra.mxu0 %v95_v18  ;;  %352 = vmatpush3.bf16.msra.mxu1 %v95_v18  ;;  %v50_v10 = vld [vmem:[#allocation2 + $0x70] sm:$0xff]  ;;  %v40_v11 = vld [vmem:[#allocation2 + $0x20] sm:$0xff]  ;;  %v43_v16 = vld [vmem:[#allocation2 + $0x38] sm:$0xff] }
  0x12   :  { %317 = vmatprep.subr.bf16.mxu0 %v96_v21  ;;  %345 = vmatprep.subr.bf16.mxu1 %v96_v21  ;;  %v48_v12 = vld [vmem:[#allocation2 + $0x60] sm:$0xff]  ;;  %v51_v17 = vld [vmem:[#allocation2 + $0x78] sm:$0xff]  ;;  %v41_v22 = vld [vmem:[#allocation2 + $0x28] sm:$0xff] }
  0x13   :  { %v502_v13 = vld [vmem:[%s594_s2] ss:$0 sm:$0xff]  ;;  %v49_v23 = vld [vmem:[#allocation2 + $0x68] sm:$0xff] }
  0x15   :  { %318 = vmatpush3.bf16.msra.mxu0 %v96_v21  ;;  %353 = vmatpush3.bf16.msra.mxu1 %v96_v21 }
  0x16   :  { %319 = vmatprep.subr.bf16.mxu0 %v97_v24  ;;  %346 = vmatprep.subr.bf16.mxu1 %v97_v24 }
  0x19   :  { %320 = vmatpush3.bf16.msra.mxu0 %v97_v24  ;;  %354 = vmatpush3.bf16.msra.mxu1 %v97_v24 }
  0x1a   :  { %321 = vmatprep.subr.bf16.mxu0 %v98_v27  ;;  %347 = vmatprep.subr.bf16.mxu1 %v98_v27 }
  0x1d   :  { %322 = vmatpush3.bf16.msra.mxu0 %v98_v27  ;;  %355 = vmatpush3.bf16.msra.mxu1 %v98_v27 }
  0x1e   :  { %323 = vmatprep.subr.bf16.mxu0 %v99_v30  ;;  %348 = vmatprep.subr.bf16.mxu1 %v99_v30 }
  0x21   :  { %324 = vmatpush3.bf16.msra.mxu0 %v99_v30  ;;  %356 = vmatpush3.bf16.msra.mxu1 %v99_v30 }
  0x24   :  { %326 = vmatmul.mubr.bf16.vlgmr.msra.gmra.mrb[0].mxu0 %v69_v39  ;;  %334 = vmatmul.mubr.bf16.vlgmr.msra.gmra.mrb[0].mxu1 %v73_v40 }
  0x25   :  { %329 = vmatprep.mubr.bf16.mxu0 %v70_v41  ;;  %337 = vmatprep.mubr.bf16.mxu1 %v74_v42 }
  0x2c   :  { %330 = vmatmul.mubr.bf16.gmra.mrb[4].mxu0 %v71_v47  ;;  %338 = vmatmul.mubr.bf16.gmra.mrb[4].mxu1 %v75_v48 }
  0xf7   :  { %v327_v53 = vpop.f32.mrb[0].mxu0  ;;  %v335_v54 = vpop.f32.mrb[0].mxu1 }
  0xf8   :  { %v199_v57 = vadd.f32 %v327_v53, %v38_v49  ;;  %v207_v58 = vadd.f32 %v335_v54, %v46_v50  ;;  %v134_v59 = vpop.f32.mrb[1].mxu0  ;;  %v166_v60 = vpop.f32.mrb[1].mxu1 }
  0xf9   :  { %v197_v63 = vadd.f32 %v134_v59, %v36_v51  ;;  %v205_v0 = vadd.f32 %v166_v60, %v44_v52  ;;  %v328_v1 = vpop.f32.mrb[2].mxu0  ;;  %v336_v2 = vpop.f32.mrb[2].mxu1 }
  0xfa   :  { %216 = vst.msk [vmem:[#allocation2 + $0x10] sm:$0xff] %vm19_vm0, %v199_v57  ;;  %224 = vst.msk [vmem:[#allocation2 + $0x50] sm:$0xff] %vm19_vm0, %v207_v58  ;;  %v200_v3 = vadd.f32 %v328_v1, %v39_v55  ;;  %v208_v4 = vadd.f32 %v336_v2, %v47_v56  ;;  %v137_v5 = vpop.f32.mrb[3].mxu0  ;;  %v169_v6 = vpop.f32.mrb[3].mxu1 }
  0xfb   :  { %214 = vst.msk [vmem:[#allocation2] sm:$0xff] %vm19_vm0, %v197_v63  ;;  %222 = vst.msk [vmem:[#allocation2 + $0x40] sm:$0xff] %vm19_vm0, %v205_v0  ;;  %v198_v7 = vadd.f32 %v137_v5, %v37_v61  ;;  %v206_v8 = vadd.f32 %v169_v6, %v45_v62 }
  0xfc   :  { %217 = vst.msk [vmem:[#allocation2 + $0x18] sm:$0xff] %vm19_vm0, %v200_v3  ;;  %225 = vst.msk [vmem:[#allocation2 + $0x58] sm:$0xff] %vm19_vm0, %v208_v4 }
  0xfd   :  { %215 = vst.msk [vmem:[#allocation2 + $0x8] sm:$0xff] %vm19_vm0, %v198_v7  ;;  %223 = vst.msk [vmem:[#allocation2 + $0x48] sm:$0xff] %vm19_vm0, %v206_v8 }
  0xff   :  { %v331_v14 = vpop.f32.mrb[4].mxu0  ;;  %v339_v15 = vpop.f32.mrb[4].mxu1 }
 0x100   :  { %v203_v18 = vadd.f32 %v331_v14, %v42_v9  ;;  %v211_v19 = vadd.f32 %v339_v15, %v50_v10  ;;  %v150_v20 = vpop.f32.mrb[5].mxu0  ;;  %v182_v21 = vpop.f32.mrb[5].mxu1 }
 0x101   :  { %v235_v24 = vld [vmem:[#allocation2 + $0x10] sm:$0xff]  ;;  %v201_v26 = vadd.f32 %v150_v20, %v40_v11  ;;  %v209_v27 = vadd.f32 %v182_v21, %v48_v12  ;;  %v332_v28 = vpop.f32.mrb[6].mxu0  ;;  %v340_v29 = vpop.f32.mrb[6].mxu1 }
 0x102   :  { %v243_v25 = vld [vmem:[#allocation2 + $0x50] sm:$0xff]  ;;  %v258_v30 = vadd.f32 %v502_v13, %v235_v24  ;;  %v233_v32 = vld [vmem:[#allocation2] sm:$0xff]  ;;  %220 = vst.msk [vmem:[#allocation2 + $0x30] sm:$0xff] %vm19_vm0, %v203_v18  ;;  %228 = vst.msk [vmem:[#allocation2 + $0x70] sm:$0xff] %vm19_vm0, %v211_v19  ;;  %v204_v34 = vadd.f32 %v332_v28, %v43_v16  ;;  %v212_v35 = vadd.f32 %v340_v29, %v51_v17  ;;  %v153_v36 = vpop.f32.mrb[7].mxu0  ;;  %v185_v37 = vpop.f32.mrb[7].mxu1 }
 0x103   :  { %v266_v31 = vadd.f32 %v502_v13, %v243_v25  ;;  %v241_v33 = vld [vmem:[#allocation2 + $0x40] sm:$0xff]  ;;  %v256_v38 = vadd.f32 %v502_v13, %v233_v32  ;;  %v236_v40 = vld [vmem:[#allocation2 + $0x18] sm:$0xff]  ;;  %218 = vst.msk [vmem:[#allocation2 + $0x20] sm:$0xff] %vm19_vm0, %v201_v26  ;;  %226 = vst.msk [vmem:[#allocation2 + $0x60] sm:$0xff] %vm19_vm0, %v209_v27  ;;  %v202_v42 = vadd.f32 %v153_v36, %v41_v22 }
 0x104   :  { %v264_v39 = vadd.f32 %v502_v13, %v241_v33  ;;  %v244_v41 = vld [vmem:[#allocation2 + $0x58] sm:$0xff]  ;;  %v210_v43 = vadd.f32 %v185_v37, %v49_v23  ;;  %274 = vst.msk [vmem:[%s595_s3 + $0x10] sm:$0xff] %vm19_vm0, %v258_v30  ;;  %v259_v44 = vadd.f32 %v502_v13, %v236_v40  ;;  %v234_v46 = vld [vmem:[#allocation2 + $0x8] sm:$0xff]  ;;  %221 = vst.msk [vmem:[#allocation2 + $0x38] sm:$0xff] %vm19_vm0, %v204_v34 }
 0x105   :  { %282 = vst.msk [vmem:[%s595_s3 + $0x50] sm:$0xff] %vm19_vm0, %v266_v31  ;;  %v267_v45 = vadd.f32 %v502_v13, %v244_v41  ;;  %v242_v47 = vld [vmem:[#allocation2 + $0x48] sm:$0xff]  ;;  %229 = vst.msk [vmem:[#allocation2 + $0x78] sm:$0xff] %vm19_vm0, %v212_v35  ;;  %v257_v48 = vadd.f32 %v502_v13, %v234_v46 }
 0x106   :  { %272 = vst.msk [vmem:[%s595_s3] sm:$0xff] %vm19_vm0, %v256_v38  ;;  %280 = vst.msk [vmem:[%s595_s3 + $0x40] sm:$0xff] %vm19_vm0, %v264_v39  ;;  %v265_v49 = vadd.f32 %v502_v13, %v242_v47 }
 0x107   :  { %219 = vst.msk [vmem:[#allocation2 + $0x28] sm:$0xff] %vm19_vm0, %v202_v42  ;;  %227 = vst.msk [vmem:[#allocation2 + $0x68] sm:$0xff] %vm19_vm0, %v210_v43 }
 0x108   :  { %275 = vst.msk [vmem:[%s595_s3 + $0x18] sm:$0xff] %vm19_vm0, %v259_v44  ;;  %283 = vst.msk [vmem:[%s595_s3 + $0x58] sm:$0xff] %vm19_vm0, %v267_v45 }
 0x109   :  { %273 = vst.msk [vmem:[%s595_s3 + $0x8] sm:$0xff] %vm19_vm0, %v257_v48  ;;  %281 = vst.msk [vmem:[%s595_s3 + $0x48] sm:$0xff] %vm19_vm0, %v265_v49  ;;  %v239_v50 = vld [vmem:[#allocation2 + $0x30] sm:$0xff] }
 0x10a   :  { %v247_v51 = vld [vmem:[#allocation2 + $0x70] sm:$0xff]  ;;  %v262_v52 = vadd.f32 %v502_v13, %v239_v50  ;;  %v237_v54 = vld [vmem:[#allocation2 + $0x20] sm:$0xff] }
 0x10b   :  { %v270_v53 = vadd.f32 %v502_v13, %v247_v51  ;;  %v245_v55 = vld [vmem:[#allocation2 + $0x60] sm:$0xff]  ;;  %v260_v56 = vadd.f32 %v502_v13, %v237_v54  ;;  %v240_v58 = vld [vmem:[#allocation2 + $0x38] sm:$0xff] }
 0x10c   :  { %v268_v57 = vadd.f32 %v502_v13, %v245_v55  ;;  %v248_v59 = vld [vmem:[#allocation2 + $0x78] sm:$0xff]  ;;  %278 = vst.msk [vmem:[%s595_s3 + $0x30] sm:$0xff] %vm19_vm0, %v262_v52  ;;  %v263_v60 = vadd.f32 %v502_v13, %v240_v58 }
 0x10d   :  { %286 = vst.msk [vmem:[%s595_s3 + $0x70] sm:$0xff] %vm19_vm0, %v270_v53  ;;  %v271_v61 = vadd.f32 %v502_v13, %v248_v59  ;;  %276 = vst.msk [vmem:[%s595_s3 + $0x20] sm:$0xff] %vm19_vm0, %v260_v56 }
 0x10e   :  { %v238_v62 = vld [vmem:[#allocation2 + $0x28] sm:$0xff]  ;;  %284 = vst.msk [vmem:[%s595_s3 + $0x60] sm:$0xff] %vm19_vm0, %v268_v57  ;;  %279 = vst.msk [vmem:[%s595_s3 + $0x38] sm:$0xff] %vm19_vm0, %v263_v60 }
 0x10f   :  { %v246_v63 = vld [vmem:[#allocation2 + $0x68] sm:$0xff]  ;;  %v261_v0 = vadd.f32 %v502_v13, %v238_v62  ;;  %287 = vst.msk [vmem:[%s595_s3 + $0x78] sm:$0xff] %vm19_vm0, %v271_v61 }
 0x110   :  { %v269_v1 = vadd.f32 %v502_v13, %v246_v63 }
 0x111   :  { %277 = vst.msk [vmem:[%s595_s3 + $0x28] sm:$0xff] %vm19_vm0, %v261_v0 }
 0x112   :  { %285 = vst.msk [vmem:[%s595_s3 + $0x68] sm:$0xff] %vm19_vm0, %v269_v1 }

// kernel: linformer_lm_forward.32
= control target key start
LH: loop header
LB: loop body
LE: loop exit
PB: predicated region body
PF: predicated region fallthrough
CT: control target
= control target key end

     0   :  { %vm81_vm0 = vcmask 261120   ;;  %s769_s1 = inlined_call_operand.vmem [shape: f32[32,128], index: 1, kind: input, shape index: {}]   ;;  %s770_s0 = inlined_call_operand.vmem [shape: f32[128,32], index: 0, kind: input, shape index: {}]   ;;  %s771_s2 = inlined_call_operand.vmem [shape: f32[1,128], index: 2, kind: input, shape index: {}]   ;;  %s772_s3 = inlined_call_operand.vmem [shape: f32[128,128], index: 3, kind: output, shape index: {}]  }
   0x1   :  { %v75_v0 = vld [vmem:[%s769_s1] sm:$0xff]  ;;  %v76_v1 = vld [vmem:[%s769_s1 + $0x8] sm:$0xff]  ;;  %v77_v2 = vld [vmem:[%s769_s1 + $0x10] sm:$0xff] }
   0x2   :  { %v79_v3 = vpack.c.bf16 %v76_v1, %v75_v0  ;;  %v78_v4 = vld [vmem:[%s769_s1 + $0x18] sm:$0xff]  ;;  %v51_v5 = vld [vmem:[%s770_s0] sm:$0xff]  ;;  %v52_v6 = vld [vmem:[%s770_s0 + $0x8] sm:$0xff] }
   0x3   :  { %v80_v7 = vpack.c.bf16 %v78_v4, %v77_v2  ;;  %v67_v8 = vpack.c.bf16 %v52_v6, %v51_v5  ;;  %v59_v9 = vld [vmem:[%s770_s0 + $0x40] sm:$0xff]  ;;  %v60_v10 = vld [vmem:[%s770_s0 + $0x48] sm:$0xff]  ;;  %v53_v12 = vld [vmem:[%s770_s0 + $0x10] sm:$0xff] }
   0x4   :  { %460 = vmatprep.subr.bf16.mxu0 %v79_v3  ;;  %480 = vmatprep.subr.bf16.mxu1 %v79_v3  ;;  %v71_v11 = vpack.c.bf16 %v60_v10, %v59_v9  ;;  %v54_v13 = vld [vmem:[%s770_s0 + $0x18] sm:$0xff]  ;;  %v61_v14 = vld [vmem:[%s770_s0 + $0x50] sm:$0xff]  ;;  %v55_v16 = vld [vmem:[%s770_s0 + $0x20] sm:$0xff] }
   0x5   :  { %461 = vmatpush3.bf16.msra.mxu0 %v79_v3  ;;  %482 = vmatpush3.bf16.msra.mxu1 %v79_v3  ;;  %v62_v15 = vld [vmem:[%s770_s0 + $0x58] sm:$0xff]  ;;  %v56_v17 = vld [vmem:[%s770_s0 + $0x28] sm:$0xff]  ;;  %v63_v18 = vld [vmem:[%s770_s0 + $0x60] sm:$0xff]  ;;  %v68_v20 = vpack.c.bf16 %v54_v13, %v53_v12 }
   0x6   :  { %462 = vmatprep.subr.bf16.mxu0 %v80_v7  ;;  %481 = vmatprep.subr.bf16.mxu1 %v80_v7  ;;  %v64_v19 = vld [vmem:[%s770_s0 + $0x68] sm:$0xff]  ;;  %v72_v21 = vpack.c.bf16 %v62_v15, %v61_v14  ;;  %v69_v22 = vpack.c.bf16 %v56_v17, %v55_v16  ;;  %v57_v24 = vld [vmem:[%s770_s0 + $0x30] sm:$0xff]  ;;  %v58_v25 = vld [vmem:[%s770_s0 + $0x38] sm:$0xff] }
   0x7   :  { %464 = vmatprep.mubr.msk.bf16.mxu0 %vm81_vm0, %v67_v8  ;;  %472 = vmatprep.mubr.msk.bf16.mxu1 %vm81_vm0, %v71_v11  ;;  %v73_v23 = vpack.c.bf16 %v64_v19, %v63_v18  ;;  %v65_v26 = vld [vmem:[%s770_s0 + $0x70] sm:$0xff]  ;;  %v66_v27 = vld [vmem:[%s770_s0 + $0x78] sm:$0xff]  ;;  %v70_v28 = vpack.c.bf16 %v58_v25, %v57_v24  ;;  %v607_v30 = vld [vmem:[%s771_s2] ss:$0 sm:$0xff] }
   0x8   :  { %v74_v29 = vpack.c.bf16 %v66_v27, %v65_v26 }
   0x9   :  { %463 = vmatpush3.bf16.msra.mxu0 %v80_v7  ;;  %483 = vmatpush3.bf16.msra.mxu1 %v80_v7 }
   0xc   :  { %465 = vmatmul.mubr.msk.bf16.vlgmr.msra.gmra.mrb[0].mxu0 %vm81_vm0, %v68_v20  ;;  %473 = vmatmul.mubr.msk.bf16.vlgmr.msra.gmra.mrb[0].mxu1 %vm81_vm0, %v72_v21 }
   0xd   :  { %468 = vmatprep.mubr.msk.bf16.mxu0 %vm81_vm0, %v69_v22  ;;  %476 = vmatprep.mubr.msk.bf16.mxu1 %vm81_vm0, %v73_v23 }
  0x14   :  { %469 = vmatmul.mubr.msk.bf16.gmra.mrb[4].mxu0 %vm81_vm0, %v70_v28  ;;  %477 = vmatmul.mubr.msk.bf16.gmra.mrb[4].mxu1 %vm81_vm0, %v74_v29 }
  0xdf   :  { %v466_v31 = vpop.f32.mrb[0].mxu0  ;;  %v474_v32 = vpop.f32.mrb[0].mxu1 }
  0xe0   :  { %v263_v33 = vadd.f32 %v466_v31, %v607_v30  ;;  %v271_v34 = vadd.f32 %v474_v32, %v607_v30  ;;  %v140_v35 = vpop.f32.mrb[1].mxu0  ;;  %v172_v36 = vpop.f32.mrb[1].mxu1 }
  0xe1   :  { %v261_v37 = vadd.f32 %v607_v30, %v140_v35  ;;  %v613_v38 = vadd.f32 %v607_v30, %v172_v36  ;;  %v467_v39 = vpop.f32.mrb[2].mxu0  ;;  %v475_v40 = vpop.f32.mrb[2].mxu1 }
  0xe2   :  { %v295_v41 = vmul.f32 0.044715, %v263_v33  ;;  %v303_v42 = vmul.f32 0.044715, %v271_v34  ;;  %v617_v47 = vadd.f32 %v467_v39, %v607_v30  ;;  %v620_v48 = vadd.f32 %v475_v40, %v607_v30  ;;  %v143_v49 = vpop.f32.mrb[3].mxu0  ;;  %v175_v50 = vpop.f32.mrb[3].mxu1 }
  0xe3   :  { %v293_v43 = vmul.f32 0.044715, %v261_v37  ;;  %v301_v44 = vmul.f32 0.044715, %v613_v38  ;;  %v624_v53 = vadd.f32 %v607_v30, %v143_v49  ;;  %v631_v1 = vadd.f32 %v607_v30, %v175_v50 }
  0xe4   :  { %v311_v45 = vmul.f32 %v295_v41, %v263_v33  ;;  %v319_v46 = vmul.f32 %v303_v42, %v271_v34  ;;  %v296_v56 = vmul.f32 0.044715, %v617_v47  ;;  %v304_v59 = vmul.f32 0.044715, %v620_v48 }
  0xe5   :  { %v309_v51 = vmul.f32 %v293_v43, %v261_v37  ;;  %v317_v52 = vmul.f32 %v301_v44, %v613_v38  ;;  %v294_v7 = vmul.f32 0.044715, %v624_v53  ;;  %v638_v10 = vmul.f32 0.5, %v263_v33 }
  0xe6   :  { %v327_v54 = vmul.f32 %v311_v45, %v263_v33  ;;  %v335_v55 = vmul.f32 %v319_v46, %v271_v34  ;;  %v312_v0 = vmul.f32 %v296_v56, %v617_v47  ;;  %v320_v6 = vmul.f32 %v304_v59, %v620_v48 }
  0xe7   :  { %v325_v57 = vmul.f32 %v309_v51, %v261_v37  ;;  %v333_v58 = vmul.f32 %v317_v52, %v613_v38  ;;  %v470_v60 = vpop.f32.mrb[4].mxu0  ;;  %v478_v61 = vpop.f32.mrb[4].mxu1  ;;  %v310_v18 = vmul.f32 %v294_v7, %v624_v53  ;;  %v302_v21 = vmul.f32 0.044715, %v631_v1 }
  0xe8   :  { %v343_v62 = vadd.f32 %v327_v54, %v263_v33  ;;  %v351_v63 = vadd.f32 %v335_v55, %v271_v34  ;;  %v156_v2 = vpop.f32.mrb[5].mxu0  ;;  %v188_v3 = vpop.f32.mrb[5].mxu1  ;;  %v328_v13 = vmul.f32 %v312_v0, %v617_v47  ;;  %v336_v17 = vmul.f32 %v320_v6, %v620_v48 }
  0xe9   :  { %v341_v4 = vadd.f32 %v325_v57, %v261_v37  ;;  %v349_v5 = vadd.f32 %v333_v58, %v613_v38  ;;  %v471_v8 = vpop.f32.mrb[6].mxu0  ;;  %v636_v9 = vpop.f32.mrb[6].mxu1  ;;  %v650_v22 = vadd.f32 %v470_v60, %v607_v30  ;;  %v326_v24 = vmul.f32 %v310_v18, %v624_v53 }
  0xea   :  { %v359_v11 = vmul.f32 0.7978846, %v343_v62  ;;  %v367_v12 = vmul.f32 0.7978846, %v351_v63  ;;  %v641_v14 = vpop.f32.mrb[7].mxu0  ;;  %v645_v19 = vpop.f32.mrb[7].mxu1  ;;  %v344_v20 = vadd.f32 %v328_v13, %v617_v47  ;;  %v352_v23 = vadd.f32 %v336_v17, %v620_v48 }
  0xeb   :  { %v357_v15 = vmul.f32 0.7978846, %v341_v4  ;;  %v365_v16 = vmul.f32 0.7978846, %v349_v5  ;;  %v655_v25 = vadd.f32 %v478_v61, %v607_v30  ;;  %v287_v26 = vmul.f32 0.5, %v271_v34 }
  0xec   :  { %484 = vtanh.f32 %v359_v11  ;;  %v360_v27 = vmul.f32 0.7978846, %v344_v20  ;;  %v318_v28 = vmul.f32 %v302_v21, %v631_v1  ;;  %v368_v29 = vmul.f32 0.7978846, %v352_v23 }
  0xed   :  { %486 = vtanh.f32 %v367_v12  ;;  %v342_v31 = vadd.f32 %v326_v24, %v624_v53  ;;  %v299_v32 = vmul.f32 0.044715, %v650_v22  ;;  %v277_v33 = vmul.f32 0.5, %v261_v37 }
  0xee   :  { %488 = vtanh.f32 %v357_v15  ;;  %v334_v35 = vmul.f32 %v318_v28, %v631_v1  ;;  %v307_v36 = vmul.f32 0.044715, %v655_v25  ;;  %v664_v40 = vadd.f32 %v607_v30, %v156_v2 }
  0xef   :  { %490 = vtanh.f32 %v365_v16  ;;  %v358_v39 = vmul.f32 0.7978846, %v342_v31  ;;  %v315_v34 = vmul.f32 %v299_v32, %v650_v22  ;;  %v669_v43 = vadd.f32 %v607_v30, %v188_v3 }
  0xf0   :  { %492 = vtanh.f32 %v360_v27  ;;  %v350_v41 = vadd.f32 %v334_v35, %v631_v1  ;;  %v323_v42 = vmul.f32 %v307_v36, %v655_v25  ;;  %v672_v37 = vadd.f32 %v471_v8, %v607_v30 }
  0xf1   :  { %494 = vtanh.f32 %v368_v29  ;;  %v285_v44 = vmul.f32 0.5, %v613_v38  ;;  %v331_v45 = vmul.f32 %v315_v34, %v650_v22  ;;  %v297_v46 = vmul.f32 0.044715, %v664_v40 }
  0xf2   :  { %496 = vtanh.f32 %v358_v39  ;;  %v280_v49 = vmul.f32 0.5, %v617_v47  ;;  %v366_v50 = vmul.f32 0.7978846, %v350_v41  ;;  %v339_v51 = vmul.f32 %v323_v42, %v655_v25 }
  0xf3   :  { %v305_v52 = vmul.f32 0.044715, %v669_v43  ;;  %v288_v54 = vmul.f32 0.5, %v620_v48  ;;  %v347_v55 = vadd.f32 %v331_v45, %v650_v22  ;;  %v313_v56 = vmul.f32 %v297_v46, %v664_v40 }
  0xf4   :  { %v300_v38 = vmul.f32 0.044715, %v672_v37  ;;  %v278_v58 = vmul.f32 0.5, %v624_v53  ;;  %498 = vtanh.f32 %v366_v50  ;;  %v355_v59 = vadd.f32 %v339_v51, %v655_v25 }
  0xf5   :  { %v321_v47 = vmul.f32 %v305_v52, %v669_v43  ;;  %v363_v62 = vmul.f32 0.7978846, %v347_v55  ;;  %v329_v63 = vmul.f32 %v313_v56, %v664_v40  ;;  %v692_v53 = vadd.f32 %v636_v9, %v607_v30 }
  0xf6   :  { %v485_v57 = vpop.eup %484  ;;  %v316_v48 = vmul.f32 %v300_v38, %v672_v37  ;;  %v371_v3 = vmul.f32 0.7978846, %v355_v59  ;;  %v711_v29 = vadd.f32 %v607_v30, %v641_v14  ;;  %v274_v14 = vadd.f32 %v607_v30, %v645_v19 }
  0xf7   :  { %v487_v60 = vpop.eup %486  ;;  %v391_v61 = vadd.f32 1.0, %v485_v57  ;;  %v337_v4 = vmul.f32 %v321_v47, %v669_v43  ;;  %500 = vtanh.f32 %v363_v62  ;;  %v345_v8 = vadd.f32 %v329_v63, %v664_v40 }
  0xf8   :  { %v489_v0 = vpop.eup %488  ;;  %v399_v2 = vadd.f32 1.0, %v487_v60  ;;  %502 = vtanh.f32 %v371_v3  ;;  %v308_v24 = vmul.f32 0.044715, %v692_v53  ;;  %v298_v36 = vmul.f32 0.044715, %v711_v29 }
  0xf9   :  { %v491_v5 = vpop.eup %490  ;;  %v407_v6 = vmul.f32 %v391_v61, %v638_v10  ;;  %v389_v7 = vadd.f32 1.0, %v489_v0  ;;  %v353_v15 = vadd.f32 %v337_v4, %v669_v43  ;;  %v361_v18 = vmul.f32 0.7978846, %v345_v8 }
  0xfa   :  { %v493_v11 = vpop.eup %492  ;;  %v415_v12 = vmul.f32 %v399_v2, %v287_v26  ;;  %v397_v13 = vadd.f32 1.0, %v491_v5  ;;  %v332_v10 = vmul.f32 %v316_v48, %v672_v37  ;;  %v286_v42 = vmul.f32 0.5, %v631_v1 }
  0xfb   :  { %v495_v16 = vpop.eup %494  ;;  %423 = vst [vmem:[%s772_s3 + $0x10] sm:$0xff] %v407_v6  ;;  %v405_v9 = vmul.f32 %v389_v7, %v277_v33  ;;  %v392_v17 = vadd.f32 1.0, %v493_v11  ;;  %v369_v23 = vmul.f32 0.7978846, %v353_v15  ;;  %504 = vtanh.f32 %v361_v18 }
  0xfc   :  { %431 = vst [vmem:[%s772_s3 + $0x50] sm:$0xff] %v415_v12  ;;  %v413_v20 = vmul.f32 %v397_v13, %v285_v44  ;;  %v400_v21 = vadd.f32 1.0, %v495_v16  ;;  %v497_v26 = vpop.eup %496  ;;  %v348_v28 = vadd.f32 %v332_v10, %v672_v37  ;;  %v324_v33 = vmul.f32 %v308_v24, %v692_v53 }
  0xfd   :  { %421 = vst [vmem:[%s772_s3] sm:$0xff] %v405_v9  ;;  %v408_v27 = vmul.f32 %v392_v17, %v280_v49  ;;  %v390_v32 = vadd.f32 1.0, %v497_v26  ;;  %506 = vtanh.f32 %v369_v23  ;;  %v314_v45 = vmul.f32 %v298_v36, %v711_v29 }
  0xfe   :  { %429 = vst [vmem:[%s772_s3 + $0x40] sm:$0xff] %v413_v20  ;;  %v416_v31 = vmul.f32 %v400_v21, %v288_v54  ;;  %v364_v35 = vmul.f32 0.7978846, %v348_v28  ;;  %v499_v39 = vpop.eup %498  ;;  %v340_v41 = vmul.f32 %v324_v33, %v692_v53  ;;  %v306_v19 = vmul.f32 0.044715, %v274_v14 }
  0xff   :  { %424 = vst [vmem:[%s772_s3 + $0x18] sm:$0xff] %v408_v27  ;;  %v406_v34 = vmul.f32 %v390_v32, %v278_v58  ;;  %v398_v44 = vadd.f32 1.0, %v499_v39  ;;  %v330_v50 = vmul.f32 %v314_v45, %v711_v29  ;;  %v283_v52 = vmul.f32 0.5, %v650_v22 }
 0x100   :  { %432 = vst [vmem:[%s772_s3 + $0x58] sm:$0xff] %v416_v31  ;;  %508 = vtanh.f32 %v364_v35  ;;  %v356_v30 = vadd.f32 %v340_v41, %v692_v53  ;;  %v322_v55 = vmul.f32 %v306_v19, %v274_v14  ;;  %v291_v56 = vmul.f32 0.5, %v655_v25 }
 0x101   :  { %422 = vst [vmem:[%s772_s3 + $0x8] sm:$0xff] %v406_v34  ;;  %v501_v46 = vpop.eup %500  ;;  %v414_v49 = vmul.f32 %v398_v44, %v286_v42  ;;  %v346_v57 = vadd.f32 %v330_v50, %v711_v29  ;;  %v281_v22 = vmul.f32 0.5, %v664_v40  ;;  %v289_v25 = vmul.f32 0.5, %v669_v43 }
 0x102   :  { %v503_v51 = vpop.eup %502  ;;  %v395_v54 = vadd.f32 1.0, %v501_v46  ;;  %v372_v1 = vmul.f32 0.7978846, %v356_v30  ;;  %v338_v59 = vmul.f32 %v322_v55, %v274_v14  ;;  %v284_v40 = vmul.f32 0.5, %v672_v37 }
 0x103   :  { %430 = vst [vmem:[%s772_s3 + $0x48] sm:$0xff] %v414_v49  ;;  %v403_v38 = vadd.f32 1.0, %v503_v51  ;;  %v362_v61 = vmul.f32 0.7978846, %v346_v57  ;;  %v292_v8 = vmul.f32 0.5, %v692_v53  ;;  %v282_v15 = vmul.f32 0.5, %v711_v29 }
 0x104   :  { %v411_v58 = vmul.f32 %v395_v54, %v283_v52  ;;  %510 = vtanh.f32 %v372_v1  ;;  %v354_v48 = vadd.f32 %v338_v59, %v274_v14  ;;  %v290_v17 = vmul.f32 0.5, %v274_v14 }
 0x105   :  { %v505_v47 = vpop.eup %504  ;;  %v419_v60 = vmul.f32 %v403_v38, %v291_v56  ;;  %512 = vtanh.f32 %v362_v61 }
 0x106   :  { %427 = vst [vmem:[%s772_s3 + $0x30] sm:$0xff] %v411_v58  ;;  %v393_v63 = vadd.f32 1.0, %v505_v47  ;;  %v370_v3 = vmul.f32 0.7978846, %v354_v48 }
 0x107   :  { %v507_v62 = vpop.eup %506  ;;  %435 = vst [vmem:[%s772_s3 + $0x70] sm:$0xff] %v419_v60 }
 0x108   :  { %v401_v0 = vadd.f32 1.0, %v507_v62  ;;  %v409_v2 = vmul.f32 %v393_v63, %v281_v22  ;;  %514 = vtanh.f32 %v370_v3 }
 0x10a   :  { %v509_v4 = vpop.eup %508  ;;  %v417_v5 = vmul.f32 %v401_v0, %v289_v25  ;;  %425 = vst [vmem:[%s772_s3 + $0x20] sm:$0xff] %v409_v2 }
 0x10b   :  { %v396_v6 = vadd.f32 1.0, %v509_v4 }
 0x10c   :  { %433 = vst [vmem:[%s772_s3 + $0x60] sm:$0xff] %v417_v5 }
 0x10d   :  { %v412_v7 = vmul.f32 %v396_v6, %v284_v40 }
 0x10e   :  { %v511_v43 = vpop.eup %510 }
 0x10f   :  { %428 = vst [vmem:[%s772_s3 + $0x38] sm:$0xff] %v412_v7  ;;  %v404_v11 = vadd.f32 1.0, %v511_v43  ;;  %v513_v12 = vpop.eup %512 }
 0x110   :  { %v394_v37 = vadd.f32 1.0, %v513_v12 }
 0x111   :  { %v420_v13 = vmul.f32 %v404_v11, %v292_v8 }
 0x112   :  { %v515_v16 = vpop.eup %514  ;;  %v410_v9 = vmul.f32 %v394_v37, %v282_v15 }
 0x113   :  { %436 = vst [vmem:[%s772_s3 + $0x78] sm:$0xff] %v420_v13  ;;  %v402_v18 = vadd.f32 1.0, %v515_v16 }
 0x114   :  { %426 = vst [vmem:[%s772_s3 + $0x28] sm:$0xff] %v410_v9 }
 0x115   :  { %v418_v10 = vmul.f32 %v402_v18, %v290_v17 }
 0x117   :  { %434 = vst [vmem:[%s772_s3 + $0x68] sm:$0xff] %v418_v10 }

// kernel: linformer_lm_forward.45
= control target key start
LH: loop header
LB: loop body
LE: loop exit
PB: predicated region body
PF: predicated region fallthrough
CT: control target
= control target key end

     0   :  { %vm20_vm0 = vcmask 523264   ;;  %v383_v7 = vmov 0.0   ;;  %vm83_vm1 = vcmask 261120   ;;  %s556_s0 = inlined_call_operand.vmem [shape: f32[128,32], index: 0, kind: input, shape index: {}]   ;;  %s557_s1 = inlined_call_operand.vmem [shape: f32[32,64], index: 1, kind: input, shape index: {}]   ;;  %s558_s2 = inlined_call_operand.vmem [shape: f32[1,64], index: 2, kind: input, shape index: {}]   ;;  %s559_s3 = inlined_call_operand.hbm [shape: f32[128,64], index: 3, kind: output, shape index: {}]  }
   0x1   :  { %v77_v0 = vld [vmem:[%s557_s1] sm:$0xff]  ;;  %v78_v1 = vld [vmem:[%s557_s1 + $0x8] sm:$0xff]  ;;  %v79_v2 = vld [vmem:[%s557_s1 + $0x10] sm:$0xff]  ;;  %23 = vst.msk [vmem:[#allocation2 + $0x10] sm:$0xff] %vm20_vm0, %v383_v7 }
   0x2   :  { %v81_v3 = vpack.c.bf16 %v78_v1, %v77_v0  ;;  %v80_v4 = vld [vmem:[%s557_s1 + $0x18] sm:$0xff]  ;;  %v53_v5 = vld [vmem:[%s556_s0] sm:$0xff]  ;;  %v54_v6 = vld [vmem:[%s556_s0 + $0x8] sm:$0xff]  ;;  %21 = vst.msk [vmem:[#allocation2] sm:$0xff] %vm20_vm0, %v383_v7 }
   0x3   :  { %22 = vst.msk [vmem:[#allocation2 + $0x8] sm:$0xff] %vm20_vm0, %v383_v7  ;;  %24 = vst.msk [vmem:[#allocation2 + $0x18] sm:$0xff] %vm20_vm0, %v383_v7  ;;  %v82_v8 = vpack.c.bf16 %v80_v4, %v79_v2  ;;  %v69_v9 = vpack.c.bf16 %v54_v6, %v53_v5  ;;  %v61_v10 = vld [vmem:[%s556_s0 + $0x40] sm:$0xff]  ;;  %v62_v11 = vld [vmem:[%s556_s0 + $0x48] sm:$0xff] }
   0x4   :  { %25 = vst.msk [vmem:[#allocation2 + $0x20] sm:$0xff] %vm20_vm0, %v383_v7  ;;  %26 = vst.msk [vmem:[#allocation2 + $0x28] sm:$0xff] %vm20_vm0, %v383_v7  ;;  %331 = vmatprep.subr.bf16.mxu0 %v81_v3  ;;  %351 = vmatprep.subr.bf16.mxu1 %v81_v3  ;;  %v73_v12 = vpack.c.bf16 %v62_v11, %v61_v10  ;;  %v55_v13 = vld [vmem:[%s556_s0 + $0x10] sm:$0xff]  ;;  %v56_v14 = vld [vmem:[%s556_s0 + $0x18] sm:$0xff] }
   0x5   :  { %27 = vst.msk [vmem:[#allocation2 + $0x30] sm:$0xff] %vm20_vm0, %v383_v7  ;;  %28 = vst.msk [vmem:[#allocation2 + $0x38] sm:$0xff] %vm20_vm0, %v383_v7  ;;  %332 = vmatpush3.bf16.msra.mxu0 %v81_v3  ;;  %353 = vmatpush3.bf16.msra.mxu1 %v81_v3  ;;  %v63_v15 = vld [vmem:[%s556_s0 + $0x50] sm:$0xff]  ;;  %v64_v16 = vld [vmem:[%s556_s0 + $0x58] sm:$0xff] }
   0x6   :  { %29 = vst.msk [vmem:[#allocation2 + $0x40] sm:$0xff] %vm20_vm0, %v383_v7  ;;  %30 = vst.msk [vmem:[#allocation2 + $0x48] sm:$0xff] %vm20_vm0, %v383_v7  ;;  %v57_v17 = vld [vmem:[%s556_s0 + $0x20] sm:$0xff]  ;;  %333 = vmatprep.subr.bf16.mxu0 %v82_v8  ;;  %352 = vmatprep.subr.bf16.mxu1 %v82_v8  ;;  %v58_v18 = vld [vmem:[%s556_s0 + $0x28] sm:$0xff] }
   0x7   :  { %31 = vst.msk [vmem:[#allocation2 + $0x50] sm:$0xff] %vm20_vm0, %v383_v7  ;;  %32 = vst.msk [vmem:[#allocation2 + $0x58] sm:$0xff] %vm20_vm0, %v383_v7  ;;  %v65_v19 = vld [vmem:[%s556_s0 + $0x60] sm:$0xff]  ;;  %v66_v20 = vld [vmem:[%s556_s0 + $0x68] sm:$0xff]  ;;  %335 = vmatprep.mubr.msk.bf16.mxu0 %vm83_vm1, %v69_v9  ;;  %343 = vmatprep.mubr.msk.bf16.mxu1 %vm83_vm1, %v73_v12 }
   0x8   :  { %33 = vst.msk [vmem:[#allocation2 + $0x60] sm:$0xff] %vm20_vm0, %v383_v7  ;;  %34 = vst.msk [vmem:[#allocation2 + $0x68] sm:$0xff] %vm20_vm0, %v383_v7 }
   0x9   :  { %35 = vst.msk [vmem:[#allocation2 + $0x70] sm:$0xff] %vm20_vm0, %v383_v7  ;;  %36 = vst.msk [vmem:[#allocation2 + $0x78] sm:$0xff] %vm20_vm0, %v383_v7 }
   0xa   :  { %8 = vsyncpa [#allocation4], 0  ;;  %v70_v21 = vpack.c.bf16 %v56_v14, %v55_v13  ;;  %v74_v22 = vpack.c.bf16 %v64_v16, %v63_v15  ;;  %334 = vmatpush3.bf16.msra.mxu0 %v82_v8  ;;  %354 = vmatpush3.bf16.msra.mxu1 %v82_v8  ;;  %v71_v23 = vpack.c.bf16 %v58_v18, %v57_v17  ;;  %v59_v25 = vld [vmem:[%s556_s0 + $0x30] sm:$0xff]  ;;  %v60_v26 = vld [vmem:[%s556_s0 + $0x38] sm:$0xff] }
   0xb   :  { %v75_v24 = vpack.c.bf16 %v66_v20, %v65_v19  ;;  %v67_v27 = vld [vmem:[%s556_s0 + $0x70] sm:$0xff]  ;;  %v68_v28 = vld [vmem:[%s556_s0 + $0x78] sm:$0xff]  ;;  %v72_v29 = vpack.c.bf16 %v60_v26, %v59_v25  ;;  %v37_v33 = vld [vmem:[#allocation2] sm:$0xff] }
   0xc   :  { %v76_v30 = vpack.c.bf16 %v68_v28, %v67_v27  ;;  %v39_v31 = vld [vmem:[#allocation2 + $0x10] sm:$0xff]  ;;  %v40_v37 = vld [vmem:[#allocation2 + $0x18] sm:$0xff]  ;;  %v38_v43 = vld [vmem:[#allocation2 + $0x8] sm:$0xff] }
   0xd   :  { %336 = vmatmul.mubr.msk.bf16.vlgmr.msra.gmra.mrb[0].mxu0 %vm83_vm1, %v70_v21  ;;  %344 = vmatmul.mubr.msk.bf16.vlgmr.msra.gmra.mrb[0].mxu1 %vm83_vm1, %v74_v22  ;;  %v45_v34 = vld [vmem:[#allocation2 + $0x40] sm:$0xff]  ;;  %v46_v44 = vld [vmem:[#allocation2 + $0x48] sm:$0xff]  ;;  %v43_v55 = vld [vmem:[#allocation2 + $0x30] sm:$0xff] }
   0xe   :  { %339 = vmatprep.mubr.msk.bf16.mxu0 %vm83_vm1, %v71_v23  ;;  %347 = vmatprep.mubr.msk.bf16.mxu1 %vm83_vm1, %v75_v24  ;;  %v47_v32 = vld [vmem:[#allocation2 + $0x50] sm:$0xff]  ;;  %v48_v38 = vld [vmem:[#allocation2 + $0x58] sm:$0xff]  ;;  %v41_v57 = vld [vmem:[#allocation2 + $0x20] sm:$0xff] }
   0xf   :  { %v49_v58 = vld [vmem:[#allocation2 + $0x60] sm:$0xff]  ;;  %v44_v62 = vld [vmem:[#allocation2 + $0x38] sm:$0xff]  ;;  %v42_v4 = vld [vmem:[#allocation2 + $0x28] sm:$0xff] }
  0x10   :  { %v51_v56 = vld [vmem:[#allocation2 + $0x70] sm:$0xff]  ;;  %v502_v59 = vld [vmem:[%s558_s2] ss:$0 sm:$0xff]  ;;  %v52_v63 = vld [vmem:[#allocation2 + $0x78] sm:$0xff]  ;;  %s384_s2 = smov [#allocation3]  }
  0x11   :  { %v50_v5 = vld [vmem:[#allocation2 + $0x68] sm:$0xff]  ;;  %s301_s24 = sshll.u32 %s384_s2, 4  ;;  %s302_s24 = int_to_ptr.vmem [resolvable:$true] %s301_s24 }
  0x12   :  { %s359_s25 = scalar_lea.vmem %s302_s24, 2048  ;;  %p364_p1 = scmp.lt.s32.totalorder %s302_s24, %s302_s24 }
  0x13   :  { %p360_p0 = scmp.ne.s32.totalorder %s302_s24, %s359_s25  ;;  %p365_p2 = scmp.lt.s32.totalorder %s359_s25, %s359_s25 }
  0x15   :  { %340 = vmatmul.mubr.msk.bf16.gmra.mrb[4].mxu0 %vm83_vm1, %v72_v29  ;;  %348 = vmatmul.mubr.msk.bf16.gmra.mrb[4].mxu1 %vm83_vm1, %v76_v30  ;;  %p366_p3 = por %p365_p2, %p364_p1 }
  0x17   :  { %p367_p4 = pnand %p366_p3, %p360_p0 }
  0xe0   :  { %v337_v35 = vpop.f32.mrb[0].mxu0  ;;  %v345_v36 = vpop.f32.mrb[0].mxu1 }
  0xe1   :  { %v207_v39 = vadd.f32 %v337_v35, %v39_v31  ;;  %v215_v40 = vadd.f32 %v345_v36, %v47_v32  ;;  %v142_v41 = vpop.f32.mrb[1].mxu0  ;;  %v174_v42 = vpop.f32.mrb[1].mxu1 }
  0xe2   :  { %v205_v45 = vadd.f32 %v142_v41, %v37_v33  ;;  %v213_v46 = vadd.f32 %v174_v42, %v45_v34  ;;  %v338_v47 = vpop.f32.mrb[2].mxu0  ;;  %v346_v48 = vpop.f32.mrb[2].mxu1 }
  0xe3   :  { %224 = vst.msk [vmem:[#allocation2 + $0x10] sm:$0xff] %vm20_vm0, %v207_v39  ;;  %232 = vst.msk [vmem:[#allocation2 + $0x50] sm:$0xff] %vm20_vm0, %v215_v40  ;;  %v208_v49 = vadd.f32 %v338_v47, %v40_v37  ;;  %v216_v50 = vadd.f32 %v346_v48, %v48_v38  ;;  %v145_v51 = vpop.f32.mrb[3].mxu0  ;;  %v177_v52 = vpop.f32.mrb[3].mxu1 }
  0xe4   :  { %222 = vst.msk [vmem:[#allocation2] sm:$0xff] %vm20_vm0, %v205_v45  ;;  %230 = vst.msk [vmem:[#allocation2 + $0x40] sm:$0xff] %vm20_vm0, %v213_v46  ;;  %v206_v53 = vadd.f32 %v145_v51, %v38_v43  ;;  %v214_v54 = vadd.f32 %v177_v52, %v46_v44 }
  0xe5   :  { %225 = vst.msk [vmem:[#allocation2 + $0x18] sm:$0xff] %vm20_vm0, %v208_v49  ;;  %233 = vst.msk [vmem:[#allocation2 + $0x58] sm:$0xff] %vm20_vm0, %v216_v50 }
  0xe6   :  { %223 = vst.msk [vmem:[#allocation2 + $0x8] sm:$0xff] %vm20_vm0, %v206_v53  ;;  %231 = vst.msk [vmem:[#allocation2 + $0x48] sm:$0xff] %vm20_vm0, %v214_v54 }
  0xe8   :  { %v341_v60 = vpop.f32.mrb[4].mxu0  ;;  %v349_v61 = vpop.f32.mrb[4].mxu1 }
  0xe9   :  { %v211_v0 = vadd.f32 %v341_v60, %v43_v55  ;;  %v219_v1 = vadd.f32 %v349_v61, %v51_v56  ;;  %v158_v2 = vpop.f32.mrb[5].mxu0  ;;  %v190_v3 = vpop.f32.mrb[5].mxu1 }
  0xea   :  { %v243_v6 = vld [vmem:[#allocation2 + $0x10] sm:$0xff]  ;;  %v209_v8 = vadd.f32 %v158_v2, %v41_v57  ;;  %v217_v9 = vadd.f32 %v190_v3, %v49_v58  ;;  %v342_v10 = vpop.f32.mrb[6].mxu0  ;;  %v350_v11 = vpop.f32.mrb[6].mxu1 }
  0xeb   :  { %v251_v7 = vld [vmem:[#allocation2 + $0x50] sm:$0xff]  ;;  %v266_v12 = vadd.f32 %v502_v59, %v243_v6  ;;  %v241_v14 = vld [vmem:[#allocation2] sm:$0xff]  ;;  %228 = vst.msk [vmem:[#allocation2 + $0x30] sm:$0xff] %vm20_vm0, %v211_v0  ;;  %236 = vst.msk [vmem:[#allocation2 + $0x70] sm:$0xff] %vm20_vm0, %v219_v1  ;;  %v212_v16 = vadd.f32 %v342_v10, %v44_v62  ;;  %v220_v17 = vadd.f32 %v350_v11, %v52_v63  ;;  %v161_v18 = vpop.f32.mrb[7].mxu0  ;;  %v193_v19 = vpop.f32.mrb[7].mxu1 }
  0xec   :  { %v274_v13 = vadd.f32 %v502_v59, %v251_v7  ;;  %v249_v15 = vld [vmem:[#allocation2 + $0x40] sm:$0xff]  ;;  %v264_v20 = vadd.f32 %v502_v59, %v241_v14  ;;  %v244_v22 = vld [vmem:[#allocation2 + $0x18] sm:$0xff]  ;;  %226 = vst.msk [vmem:[#allocation2 + $0x20] sm:$0xff] %vm20_vm0, %v209_v8  ;;  %234 = vst.msk [vmem:[#allocation2 + $0x60] sm:$0xff] %vm20_vm0, %v217_v9  ;;  %v210_v24 = vadd.f32 %v161_v18, %v42_v4 }
  0xed   :  { %v272_v21 = vadd.f32 %v502_v59, %v249_v15  ;;  %v252_v23 = vld [vmem:[#allocation2 + $0x58] sm:$0xff]  ;;  %v218_v25 = vadd.f32 %v193_v19, %v50_v5  ;;  %282 = vst.msk [vmem:[#allocation3 + $0x10] sm:$0xff] %vm20_vm0, %v266_v12  ;;  %v267_v26 = vadd.f32 %v502_v59, %v244_v22  ;;  %v242_v28 = vld [vmem:[#allocation2 + $0x8] sm:$0xff]  ;;  %229 = vst.msk [vmem:[#allocation2 + $0x38] sm:$0xff] %vm20_vm0, %v212_v16 }
  0xee   :  { %290 = vst.msk [vmem:[#allocation3 + $0x50] sm:$0xff] %vm20_vm0, %v274_v13  ;;  %v275_v27 = vadd.f32 %v502_v59, %v252_v23  ;;  %v250_v29 = vld [vmem:[#allocation2 + $0x48] sm:$0xff]  ;;  %237 = vst.msk [vmem:[#allocation2 + $0x78] sm:$0xff] %vm20_vm0, %v220_v17  ;;  %v265_v30 = vadd.f32 %v502_v59, %v242_v28 }
  0xef   :  { %280 = vst.msk [vmem:[#allocation3] sm:$0xff] %vm20_vm0, %v264_v20  ;;  %288 = vst.msk [vmem:[#allocation3 + $0x40] sm:$0xff] %vm20_vm0, %v272_v21  ;;  %v273_v31 = vadd.f32 %v502_v59, %v250_v29 }
  0xf0   :  { %227 = vst.msk [vmem:[#allocation2 + $0x28] sm:$0xff] %vm20_vm0, %v210_v24  ;;  %235 = vst.msk [vmem:[#allocation2 + $0x68] sm:$0xff] %vm20_vm0, %v218_v25 }
  0xf1   :  { %283 = vst.msk [vmem:[#allocation3 + $0x18] sm:$0xff] %vm20_vm0, %v267_v26  ;;  %291 = vst.msk [vmem:[#allocation3 + $0x58] sm:$0xff] %vm20_vm0, %v275_v27 }
  0xf2   :  { %281 = vst.msk [vmem:[#allocation3 + $0x8] sm:$0xff] %vm20_vm0, %v265_v30  ;;  %289 = vst.msk [vmem:[#allocation3 + $0x48] sm:$0xff] %vm20_vm0, %v273_v31  ;;  %v247_v32 = vld [vmem:[#allocation2 + $0x30] sm:$0xff] }
  0xf3   :  { %v255_v33 = vld [vmem:[#allocation2 + $0x70] sm:$0xff]  ;;  %v270_v34 = vadd.f32 %v502_v59, %v247_v32  ;;  %v245_v36 = vld [vmem:[#allocation2 + $0x20] sm:$0xff] }
  0xf4   :  { %v278_v35 = vadd.f32 %v502_v59, %v255_v33  ;;  %v253_v37 = vld [vmem:[#allocation2 + $0x60] sm:$0xff]  ;;  %v268_v38 = vadd.f32 %v502_v59, %v245_v36  ;;  %v248_v40 = vld [vmem:[#allocation2 + $0x38] sm:$0xff] }
  0xf5   :  { %v276_v39 = vadd.f32 %v502_v59, %v253_v37  ;;  %v256_v41 = vld [vmem:[#allocation2 + $0x78] sm:$0xff]  ;;  %286 = vst.msk [vmem:[#allocation3 + $0x30] sm:$0xff] %vm20_vm0, %v270_v34  ;;  %v271_v42 = vadd.f32 %v502_v59, %v248_v40 }
  0xf6   :  { %294 = vst.msk [vmem:[#allocation3 + $0x70] sm:$0xff] %vm20_vm0, %v278_v35  ;;  %v279_v43 = vadd.f32 %v502_v59, %v256_v41  ;;  %284 = vst.msk [vmem:[#allocation3 + $0x20] sm:$0xff] %vm20_vm0, %v268_v38 }
  0xf7   :  { %v246_v44 = vld [vmem:[#allocation2 + $0x28] sm:$0xff]  ;;  %292 = vst.msk [vmem:[#allocation3 + $0x60] sm:$0xff] %vm20_vm0, %v276_v39  ;;  %287 = vst.msk [vmem:[#allocation3 + $0x38] sm:$0xff] %vm20_vm0, %v271_v42 }
  0xf8   :  { %v254_v45 = vld [vmem:[#allocation2 + $0x68] sm:$0xff]  ;;  %v269_v46 = vadd.f32 %v502_v59, %v246_v44  ;;  %295 = vst.msk [vmem:[#allocation3 + $0x78] sm:$0xff] %vm20_vm0, %v279_v43 }
  0xf9   :  { %v277_v47 = vadd.f32 %v502_v59, %v254_v45 }
  0xfa   :  { %285 = vst.msk [vmem:[#allocation3 + $0x28] sm:$0xff] %vm20_vm0, %v269_v46 }
  0xfb   :  { %293 = vst.msk [vmem:[#allocation3 + $0x68] sm:$0xff] %vm20_vm0, %v277_v47 }
  0xfc   :  { %370 = shalt.err (!%p367_p4)
}
  0xfd   :  { %s371_s28 = scalar_lea.hbm %s559_s3, 2048 }
  0xfe   :  { %p372_p5 = scmp.ne.s32.totalorder %s559_s3, %s371_s28  ;;  %p375_p6 = scmp.lt.u32.totalorder %s371_s28, %s559_s3 }
 0x100   :  { %p377_p7 = pnand %p375_p6, %p372_p5 }
 0x102   :  { %380 = shalt.err (!%p377_p7)
}
 0x103   :  { %s385_s6 = smov 128   ;;  %s386_s7 = smov 8  }
 0x104   :  { %307 = dma.vmem_to_hbm [thread:$0]  %s302_s24, 2048, %s559_s3, [#allocation4], %s385_s6, %s385_s6, %s386_s7  }
 0x105   :  { %381 = dma.done.wait [#allocation4], 2048  }
 0x106   :  { %382 = vsyncadd [#allocation4], 4294965248 }
 0x107   :  { %311 = vsyncpa [#allocation4], 1 }

</bundles_post_ra>
